<compile_context>
chip_gen: v7x
topology: tpu7x:2x2x1
jax: 0.10.0
libtpu: 0.0.40
codegen_flags: <defaults>
</compile_context>

<pallas_src>
import functools

import jax
import jax.numpy as jnp
from jax.experimental import pallas as pl
from jax.experimental.pallas import tpu as pltpu

_LANES = 128
_TILE_BYTES = 4 * 1024 * 1024        # target bytes per (single) output tile buffer
_VMEM_LIMIT = 32 * 1024 * 1024       # > v5e 16 MiB scoped default, <= v7x 64 MiB physical
_MAX_LANE_TILE = 512                 # lane-axis tile for the large-D fallback path
_MAX_PACK = 16                       # cap on static unroll of the lane-packing loop
_SMALL_N_ELEMS = 64 * 1024           # below this, plain XLA broadcast-multiply wins


def _round_up(x, m):
    return ((x + m - 1) // m) * m


def _sublane_multiple(*dtypes):
    # Minimum (sublane, lane) tile is (8,128) f32 / (16,128) bf16 / (32,128) int8|fp8.
    itemsize = min(jnp.dtype(d).itemsize for d in dtypes)
    return max(8, 32 // max(1, itemsize))


def _choose_row_tile(num_rows, row_bytes, sub, tile_bytes=_TILE_BYTES):
    """Row tile: multiple of `sub`, <= num_rows, ~tile_bytes per buffer,
    and >= 2 grid steps when there is enough work (v7x dual-TC sharding)."""
    budget_rows = max(sub, (tile_bytes // row_bytes) // sub * sub)
    if num_rows < 2 * sub:
        return num_rows                       # single block == full dim (always legal)
    n_tiles = max(2, pl.cdiv(num_rows, budget_rows))
    tile = _round_up(pl.cdiv(num_rows, n_tiles), sub)
    return min(tile, budget_rows)


# ----------------------------------------------------------------------------
# Kernels
# ----------------------------------------------------------------------------
def _dist_encode_kernel(dist_ref, w_ref, out_ref):
    """Fallback path: dist_ref (T, 1), w_ref (1, Dt), out_ref (T, Dt)."""
    d = dist_ref[...].astype(jnp.float32)            # (T, 1)
    w = w_ref[...].astype(jnp.float32)               # (1, Dt)
    out_ref[...] = (d * w).astype(out_ref.dtype)     # exact f32 VPU multiply


def _dist_encode_packed_kernel(dist_ref, w_onehot_ref, out_ref, *, pack):
    """Lane-dense path (D < 128, D | 128).

    dist_ref    : (T, pack)      — `pack` consecutive dist values per packed row
    w_onehot_ref: (pack, 128)    — row j = weight tiled along lanes, masked to
                                   lane-group j (zeros elsewhere), f32
    out_ref     : (T, 128)       — packed output row (unmasked 128-lane stores)

    out[t, l] = dist[t, l // D] * w[l % D] == sum_j dist[t, j] * w_onehot[j, l]
    (exactly one non-zero term per lane, so the f32 accumulation is bit-exact).
    """
    d = dist_ref[...].astype(jnp.float32)            # (T, pack)
    w = w_onehot_ref[...].astype(jnp.float32)        # (pack, 128)
    acc = d[:, 0:1] * w[0:1, :]                      # (T, 128)
    for j in range(1, pack):                         # static, pack <= 16
        acc = acc + d[:, j:j + 1] * w[j:j + 1, :]
    out_ref[...] = acc.astype(out_ref.dtype)
    # TODO(synk): this outer-product accumulation could move onto the idle MXU
    # (jnp.dot(d, w_onehot)) per the perf review, but only with a guaranteed
    # >= 3-pass f32 precision; keep the bit-exact VPU form for now.


# ----------------------------------------------------------------------------
# Wrapper
# ----------------------------------------------------------------------------
def distance_encoder_simple(dist, embed_weight):
    """dist: (N,), embed_weight: (1, D) -> (N, D)  (== dist[:, None] * weight)."""
    n = dist.shape[0]
    d_dim = embed_weight.shape[-1]
    w2d = embed_weight.reshape(1, d_dim)
    out_dtype = jnp.result_type(dist.dtype, embed_weight.dtype)
    out_itemsize = jnp.dtype(out_dtype).itemsize

    # Small-problem escape hatch: XLA fuses a single broadcast-multiply optimally;
    # pallas_call launch + layout plumbing would dominate at tiny sizes.
    if n * d_dim <= _SMALL_N_ELEMS:
        return (dist[:, None] * w2d).astype(out_dtype)

    sub = _sublane_multiple(out_dtype, dist.dtype, embed_weight.dtype)
    cost = pl.CostEstimate(
        flops=int(n * d_dim),
        transcendentals=0,
        bytes_accessed=int(n * jnp.dtype(dist.dtype).itemsize
                           + d_dim * jnp.dtype(embed_weight.dtype).itemsize
                           + n * d_dim * out_itemsize))

    use_packed = (d_dim < _LANES) and (_LANES % d_dim == 0) and \
                 (_LANES // d_dim <= _MAX_PACK)

    if use_packed:
        # ---- lane-dense path: pack `pack` output rows into 128 lanes --------
        pack = _LANES // d_dim
        m = pl.cdiv(n, pack)                          # packed output rows
        if m * pack != n:                             # tiny input-only pad
            dist = jnp.pad(dist, (0, m * pack - n))
        dist_packed = dist.reshape(m, pack)

        # One-hot-masked weight rows (pack, 128): row j = tiled w, zeroed outside
        # lane-group j.  Tiny, built once in XLA, stays resident in VMEM.
        lane_grp = jnp.arange(_LANES) // d_dim
        w_onehot = jnp.where(lane_grp[None, :] == jnp.arange(pack)[:, None],
                             jnp.tile(w2d.astype(jnp.float32), (1, pack)),
                             jnp.float32(0))

        tile_rows = _choose_row_tile(m, _LANES * out_itemsize, sub)
        n_tiles = pl.cdiv(m, tile_rows)

        out_packed = pl.pallas_call(
            functools.partial(_dist_encode_packed_kernel, pack=pack),
            out_shape=jax.ShapeDtypeStruct((m, _LANES), out_dtype),
            grid_spec=pltpu.PrefetchScalarGridSpec(
                num_scalar_prefetch=0,
                grid=(n_tiles,),
                in_specs=[
                    pl.BlockSpec((tile_rows, pack), lambda i: (i, 0)),   # dist tile
                    pl.BlockSpec((pack, _LANES), lambda i: (0, 0)),      # weights (resident)
                ],
                out_specs=pl.BlockSpec((tile_rows, _LANES), lambda i: (i, 0)),
            ),
            compiler_params=pltpu.CompilerParams(
                dimension_semantics=("parallel",),
                vmem_limit_bytes=_VMEM_LIMIT),
            cost_estimate=cost,
        )(dist_packed, w_onehot)

        # (m, 128) row-major == (m*pack, D) row-major: reshape is layout plumbing.
        out = out_packed.reshape(m * pack, d_dim)
        # Only when n % pack != 0 is a tail slice (one output copy) required.
        return out if m * pack == n else out[:n]

    # ---- fallback path: D >= 128 (already lane-dense) or awkward D ----------
    tile_d = d_dim if d_dim <= _MAX_LANE_TILE else _MAX_LANE_TILE
    tile_n = _choose_row_tile(n, tile_d * out_itemsize, sub)
    grid = (pl.cdiv(n, tile_n), pl.cdiv(d_dim, tile_d))
    dist2d = dist.reshape(n, 1)

    return pl.pallas_call(
        _dist_encode_kernel,
        out_shape=jax.ShapeDtypeStruct((n, d_dim), out_dtype),
        grid_spec=pltpu.PrefetchScalarGridSpec(
            num_scalar_prefetch=0,
            grid=grid,
            in_specs=[
                pl.BlockSpec((tile_n, 1), lambda i, j: (i, 0)),     # dist column tile
                pl.BlockSpec((1, tile_d), lambda i, j: (0, j)),     # weight lane block
            ],
            out_specs=pl.BlockSpec((tile_n, tile_d), lambda i, j: (i, j)),
        ),
        compiler_params=pltpu.CompilerParams(
            dimension_semantics=("parallel", "parallel"),
            vmem_limit_bytes=_VMEM_LIMIT),
        cost_estimate=cost,
    )(dist2d, w2d)


def reference(dist, embed_weight):
    # Pure-JAX reference mirroring the PyTorch forward.
    return dist[:, None] * embed_weight


if __name__ == "__main__":
    key = jax.random.PRNGKey(0)
    k_w, k1, k2, k3, k4 = jax.random.split(key, 5)

    DIST_DIM = 32
    # Deterministic "parameters": nn.Embedding(1, dist_dim) default init ~ N(0, 1)
    w = jax.random.normal(k_w, (1, DIST_DIM), dtype=jnp.float32)

    # 1) tiny N -> small-problem (pure-XLA) escape hatch
    d1 = jax.random.uniform(k1, (8,), dtype=jnp.float32, minval=0.0, maxval=10.0)
    o1 = jax.block_until_ready(distance_encoder_simple(d1, w))
    assert o1.shape == (8, DIST_DIM)
    assert jnp.allclose(o1, reference(d1, w), atol=1e-6, rtol=1e-6)

    # 2) large N, multiple of pack -> lane-packed Pallas path, no tail slice
    d2 = jax.random.uniform(k2, (9000,), dtype=jnp.float32, minval=0.0, maxval=10.0)
    o2 = jax.block_until_ready(distance_encoder_simple(d2, w))
    assert o2.shape == (9000, DIST_DIM)
    assert jnp.allclose(o2, reference(d2, w), atol=1e-6, rtol=1e-6)

    # 3) ragged N (not multiple of pack) -> packed path with tail slice
    d3 = jax.random.uniform(k3, (9001,), dtype=jnp.float32, minval=0.0, maxval=10.0)
    o3 = jax.block_until_ready(distance_encoder_simple(d3, w))
    assert o3.shape == (9001, DIST_DIM)
    assert jnp.allclose(o3, reference(d3, w), atol=1e-6, rtol=1e-6)

    # 4) large embedding dim -> fallback path (2-D grid, lane-dense stores)
    D4 = 256
    w4 = jax.random.normal(k_w, (1, D4), dtype=jnp.float32)
    d4 = jax.random.uniform(k4, (1500,), dtype=jnp.float32, minval=0.0, maxval=10.0)
    o4 = jax.block_until_ready(distance_encoder_simple(d4, w4))
    assert o4.shape == (1500, D4)
    assert jnp.allclose(o4, reference(d4, w4), atol=1e-6, rtol=1e-6)

    print("KERNEL_OK")
</pallas_src>

<mosaic_0001>
module attributes {stable_mosaic.version = 11 : i64} {
  func.func @_dist_encode_packed_kernel(%arg0: i32, %arg1: memref<1128x4xf32, #tpu.memory_space<vmem>>, %arg2: memref<4x128xf32, #tpu.memory_space<vmem>>, %arg3: memref<1128x128xf32, #tpu.memory_space<vmem>>) attributes {dimension_semantics = [#tpu.dimension_semantics<parallel>], iteration_bounds = array<i64: 2>, scalar_prefetch = 0 : i64, scratch_operands = 0 : i64, tpu.core_type = #tpu.core_type<tc>, window_params = [{transform_indices = @transform_0, window_bounds = array<i64: 1128, 4>}, {pipeline_mode = #tpu.pipeline_mode<synchronous>, transform_indices = @transform_1, window_bounds = array<i64: 4, 128>}, {transform_indices = @transform_2, window_bounds = array<i64: 1128, 128>}]} {
    %c0 = arith.constant 0 : index
    %c0_0 = arith.constant 0 : index
    %0 = vector.load %arg1[%c0, %c0_0] : memref<1128x4xf32, #tpu.memory_space<vmem>>, vector<1128x4xf32>
    %c0_1 = arith.constant 0 : index
    %c0_2 = arith.constant 0 : index
    %1 = vector.load %arg2[%c0_1, %c0_2] : memref<4x128xf32, #tpu.memory_space<vmem>>, vector<4x128xf32>
    %2 = vector.extract_strided_slice %0 {offsets = [0, 0], sizes = [1128, 1], strides = [1, 1]} : vector<1128x4xf32> to vector<1128x1xf32>
    %3 = vector.extract_strided_slice %1 {offsets = [0, 0], sizes = [1, 128], strides = [1, 1]} : vector<4x128xf32> to vector<1x128xf32>
    %4 = vector.broadcast %2 : vector<1128x1xf32> to vector<1128x128xf32>
    %5 = vector.broadcast %3 : vector<1x128xf32> to vector<1128x128xf32>
    %6 = arith.mulf %4, %5 : vector<1128x128xf32>
    %7 = vector.extract_strided_slice %0 {offsets = [0, 1], sizes = [1128, 1], strides = [1, 1]} : vector<1128x4xf32> to vector<1128x1xf32>
    %8 = vector.extract_strided_slice %1 {offsets = [1, 0], sizes = [1, 128], strides = [1, 1]} : vector<4x128xf32> to vector<1x128xf32>
    %9 = vector.broadcast %7 : vector<1128x1xf32> to vector<1128x128xf32>
    %10 = vector.broadcast %8 : vector<1x128xf32> to vector<1128x128xf32>
    %11 = arith.mulf %9, %10 : vector<1128x128xf32>
    %12 = arith.addf %6, %11 : vector<1128x128xf32>
    %13 = vector.extract_strided_slice %0 {offsets = [0, 2], sizes = [1128, 1], strides = [1, 1]} : vector<1128x4xf32> to vector<1128x1xf32>
    %14 = vector.extract_strided_slice %1 {offsets = [2, 0], sizes = [1, 128], strides = [1, 1]} : vector<4x128xf32> to vector<1x128xf32>
    %15 = vector.broadcast %13 : vector<1128x1xf32> to vector<1128x128xf32>
    %16 = vector.broadcast %14 : vector<1x128xf32> to vector<1128x128xf32>
    %17 = arith.mulf %15, %16 : vector<1128x128xf32>
    %18 = arith.addf %12, %17 : vector<1128x128xf32>
    %19 = vector.extract_strided_slice %0 {offsets = [0, 3], sizes = [1128, 1], strides = [1, 1]} : vector<1128x4xf32> to vector<1128x1xf32>
    %20 = vector.extract_strided_slice %1 {offsets = [3, 0], sizes = [1, 128], strides = [1, 1]} : vector<4x128xf32> to vector<1x128xf32>
    %21 = vector.broadcast %19 : vector<1128x1xf32> to vector<1128x128xf32>
    %22 = vector.broadcast %20 : vector<1x128xf32> to vector<1128x128xf32>
    %23 = arith.mulf %21, %22 : vector<1128x128xf32>
    %24 = arith.addf %18, %23 : vector<1128x128xf32>
    %c0_3 = arith.constant 0 : index
    %c0_4 = arith.constant 0 : index
    %25 = vector.load %arg3[%c0_3, %c0_4] : memref<1128x128xf32, #tpu.memory_space<vmem>>, vector<1128x128xf32>
    tpu.vector_store %arg3[%c0_3, %c0_4], %24 {strides = array<i32>} : memref<1128x128xf32, #tpu.memory_space<vmem>>, vector<1128x128xf32>,
    return
  }
  func.func @transform_0(%arg0: i32) -> (i32, i32) {
    %c0_i32 = arith.constant 0 : i32
    %c0_i32_0 = arith.constant 0 : i32
    return %arg0, %c0_i32 : i32, i32
  }
  func.func @transform_1(%arg0: i32) -> (i32, i32) {
    %c0_i32 = arith.constant 0 : i32
    %c0_i32_0 = arith.constant 0 : i32
    %c0_i32_1 = arith.constant 0 : i32
    return %c0_i32, %c0_i32_0 : i32, i32
  }
  func.func @transform_2(%arg0: i32) -> (i32, i32) {
    %c0_i32 = arith.constant 0 : i32
    %c0_i32_0 = arith.constant 0 : i32
    return %arg0, %c0_i32 : i32, i32
  }
}

</mosaic_0001>

<bundles_post_ra>
// kernel: tpu_custom_call.1
= control target key start
LH: loop header
LB: loop body
LE: loop exit
PB: predicated region body
PF: predicated region fallthrough
CT: control target
= control target key end

     0   :  { %7 = vsyncpa [#allocation3], 0  ;;  %s7596_s0 = inlined_call_operand.vmem [shape: f32[2250,4], index: 0, kind: input, shape index: {}]   ;;  %s7597_s1 = inlined_call_operand.vmem [shape: f32[4,128], index: 1, kind: input, shape index: {}]   ;;  %s7598_s2 = inlined_call_operand.hbm [shape: f32[2250,128], index: 2, kind: output, shape index: {}]  }
   0x1   :  { %9 = vsyncpa [#allocation3 + $0x1], 0  ;;  %s4246_s9 = smov 0   ;;  %s4248_s10 = smov 0  }
   0x2   :  { %s4250_s11 = smov 0   ;;  %s4252_s12 = smov 0  }
   0x3 LB: > { %s4267_s13 = sadd.s32 4294967295, %s4222_s12   ;;  %s3904_s14 = sadd.s32 4294967294, %s4222_s12   ;;  %s4222_s12 = sphi %s4252_s12, %s8741_s12   ;;  %s4218_s11 = sphi %s4250_s11, %s8740_s11   ;;  %s4214_s10 = sphi %s4248_s10, %s8739_s10   ;;  %s4210_s9 = sphi %s4246_s9, %s8738_s9  }
   0x4   : > { %s4271_s15 = sadd.s32 1, %s4222_s12   ;;  %s69_s16 = sadd.s32 1, %s4218_s11 }
   0x5   : > { %s66_s17 = ssub.s32 %s4222_s12, %s4271_s15  ;;  %p79_p0 = scmp.ne.s32.totalorder %s4218_s11, %s4214_s10 }
   0x6   : > { %p67_p1 = scmp.eq.s32.totalorder %s66_s17, 0  ;;  %p80_p2 = scmp.eq.s32.totalorder %s4267_s13, 1 }
   0x7   : > { %p85_p3 = scmp.ne.s32.totalorder %s4214_s10, %s4210_s9  ;;  %p86_p4 = scmp.eq.s32.totalorder %s3904_s14, 1 }
   0x8   : > { %s4282_s18 = scalar_select %p67_p1, %s4218_s11, %s69_s16  }
   0x9   : > { %p4284_p5 = por %p80_p2, %p79_p0  ;;  %p4288_p6 = por %p86_p4, %p85_p3 }
   0xa   : > { %p3907_p7 = scmp.ge.s32.totalorder %s4222_s12, 1  ;;  %p116_p8 = scmp.lt.s32.totalorder %s4222_s12, 3 }
   0xc   : > { %p117_p9 = pnand %p3907_p7, %p116_p8 }
   0xe   : > { %120 = sbr.rel (%p117_p9) target bundleno = 1307 (0x51b), region = 28 }
  0x15   : > { %s138_s21 = smul.u32 141, %s4267_s13  ;;  %v4224_v0 = vmov 0   ;;  %s135_s28 = sand.u32 1, %s4214_s10  }
  0x16   : > { %3960 = vset.pattern.permute.xlu1 %v4224_v0  ;;  %3959 = vset.pattern.permute.xlu0 %v4224_v0  ;;  %s3913_s29 = smul.u32 1128, %s135_s28  ;;  %s7555_s8 = scalar_lea.sflag [#allocation3], %s135_s28 }
  0x17   : > { %p139_p10 = scmp.lt.s32.totalorder %s138_s21, 281  ;;  %s3912_s3 = smul.u32 18048, %s4267_s13 }
  0x18   : > { %s6369_s30 = scalar_lea.vmem [#allocation2], %s3913_s29  ;;  %s4228_s14 = smov [#allocation2]  }
  0x19   : > { %s8743_s21 = smov (!%p139_p10, %s138_s21), 281  ;;  %s3842_s4 = sshll.u32 %s6369_s30, 4  ;;  %s7550_s4 = int_to_ptr.vmem [resolvable:$true] %s3842_s4 }
  0x1a   : > { %s3908_s22 = sshll.u32 %s8743_s21, 3  ;;  %s7548_s7 = scalar_lea.hbm %s7598_s2, %s3912_s3 }
  0x1b   : > { %s4298_s25 = scalar_lea.vmem %s7596_s0, %s3908_s22  ;;  %s4160_s13 = scalar_lea.vmem %s7550_s4, 18048 }
  0x1c   : > { %v4301_v1 = vld [vmem:[%s4298_s25 + $0x10] sm:$0xff]  ;;  %v4304_v2 = vld [vmem:[%s4298_s25] sm:$0xff]  ;;  %v4309_v3 = vld [vmem:[%s4298_s25 + $0x18] sm:$0xff]  ;;  %p4161_p11 = scmp.ne.s32.totalorder %s7550_s4, %s4160_s13  ;;  %s4164_s16 = sshll.u32 %s4228_s14, 4  ;;  %s4165_s16 = int_to_ptr.vmem [resolvable:$false] %s4164_s16 }
  0x1d   : > { %299 = vperm.xlu1 %3960, %v4301_v1   ;;  %289 = vperm.xlu0 %3959, %v4304_v2   ;;  %v4312_v4 = vld [vmem:[%s4298_s25 + $0x8] sm:$0xff]  ;;  %v4320_v6 = vld [vmem:[%s4298_s25 + $0x20] sm:$0xff]  ;;  %v4325_v7 = vld [vmem:[%s4298_s25 + $0x38] sm:$0xff]  ;;  %s4166_s17 = scalar_lea.vmem %s4165_s16, 36096  ;;  %p4167_p0 = scmp.lt.s32.totalorder %s7550_s4, %s4165_s16 }
  0x1e   : > { %v4317_v5 = vld [vmem:[%s4298_s25 + $0x28] sm:$0xff]  ;;  %v4328_v8 = vld [vmem:[%s4298_s25 + $0x30] sm:$0xff]  ;;  %v4336_v10 = vld [vmem:[%s4298_s25 + $0x40] sm:$0xff]  ;;  %p4162_p12 = pnand %p4161_p11, %p4284_p5  ;;  %p4168_p1 = scmp.lt.s32.totalorder %s4166_s17, %s4160_s13 }
  0x1f   : > { %v4333_v9 = vld [vmem:[%s4298_s25 + $0x48] sm:$0xff]  ;;  %v4341_v11 = vld [vmem:[%s4298_s25 + $0x58] sm:$0xff]  ;;  %v4344_v12 = vld [vmem:[%s4298_s25 + $0x50] sm:$0xff] }
  0x20   : > { %v4349_v13 = vld [vmem:[%s4298_s25 + $0x68] sm:$0xff]  ;;  %v4352_v14 = vld [vmem:[%s4298_s25 + $0x60] sm:$0xff]  ;;  %v4357_v15 = vld [vmem:[%s4298_s25 + $0x78] sm:$0xff]  ;;  %p4163_p13 = pneg %p4162_p12  ;;  %p4169_p2 = por %p4168_p1, %p4167_p0 }
  0x21   : > { %304 = vperm.xlu1 %3960, %v4309_v3   ;;  %294 = vperm.xlu0 %3959, %v4312_v4   ;;  %v4360_v16 = vld [vmem:[%s4298_s25 + $0x70] sm:$0xff]  ;;  %v4365_v17 = vld [vmem:[%s4298_s25 + $0x88] sm:$0xff]  ;;  %v4368_v18 = vld [vmem:[%s4298_s25 + $0x80] sm:$0xff] }
  0x22   : > { %v4373_v19 = vld [vmem:[%s4298_s25 + $0x98] sm:$0xff]  ;;  %v4376_v20 = vld [vmem:[%s4298_s25 + $0x90] sm:$0xff]  ;;  %v4381_v21 = vld [vmem:[%s4298_s25 + $0xa8] sm:$0xff]  ;;  %p4170_p3 = pnand %p4169_p2, %p4163_p13 }
  0x23   : > { %v4384_v22 = vld [vmem:[%s4298_s25 + $0xa0] sm:$0xff]  ;;  %v4389_v23 = vld [vmem:[%s4298_s25 + $0xb8] sm:$0xff]  ;;  %v4392_v24 = vld [vmem:[%s4298_s25 + $0xb0] sm:$0xff] }
  0x24   : > { %v4397_v25 = vld [vmem:[%s4298_s25 + $0xc8] sm:$0xff]  ;;  %v4400_v26 = vld [vmem:[%s4298_s25 + $0xc0] sm:$0xff]  ;;  %v4405_v27 = vld [vmem:[%s4298_s25 + $0xd8] sm:$0xff] }
  0x25   : > { %314 = vperm.xlu1 %3960, %v4317_v5   ;;  %309 = vperm.xlu0 %3959, %v4320_v6   ;;  %v4408_v28 = vld [vmem:[%s4298_s25 + $0xd0] sm:$0xff]  ;;  %v4413_v29 = vld [vmem:[%s4298_s25 + $0xe8] sm:$0xff]  ;;  %v4416_v30 = vld [vmem:[%s4298_s25 + $0xe0] sm:$0xff] }
  0x26   : > { %v4421_v31 = vld [vmem:[%s4298_s25 + $0xf8] sm:$0xff]  ;;  %v4424_v32 = vld [vmem:[%s4298_s25 + $0xf0] sm:$0xff]  ;;  %v4429_v33 = vld [vmem:[%s4298_s25 + $0x108] sm:$0xff] }
  0x27   : > { %v4432_v34 = vld [vmem:[%s4298_s25 + $0x100] sm:$0xff]  ;;  %v4437_v35 = vld [vmem:[%s4298_s25 + $0x118] sm:$0xff]  ;;  %v4440_v36 = vld [vmem:[%s4298_s25 + $0x110] sm:$0xff] }
  0x28   : > { %v4445_v37 = vld [vmem:[%s4298_s25 + $0x128] sm:$0xff]  ;;  %v4448_v38 = vld [vmem:[%s4298_s25 + $0x120] sm:$0xff]  ;;  %v4453_v39 = vld [vmem:[%s4298_s25 + $0x138] sm:$0xff] }
  0x29   : > { %324 = vperm.xlu1 %3960, %v4325_v7   ;;  %319 = vperm.xlu0 %3959, %v4328_v8   ;;  %v4456_v40 = vld [vmem:[%s4298_s25 + $0x130] sm:$0xff]  ;;  %v4461_v41 = vld [vmem:[%s4298_s25 + $0x148] sm:$0xff]  ;;  %v4464_v42 = vld [vmem:[%s4298_s25 + $0x140] sm:$0xff] }
  0x2a   : > { %v4469_v43 = vld [vmem:[%s4298_s25 + $0x158] sm:$0xff]  ;;  %v4472_v44 = vld [vmem:[%s4298_s25 + $0x150] sm:$0xff]  ;;  %v4477_v45 = vld [vmem:[%s4298_s25 + $0x168] sm:$0xff] }
  0x2b   : > { %v4480_v46 = vld [vmem:[%s4298_s25 + $0x160] sm:$0xff]  ;;  %v4485_v47 = vld [vmem:[%s4298_s25 + $0x178] sm:$0xff]  ;;  %v4488_v48 = vld [vmem:[%s4298_s25 + $0x170] sm:$0xff] }
  0x2c   : > { %v4493_v49 = vld [vmem:[%s4298_s25 + $0x188] sm:$0xff]  ;;  %v4496_v50 = vld [vmem:[%s4298_s25 + $0x180] sm:$0xff]  ;;  %v4501_v51 = vld [vmem:[%s4298_s25 + $0x198] sm:$0xff] }
  0x2d   : > { %334 = vperm.xlu1 %3960, %v4333_v9   ;;  %329 = vperm.xlu0 %3959, %v4336_v10   ;;  %v4504_v52 = vld [vmem:[%s4298_s25 + $0x190] sm:$0xff]  ;;  %v4509_v53 = vld [vmem:[%s4298_s25 + $0x1a8] sm:$0xff]  ;;  %v4512_v54 = vld [vmem:[%s4298_s25 + $0x1a0] sm:$0xff] }
  0x2e   : > { %v4517_v55 = vld [vmem:[%s4298_s25 + $0x1b8] sm:$0xff]  ;;  %v4520_v56 = vld [vmem:[%s4298_s25 + $0x1b0] sm:$0xff]  ;;  %v4525_v57 = vld [vmem:[%s4298_s25 + $0x1c8] sm:$0xff] }
  0x2f   : > { %7720 = vst [vmem:[#allocation5_spill] sm:$0xff] %v4517_v55  ;;  %7721 = vst [vmem:[#allocation6_spill] sm:$0xff] %v4525_v57  ;;  %v4528_v58 = vld [vmem:[%s4298_s25 + $0x1c0] sm:$0xff]  ;;  %v4533_v59 = vld [vmem:[%s4298_s25 + $0x1d8] sm:$0xff] }
  0x30   : > { %7722 = vst [vmem:[#allocation7_spill] sm:$0xff] %v4528_v58  ;;  %7723 = vst [vmem:[#allocation8_spill] sm:$0xff] %v4533_v59  ;;  %v4536_v60 = vld [vmem:[%s4298_s25 + $0x1d0] sm:$0xff]  ;;  %v4541_v61 = vld [vmem:[%s4298_s25 + $0x1e8] sm:$0xff] }
  0x31   : > { %344 = vperm.xlu1 %3960, %v4341_v11   ;;  %339 = vperm.xlu0 %3959, %v4344_v12   ;;  %7724 = vst [vmem:[#allocation9_spill] sm:$0xff] %v4536_v60  ;;  %7725 = vst [vmem:[#allocation10_spill] sm:$0xff] %v4541_v61  ;;  %v4544_v62 = vld [vmem:[%s4298_s25 + $0x1e0] sm:$0xff]  ;;  %v4549_v63 = vld [vmem:[%s4298_s25 + $0x1f8] sm:$0xff] }
  0x32   : > { %7726 = vst [vmem:[#allocation11_spill] sm:$0xff] %v4544_v62  ;;  %7727 = vst [vmem:[#allocation12_spill] sm:$0xff] %v4549_v63  ;;  %v4552_v0 = vld [vmem:[%s4298_s25 + $0x1f0] sm:$0xff] }
  0x33   : > { %7728 = vst [vmem:[#allocation13_spill] sm:$0xff] %v4552_v0 }
  0x35   : > { %354 = vperm.xlu1 %3960, %v4349_v13   ;;  %349 = vperm.xlu0 %3959, %v4352_v14  }
  0x39   : > { %364 = vperm.xlu1 %3960, %v4357_v15   ;;  %359 = vperm.xlu0 %3959, %v4360_v16  }
  0x3d   : > { %374 = vperm.xlu1 %3960, %v4365_v17   ;;  %369 = vperm.xlu0 %3959, %v4368_v18  }
  0x41   : > { %384 = vperm.xlu1 %3960, %v4373_v19   ;;  %379 = vperm.xlu0 %3959, %v4376_v20  }
  0x45   : > { %394 = vperm.xlu1 %3960, %v4381_v21   ;;  %389 = vperm.xlu0 %3959, %v4384_v22  }
  0x49   : > { %404 = vperm.xlu1 %3960, %v4389_v23   ;;  %399 = vperm.xlu0 %3959, %v4392_v24  }
  0x4d   : > { %414 = vperm.xlu1 %3960, %v4397_v25   ;;  %409 = vperm.xlu0 %3959, %v4400_v26  }
  0x51   : > { %424 = vperm.xlu1 %3960, %v4405_v27   ;;  %419 = vperm.xlu0 %3959, %v4408_v28  }
  0x55   : > { %434 = vperm.xlu1 %3960, %v4413_v29   ;;  %429 = vperm.xlu0 %3959, %v4416_v30  }
  0x59   : > { %444 = vperm.xlu1 %3960, %v4421_v31   ;;  %439 = vperm.xlu0 %3959, %v4424_v32  }
  0x5d   : > { %454 = vperm.xlu1 %3960, %v4429_v33   ;;  %449 = vperm.xlu0 %3959, %v4432_v34  }
  0x61   : > { %464 = vperm.xlu1 %3960, %v4437_v35   ;;  %459 = vperm.xlu0 %3959, %v4440_v36  }
  0x65   : > { %474 = vperm.xlu1 %3960, %v4445_v37   ;;  %469 = vperm.xlu0 %3959, %v4448_v38  }
  0x69   : > { %484 = vperm.xlu1 %3960, %v4453_v39   ;;  %479 = vperm.xlu0 %3959, %v4456_v40  }
  0x6d   : > { %494 = vperm.xlu1 %3960, %v4461_v41   ;;  %489 = vperm.xlu0 %3959, %v4464_v42  }
  0x71   : > { %504 = vperm.xlu1 %3960, %v4469_v43   ;;  %499 = vperm.xlu0 %3959, %v4472_v44  }
  0x75   : > { %514 = vperm.xlu1 %3960, %v4477_v45   ;;  %509 = vperm.xlu0 %3959, %v4480_v46  }
  0x79   : > { %524 = vperm.xlu1 %3960, %v4485_v47   ;;  %519 = vperm.xlu0 %3959, %v4488_v48  }
  0x7d   : > { %534 = vperm.xlu1 %3960, %v4493_v49   ;;  %529 = vperm.xlu0 %3959, %v4496_v50  }
  0x81   : > { %544 = vperm.xlu1 %3960, %v4501_v51   ;;  %539 = vperm.xlu0 %3959, %v4504_v52  }
  0x85   : > { %554 = vperm.xlu1 %3960, %v4509_v53   ;;  %549 = vperm.xlu0 %3959, %v4512_v54  }
  0x89   : > { %564 = vperm.xlu1 %3960, %v4517_v55   ;;  %559 = vperm.xlu0 %3959, %v4520_v56   ;;  %v5004_v55 = vld [vmem:[%s4298_s25 + $0x450] sm:$0xff] }
  0x8d   : > { %574 = vperm.xlu1 %3960, %v4525_v57   ;;  %569 = vperm.xlu0 %3959, %v4528_v58   ;;  %v4572_v58 = vld [vmem:[%s4298_s25 + $0x210] sm:$0xff] }
  0x8e   : > { %7734 = vst [vmem:[#allocation19_spill] sm:$0xff] %v4572_v58 }
  0x91   : > { %584 = vperm.xlu1 %3960, %v4533_v59   ;;  %579 = vperm.xlu0 %3959, %v4536_v60   ;;  %v4557_v59 = vld [vmem:[%s4298_s25 + $0x208] sm:$0xff]  ;;  %v4560_v60 = vld [vmem:[%s4298_s25 + $0x200] sm:$0xff] }
  0x92   : > { %7729 = vst [vmem:[#allocation14_spill] sm:$0xff] %v4557_v59  ;;  %7730 = vst [vmem:[#allocation15_spill] sm:$0xff] %v4560_v60 }
  0x95   : > { %594 = vperm.xlu1 %3960, %v4541_v61   ;;  %589 = vperm.xlu0 %3959, %v4544_v62   ;;  %v4569_v62 = vld [vmem:[%s4298_s25 + $0x218] sm:$0xff] }
  0x96   : > { %7733 = vst [vmem:[#allocation18_spill] sm:$0xff] %v4569_v62 }
  0x99   : > { %604 = vperm.xlu1 %3960, %v4549_v63   ;;  %599 = vperm.xlu0 %3959, %v4552_v0  }
  0x9c   : > { %v4562_v57 = vpop.permute.xlu1 %299  ;;  %v4564_v61 = vpop.permute.xlu0 %289 }
  0x9d   : > { %7731 = vst [vmem:[#allocation16_spill] sm:$0xff] %v4562_v57  ;;  %7732 = vst [vmem:[#allocation17_spill] sm:$0xff] %v4564_v61  ;;  %614 = vperm.xlu1 %3960, %v4557_v59   ;;  %609 = vperm.xlu0 %3959, %v4560_v60   ;;  %v4581_v57 = vld [vmem:[%s4298_s25 + $0x228] sm:$0xff]  ;;  %v4584_v61 = vld [vmem:[%s4298_s25 + $0x220] sm:$0xff] }
  0x9e   : > { %7737 = vst [vmem:[#allocation22_spill] sm:$0xff] %v4581_v57  ;;  %7738 = vst [vmem:[#allocation23_spill] sm:$0xff] %v4584_v61 }
  0xa0   : > { %v4574_v63 = vpop.permute.xlu1 %304  ;;  %v4576_v0 = vpop.permute.xlu0 %294 }
  0xa1   : > { %7735 = vst [vmem:[#allocation20_spill] sm:$0xff] %v4574_v63  ;;  %7736 = vst [vmem:[#allocation21_spill] sm:$0xff] %v4576_v0  ;;  %624 = vperm.xlu1 %3960, %v4569_v62   ;;  %619 = vperm.xlu0 %3959, %v4572_v58   ;;  %v4593_v63 = vld [vmem:[%s4298_s25 + $0x238] sm:$0xff]  ;;  %v4596_v0 = vld [vmem:[%s4298_s25 + $0x230] sm:$0xff] }
  0xa2   : > { %7741 = vst [vmem:[#allocation26_spill] sm:$0xff] %v4593_v63  ;;  %7742 = vst [vmem:[#allocation27_spill] sm:$0xff] %v4596_v0 }
  0xa4   : > { %v4586_v59 = vpop.permute.xlu1 %314  ;;  %v4588_v60 = vpop.permute.xlu0 %309 }
  0xa5   : > { %7739 = vst [vmem:[#allocation24_spill] sm:$0xff] %v4586_v59  ;;  %7740 = vst [vmem:[#allocation25_spill] sm:$0xff] %v4588_v60  ;;  %634 = vperm.xlu1 %3960, %v4581_v57   ;;  %629 = vperm.xlu0 %3959, %v4584_v61   ;;  %v4605_v59 = vld [vmem:[%s4298_s25 + $0x248] sm:$0xff]  ;;  %v4608_v60 = vld [vmem:[%s4298_s25 + $0x240] sm:$0xff] }
  0xa6   : > { %7745 = vst [vmem:[#allocation30_spill] sm:$0xff] %v4605_v59  ;;  %7746 = vst [vmem:[#allocation31_spill] sm:$0xff] %v4608_v60 }
  0xa8   : > { %v4598_v62 = vpop.permute.xlu1 %324  ;;  %v4600_v58 = vpop.permute.xlu0 %319 }
  0xa9   : > { %7743 = vst [vmem:[#allocation28_spill] sm:$0xff] %v4598_v62  ;;  %7744 = vst [vmem:[#allocation29_spill] sm:$0xff] %v4600_v58  ;;  %644 = vperm.xlu1 %3960, %v4593_v63   ;;  %639 = vperm.xlu0 %3959, %v4596_v0   ;;  %v4617_v62 = vld [vmem:[%s4298_s25 + $0x258] sm:$0xff]  ;;  %v4620_v58 = vld [vmem:[%s4298_s25 + $0x250] sm:$0xff] }
  0xaa   : > { %7749 = vst [vmem:[#allocation34_spill] sm:$0xff] %v4617_v62  ;;  %7750 = vst [vmem:[#allocation35_spill] sm:$0xff] %v4620_v58 }
  0xac   : > { %v4610_v57 = vpop.permute.xlu1 %334  ;;  %v4612_v61 = vpop.permute.xlu0 %329 }
  0xad   : > { %7747 = vst [vmem:[#allocation32_spill] sm:$0xff] %v4610_v57  ;;  %7748 = vst [vmem:[#allocation33_spill] sm:$0xff] %v4612_v61  ;;  %654 = vperm.xlu1 %3960, %v4605_v59   ;;  %649 = vperm.xlu0 %3959, %v4608_v60   ;;  %v4629_v57 = vld [vmem:[%s4298_s25 + $0x268] sm:$0xff]  ;;  %v4632_v61 = vld [vmem:[%s4298_s25 + $0x260] sm:$0xff] }
  0xae   : > { %7753 = vst [vmem:[#allocation38_spill] sm:$0xff] %v4629_v57  ;;  %7754 = vst [vmem:[#allocation39_spill] sm:$0xff] %v4632_v61 }
  0xb0   : > { %v4622_v63 = vpop.permute.xlu1 %344  ;;  %v4624_v0 = vpop.permute.xlu0 %339 }
  0xb1   : > { %7751 = vst [vmem:[#allocation36_spill] sm:$0xff] %v4622_v63  ;;  %7752 = vst [vmem:[#allocation37_spill] sm:$0xff] %v4624_v0  ;;  %664 = vperm.xlu1 %3960, %v4617_v62   ;;  %659 = vperm.xlu0 %3959, %v4620_v58   ;;  %v4641_v63 = vld [vmem:[%s4298_s25 + $0x278] sm:$0xff]  ;;  %v4644_v0 = vld [vmem:[%s4298_s25 + $0x270] sm:$0xff] }
  0xb2   : > { %7757 = vst [vmem:[#allocation42_spill] sm:$0xff] %v4641_v63  ;;  %7758 = vst [vmem:[#allocation43_spill] sm:$0xff] %v4644_v0 }
  0xb4   : > { %v4634_v59 = vpop.permute.xlu1 %354  ;;  %v4636_v60 = vpop.permute.xlu0 %349 }
  0xb5   : > { %7755 = vst [vmem:[#allocation40_spill] sm:$0xff] %v4634_v59  ;;  %7756 = vst [vmem:[#allocation41_spill] sm:$0xff] %v4636_v60  ;;  %674 = vperm.xlu1 %3960, %v4629_v57   ;;  %669 = vperm.xlu0 %3959, %v4632_v61   ;;  %v4653_v59 = vld [vmem:[%s4298_s25 + $0x288] sm:$0xff]  ;;  %v4656_v60 = vld [vmem:[%s4298_s25 + $0x280] sm:$0xff] }
  0xb6   : > { %7761 = vst [vmem:[#allocation46_spill] sm:$0xff] %v4653_v59  ;;  %7762 = vst [vmem:[#allocation47_spill] sm:$0xff] %v4656_v60 }
  0xb8   : > { %v4646_v62 = vpop.permute.xlu1 %364  ;;  %v4648_v58 = vpop.permute.xlu0 %359 }
  0xb9   : > { %7759 = vst [vmem:[#allocation44_spill] sm:$0xff] %v4646_v62  ;;  %7760 = vst [vmem:[#allocation45_spill] sm:$0xff] %v4648_v58  ;;  %684 = vperm.xlu1 %3960, %v4641_v63   ;;  %679 = vperm.xlu0 %3959, %v4644_v0   ;;  %v4665_v62 = vld [vmem:[%s4298_s25 + $0x298] sm:$0xff]  ;;  %v4668_v58 = vld [vmem:[%s4298_s25 + $0x290] sm:$0xff] }
  0xba   : > { %7765 = vst [vmem:[#allocation50_spill] sm:$0xff] %v4665_v62  ;;  %7766 = vst [vmem:[#allocation51_spill] sm:$0xff] %v4668_v58 }
  0xbc   : > { %v4658_v57 = vpop.permute.xlu1 %374  ;;  %v4660_v61 = vpop.permute.xlu0 %369 }
  0xbd   : > { %7763 = vst [vmem:[#allocation48_spill] sm:$0xff] %v4658_v57  ;;  %7764 = vst [vmem:[#allocation49_spill] sm:$0xff] %v4660_v61  ;;  %694 = vperm.xlu1 %3960, %v4653_v59   ;;  %689 = vperm.xlu0 %3959, %v4656_v60   ;;  %v4677_v57 = vld [vmem:[%s4298_s25 + $0x2a8] sm:$0xff]  ;;  %v4680_v61 = vld [vmem:[%s4298_s25 + $0x2a0] sm:$0xff] }
  0xbe   : > { %7769 = vst [vmem:[#allocation54_spill] sm:$0xff] %v4677_v57  ;;  %7770 = vst [vmem:[#allocation55_spill] sm:$0xff] %v4680_v61 }
  0xc0   : > { %v4670_v63 = vpop.permute.xlu1 %384  ;;  %v4672_v0 = vpop.permute.xlu0 %379 }
  0xc1   : > { %7767 = vst [vmem:[#allocation52_spill] sm:$0xff] %v4670_v63  ;;  %7768 = vst [vmem:[#allocation53_spill] sm:$0xff] %v4672_v0  ;;  %704 = vperm.xlu1 %3960, %v4665_v62   ;;  %699 = vperm.xlu0 %3959, %v4668_v58   ;;  %v4689_v63 = vld [vmem:[%s4298_s25 + $0x2b8] sm:$0xff]  ;;  %v4692_v0 = vld [vmem:[%s4298_s25 + $0x2b0] sm:$0xff] }
  0xc2   : > { %7773 = vst [vmem:[#allocation58_spill] sm:$0xff] %v4689_v63  ;;  %7774 = vst [vmem:[#allocation59_spill] sm:$0xff] %v4692_v0 }
  0xc4   : > { %v4682_v59 = vpop.permute.xlu1 %394  ;;  %v4684_v60 = vpop.permute.xlu0 %389 }
  0xc5   : > { %7771 = vst [vmem:[#allocation56_spill] sm:$0xff] %v4682_v59  ;;  %7772 = vst [vmem:[#allocation57_spill] sm:$0xff] %v4684_v60  ;;  %714 = vperm.xlu1 %3960, %v4677_v57   ;;  %709 = vperm.xlu0 %3959, %v4680_v61   ;;  %v4701_v59 = vld [vmem:[%s4298_s25 + $0x2c8] sm:$0xff]  ;;  %v4704_v60 = vld [vmem:[%s4298_s25 + $0x2c0] sm:$0xff] }
  0xc6   : > { %7777 = vst [vmem:[#allocation62_spill] sm:$0xff] %v4701_v59  ;;  %7778 = vst [vmem:[#allocation63_spill] sm:$0xff] %v4704_v60 }
  0xc8   : > { %v4694_v62 = vpop.permute.xlu1 %404  ;;  %v4696_v58 = vpop.permute.xlu0 %399 }
  0xc9   : > { %7775 = vst [vmem:[#allocation60_spill] sm:$0xff] %v4694_v62  ;;  %7776 = vst [vmem:[#allocation61_spill] sm:$0xff] %v4696_v58  ;;  %724 = vperm.xlu1 %3960, %v4689_v63   ;;  %719 = vperm.xlu0 %3959, %v4692_v0   ;;  %v4713_v62 = vld [vmem:[%s4298_s25 + $0x2d8] sm:$0xff]  ;;  %v4716_v58 = vld [vmem:[%s4298_s25 + $0x2d0] sm:$0xff] }
  0xca   : > { %7781 = vst [vmem:[#allocation66_spill] sm:$0xff] %v4713_v62  ;;  %7782 = vst [vmem:[#allocation67_spill] sm:$0xff] %v4716_v58 }
  0xcc   : > { %v4706_v57 = vpop.permute.xlu1 %414  ;;  %v4708_v61 = vpop.permute.xlu0 %409 }
  0xcd   : > { %7779 = vst [vmem:[#allocation64_spill] sm:$0xff] %v4706_v57  ;;  %7780 = vst [vmem:[#allocation65_spill] sm:$0xff] %v4708_v61  ;;  %734 = vperm.xlu1 %3960, %v4701_v59   ;;  %729 = vperm.xlu0 %3959, %v4704_v60   ;;  %v4725_v57 = vld [vmem:[%s4298_s25 + $0x2e8] sm:$0xff]  ;;  %v4728_v61 = vld [vmem:[%s4298_s25 + $0x2e0] sm:$0xff] }
  0xce   : > { %7785 = vst [vmem:[#allocation70_spill] sm:$0xff] %v4725_v57  ;;  %7786 = vst [vmem:[#allocation71_spill] sm:$0xff] %v4728_v61 }
  0xd0   : > { %v4718_v63 = vpop.permute.xlu1 %424  ;;  %v4720_v0 = vpop.permute.xlu0 %419 }
  0xd1   : > { %7783 = vst [vmem:[#allocation68_spill] sm:$0xff] %v4718_v63  ;;  %7784 = vst [vmem:[#allocation69_spill] sm:$0xff] %v4720_v0  ;;  %744 = vperm.xlu1 %3960, %v4713_v62   ;;  %739 = vperm.xlu0 %3959, %v4716_v58   ;;  %v4737_v63 = vld [vmem:[%s4298_s25 + $0x2f8] sm:$0xff]  ;;  %v4740_v0 = vld [vmem:[%s4298_s25 + $0x2f0] sm:$0xff] }
  0xd2   : > { %7789 = vst [vmem:[#allocation74_spill] sm:$0xff] %v4737_v63  ;;  %7790 = vst [vmem:[#allocation75_spill] sm:$0xff] %v4740_v0 }
  0xd4   : > { %v4730_v59 = vpop.permute.xlu1 %434  ;;  %v4732_v60 = vpop.permute.xlu0 %429 }
  0xd5   : > { %7787 = vst [vmem:[#allocation72_spill] sm:$0xff] %v4730_v59  ;;  %7788 = vst [vmem:[#allocation73_spill] sm:$0xff] %v4732_v60  ;;  %754 = vperm.xlu1 %3960, %v4725_v57   ;;  %749 = vperm.xlu0 %3959, %v4728_v61   ;;  %v4749_v59 = vld [vmem:[%s4298_s25 + $0x308] sm:$0xff]  ;;  %v4752_v60 = vld [vmem:[%s4298_s25 + $0x300] sm:$0xff] }
  0xd6   : > { %7793 = vst [vmem:[#allocation78_spill] sm:$0xff] %v4749_v59  ;;  %7794 = vst [vmem:[#allocation79_spill] sm:$0xff] %v4752_v60 }
  0xd8   : > { %v4742_v62 = vpop.permute.xlu1 %444  ;;  %v4744_v58 = vpop.permute.xlu0 %439 }
  0xd9   : > { %7791 = vst [vmem:[#allocation76_spill] sm:$0xff] %v4742_v62  ;;  %7792 = vst [vmem:[#allocation77_spill] sm:$0xff] %v4744_v58  ;;  %764 = vperm.xlu1 %3960, %v4737_v63   ;;  %759 = vperm.xlu0 %3959, %v4740_v0   ;;  %v4761_v62 = vld [vmem:[%s4298_s25 + $0x318] sm:$0xff]  ;;  %v4764_v58 = vld [vmem:[%s4298_s25 + $0x310] sm:$0xff] }
  0xda   : > { %7797 = vst [vmem:[#allocation82_spill] sm:$0xff] %v4761_v62  ;;  %7798 = vst [vmem:[#allocation83_spill] sm:$0xff] %v4764_v58 }
  0xdc   : > { %v4754_v57 = vpop.permute.xlu1 %454  ;;  %v4756_v61 = vpop.permute.xlu0 %449 }
  0xdd   : > { %7795 = vst [vmem:[#allocation80_spill] sm:$0xff] %v4754_v57  ;;  %7796 = vst [vmem:[#allocation81_spill] sm:$0xff] %v4756_v61  ;;  %774 = vperm.xlu1 %3960, %v4749_v59   ;;  %769 = vperm.xlu0 %3959, %v4752_v60   ;;  %v4773_v57 = vld [vmem:[%s4298_s25 + $0x328] sm:$0xff]  ;;  %v4776_v61 = vld [vmem:[%s4298_s25 + $0x320] sm:$0xff] }
  0xde   : > { %7801 = vst [vmem:[#allocation86_spill] sm:$0xff] %v4773_v57  ;;  %7802 = vst [vmem:[#allocation87_spill] sm:$0xff] %v4776_v61 }
  0xe0   : > { %v4766_v63 = vpop.permute.xlu1 %464  ;;  %v4768_v0 = vpop.permute.xlu0 %459 }
  0xe1   : > { %7799 = vst [vmem:[#allocation84_spill] sm:$0xff] %v4766_v63  ;;  %7800 = vst [vmem:[#allocation85_spill] sm:$0xff] %v4768_v0  ;;  %784 = vperm.xlu1 %3960, %v4761_v62   ;;  %779 = vperm.xlu0 %3959, %v4764_v58   ;;  %v4785_v63 = vld [vmem:[%s4298_s25 + $0x338] sm:$0xff]  ;;  %v4788_v0 = vld [vmem:[%s4298_s25 + $0x330] sm:$0xff] }
  0xe2   : > { %7805 = vst [vmem:[#allocation90_spill] sm:$0xff] %v4785_v63  ;;  %7806 = vst [vmem:[#allocation91_spill] sm:$0xff] %v4788_v0 }
  0xe4   : > { %v4778_v59 = vpop.permute.xlu1 %474  ;;  %v4780_v60 = vpop.permute.xlu0 %469 }
  0xe5   : > { %7803 = vst [vmem:[#allocation88_spill] sm:$0xff] %v4778_v59  ;;  %7804 = vst [vmem:[#allocation89_spill] sm:$0xff] %v4780_v60  ;;  %794 = vperm.xlu1 %3960, %v4773_v57   ;;  %789 = vperm.xlu0 %3959, %v4776_v61   ;;  %v4797_v59 = vld [vmem:[%s4298_s25 + $0x348] sm:$0xff]  ;;  %v4800_v60 = vld [vmem:[%s4298_s25 + $0x340] sm:$0xff] }
  0xe6   : > { %7809 = vst [vmem:[#allocation94_spill] sm:$0xff] %v4797_v59  ;;  %7810 = vst [vmem:[#allocation95_spill] sm:$0xff] %v4800_v60 }
  0xe8   : > { %v4790_v62 = vpop.permute.xlu1 %484  ;;  %v4792_v58 = vpop.permute.xlu0 %479 }
  0xe9   : > { %7807 = vst [vmem:[#allocation92_spill] sm:$0xff] %v4790_v62  ;;  %7808 = vst [vmem:[#allocation93_spill] sm:$0xff] %v4792_v58  ;;  %804 = vperm.xlu1 %3960, %v4785_v63   ;;  %799 = vperm.xlu0 %3959, %v4788_v0   ;;  %v4809_v62 = vld [vmem:[%s4298_s25 + $0x358] sm:$0xff]  ;;  %v4812_v58 = vld [vmem:[%s4298_s25 + $0x350] sm:$0xff] }
  0xea   : > { %7813 = vst [vmem:[#allocation98_spill] sm:$0xff] %v4809_v62  ;;  %7814 = vst [vmem:[#allocation99_spill] sm:$0xff] %v4812_v58 }
  0xec   : > { %v4802_v57 = vpop.permute.xlu1 %494  ;;  %v4804_v61 = vpop.permute.xlu0 %489 }
  0xed   : > { %7811 = vst [vmem:[#allocation96_spill] sm:$0xff] %v4802_v57  ;;  %7812 = vst [vmem:[#allocation97_spill] sm:$0xff] %v4804_v61  ;;  %814 = vperm.xlu1 %3960, %v4797_v59   ;;  %809 = vperm.xlu0 %3959, %v4800_v60   ;;  %v4821_v57 = vld [vmem:[%s4298_s25 + $0x368] sm:$0xff]  ;;  %v4824_v61 = vld [vmem:[%s4298_s25 + $0x360] sm:$0xff] }
  0xee   : > { %7817 = vst [vmem:[#allocation102_spill] sm:$0xff] %v4821_v57  ;;  %7818 = vst [vmem:[#allocation103_spill] sm:$0xff] %v4824_v61 }
  0xf0   : > { %v4814_v63 = vpop.permute.xlu1 %504  ;;  %v4816_v0 = vpop.permute.xlu0 %499 }
  0xf1   : > { %7815 = vst [vmem:[#allocation100_spill] sm:$0xff] %v4814_v63  ;;  %7816 = vst [vmem:[#allocation101_spill] sm:$0xff] %v4816_v0  ;;  %824 = vperm.xlu1 %3960, %v4809_v62   ;;  %819 = vperm.xlu0 %3959, %v4812_v58   ;;  %v4833_v63 = vld [vmem:[%s4298_s25 + $0x378] sm:$0xff]  ;;  %v4836_v0 = vld [vmem:[%s4298_s25 + $0x370] sm:$0xff] }
  0xf2   : > { %7821 = vst [vmem:[#allocation106_spill] sm:$0xff] %v4833_v63  ;;  %7822 = vst [vmem:[#allocation107_spill] sm:$0xff] %v4836_v0 }
  0xf4   : > { %v4826_v59 = vpop.permute.xlu1 %514  ;;  %v4828_v60 = vpop.permute.xlu0 %509 }
  0xf5   : > { %7819 = vst [vmem:[#allocation104_spill] sm:$0xff] %v4826_v59  ;;  %7820 = vst [vmem:[#allocation105_spill] sm:$0xff] %v4828_v60  ;;  %834 = vperm.xlu1 %3960, %v4821_v57   ;;  %829 = vperm.xlu0 %3959, %v4824_v61   ;;  %v4845_v59 = vld [vmem:[%s4298_s25 + $0x388] sm:$0xff]  ;;  %v4848_v60 = vld [vmem:[%s4298_s25 + $0x380] sm:$0xff] }
  0xf6   : > { %7825 = vst [vmem:[#allocation110_spill] sm:$0xff] %v4845_v59  ;;  %7826 = vst [vmem:[#allocation111_spill] sm:$0xff] %v4848_v60 }
  0xf8   : > { %v4838_v62 = vpop.permute.xlu1 %524  ;;  %v4840_v58 = vpop.permute.xlu0 %519 }
  0xf9   : > { %7823 = vst [vmem:[#allocation108_spill] sm:$0xff] %v4838_v62  ;;  %7824 = vst [vmem:[#allocation109_spill] sm:$0xff] %v4840_v58  ;;  %844 = vperm.xlu1 %3960, %v4833_v63   ;;  %839 = vperm.xlu0 %3959, %v4836_v0   ;;  %v4857_v62 = vld [vmem:[%s4298_s25 + $0x398] sm:$0xff]  ;;  %v4860_v58 = vld [vmem:[%s4298_s25 + $0x390] sm:$0xff] }
  0xfa   : > { %7829 = vst [vmem:[#allocation114_spill] sm:$0xff] %v4857_v62  ;;  %7830 = vst [vmem:[#allocation115_spill] sm:$0xff] %v4860_v58 }
  0xfc   : > { %v4850_v57 = vpop.permute.xlu1 %534  ;;  %v4852_v61 = vpop.permute.xlu0 %529 }
  0xfd   : > { %7827 = vst [vmem:[#allocation112_spill] sm:$0xff] %v4850_v57  ;;  %7828 = vst [vmem:[#allocation113_spill] sm:$0xff] %v4852_v61  ;;  %854 = vperm.xlu1 %3960, %v4845_v59   ;;  %849 = vperm.xlu0 %3959, %v4848_v60   ;;  %v4869_v57 = vld [vmem:[%s4298_s25 + $0x3a8] sm:$0xff]  ;;  %v4872_v61 = vld [vmem:[%s4298_s25 + $0x3a0] sm:$0xff] }
  0xfe   : > { %7833 = vst [vmem:[#allocation118_spill] sm:$0xff] %v4869_v57  ;;  %7834 = vst [vmem:[#allocation119_spill] sm:$0xff] %v4872_v61 }
 0x100   : > { %v4862_v63 = vpop.permute.xlu1 %544  ;;  %v4864_v0 = vpop.permute.xlu0 %539 }
 0x101   : > { %7831 = vst [vmem:[#allocation116_spill] sm:$0xff] %v4862_v63  ;;  %7832 = vst [vmem:[#allocation117_spill] sm:$0xff] %v4864_v0  ;;  %864 = vperm.xlu1 %3960, %v4857_v62   ;;  %859 = vperm.xlu0 %3959, %v4860_v58   ;;  %v4881_v63 = vld [vmem:[%s4298_s25 + $0x3b8] sm:$0xff]  ;;  %v4884_v0 = vld [vmem:[%s4298_s25 + $0x3b0] sm:$0xff] }
 0x102   : > { %7837 = vst [vmem:[#allocation122_spill] sm:$0xff] %v4881_v63  ;;  %7838 = vst [vmem:[#allocation123_spill] sm:$0xff] %v4884_v0 }
 0x104   : > { %v4874_v59 = vpop.permute.xlu1 %554  ;;  %v4876_v60 = vpop.permute.xlu0 %549 }
 0x105   : > { %7835 = vst [vmem:[#allocation120_spill] sm:$0xff] %v4874_v59  ;;  %7836 = vst [vmem:[#allocation121_spill] sm:$0xff] %v4876_v60  ;;  %874 = vperm.xlu1 %3960, %v4869_v57   ;;  %869 = vperm.xlu0 %3959, %v4872_v61   ;;  %v4893_v59 = vld [vmem:[%s4298_s25 + $0x3c8] sm:$0xff]  ;;  %v4896_v60 = vld [vmem:[%s4298_s25 + $0x3c0] sm:$0xff] }
 0x106   : > { %7841 = vst [vmem:[#allocation126_spill] sm:$0xff] %v4893_v59  ;;  %7842 = vst [vmem:[#allocation127_spill] sm:$0xff] %v4896_v60 }
 0x108   : > { %v4886_v62 = vpop.permute.xlu1 %564  ;;  %v4888_v58 = vpop.permute.xlu0 %559 }
 0x109   : > { %7839 = vst [vmem:[#allocation124_spill] sm:$0xff] %v4886_v62  ;;  %7840 = vst [vmem:[#allocation125_spill] sm:$0xff] %v4888_v58  ;;  %884 = vperm.xlu1 %3960, %v4881_v63   ;;  %879 = vperm.xlu0 %3959, %v4884_v0   ;;  %v4905_v62 = vld [vmem:[%s4298_s25 + $0x3d8] sm:$0xff]  ;;  %v4908_v58 = vld [vmem:[%s4298_s25 + $0x3d0] sm:$0xff] }
 0x10a   : > { %7845 = vst [vmem:[#allocation130_spill] sm:$0xff] %v4905_v62  ;;  %7846 = vst [vmem:[#allocation131_spill] sm:$0xff] %v4908_v58 }
 0x10c   : > { %v4898_v57 = vpop.permute.xlu1 %574  ;;  %v4900_v61 = vpop.permute.xlu0 %569 }
 0x10d   : > { %7843 = vst [vmem:[#allocation128_spill] sm:$0xff] %v4898_v57  ;;  %7844 = vst [vmem:[#allocation129_spill] sm:$0xff] %v4900_v61  ;;  %894 = vperm.xlu1 %3960, %v4893_v59   ;;  %889 = vperm.xlu0 %3959, %v4896_v60   ;;  %v4917_v57 = vld [vmem:[%s4298_s25 + $0x3e8] sm:$0xff]  ;;  %v4920_v61 = vld [vmem:[%s4298_s25 + $0x3e0] sm:$0xff] }
 0x10e   : > { %7849 = vst [vmem:[#allocation134_spill] sm:$0xff] %v4917_v57  ;;  %7850 = vst [vmem:[#allocation135_spill] sm:$0xff] %v4920_v61 }
 0x110   : > { %v4910_v63 = vpop.permute.xlu1 %584  ;;  %v4912_v0 = vpop.permute.xlu0 %579 }
 0x111   : > { %7847 = vst [vmem:[#allocation132_spill] sm:$0xff] %v4910_v63  ;;  %7848 = vst [vmem:[#allocation133_spill] sm:$0xff] %v4912_v0  ;;  %904 = vperm.xlu1 %3960, %v4905_v62   ;;  %899 = vperm.xlu0 %3959, %v4908_v58   ;;  %v4929_v63 = vld [vmem:[%s4298_s25 + $0x3f8] sm:$0xff]  ;;  %v4932_v0 = vld [vmem:[%s4298_s25 + $0x3f0] sm:$0xff] }
 0x112   : > { %7853 = vst [vmem:[#allocation138_spill] sm:$0xff] %v4929_v63  ;;  %7854 = vst [vmem:[#allocation139_spill] sm:$0xff] %v4932_v0 }
 0x114   : > { %v4922_v59 = vpop.permute.xlu1 %594  ;;  %v4924_v60 = vpop.permute.xlu0 %589 }
 0x115   : > { %7851 = vst [vmem:[#allocation136_spill] sm:$0xff] %v4922_v59  ;;  %7852 = vst [vmem:[#allocation137_spill] sm:$0xff] %v4924_v60  ;;  %914 = vperm.xlu1 %3960, %v4917_v57   ;;  %909 = vperm.xlu0 %3959, %v4920_v61   ;;  %v4941_v59 = vld [vmem:[%s4298_s25 + $0x408] sm:$0xff]  ;;  %v4944_v60 = vld [vmem:[%s4298_s25 + $0x400] sm:$0xff] }
 0x116   : > { %7857 = vst [vmem:[#allocation142_spill] sm:$0xff] %v4941_v59  ;;  %7858 = vst [vmem:[#allocation143_spill] sm:$0xff] %v4944_v60 }
 0x118   : > { %v4934_v62 = vpop.permute.xlu1 %604  ;;  %v4936_v58 = vpop.permute.xlu0 %599 }
 0x119   : > { %7855 = vst [vmem:[#allocation140_spill] sm:$0xff] %v4934_v62  ;;  %7856 = vst [vmem:[#allocation141_spill] sm:$0xff] %v4936_v58  ;;  %924 = vperm.xlu1 %3960, %v4929_v63   ;;  %919 = vperm.xlu0 %3959, %v4932_v0   ;;  %v4953_v62 = vld [vmem:[%s4298_s25 + $0x418] sm:$0xff]  ;;  %v4956_v58 = vld [vmem:[%s4298_s25 + $0x410] sm:$0xff] }
 0x11a   : > { %7861 = vst [vmem:[#allocation146_spill] sm:$0xff] %v4953_v62  ;;  %7862 = vst [vmem:[#allocation147_spill] sm:$0xff] %v4956_v58 }
 0x11c   : > { %v4946_v57 = vpop.permute.xlu1 %614  ;;  %v4948_v61 = vpop.permute.xlu0 %609 }
 0x11d   : > { %7859 = vst [vmem:[#allocation144_spill] sm:$0xff] %v4946_v57  ;;  %7860 = vst [vmem:[#allocation145_spill] sm:$0xff] %v4948_v61  ;;  %934 = vperm.xlu1 %3960, %v4941_v59   ;;  %929 = vperm.xlu0 %3959, %v4944_v60   ;;  %v4965_v57 = vld [vmem:[%s4298_s25 + $0x428] sm:$0xff]  ;;  %v4968_v61 = vld [vmem:[%s4298_s25 + $0x420] sm:$0xff] }
 0x11e   : > { %7865 = vst [vmem:[#allocation150_spill] sm:$0xff] %v4965_v57  ;;  %7866 = vst [vmem:[#allocation151_spill] sm:$0xff] %v4968_v61 }
 0x120   : > { %v4958_v63 = vpop.permute.xlu1 %624  ;;  %v4960_v0 = vpop.permute.xlu0 %619 }
 0x121   : > { %7863 = vst [vmem:[#allocation148_spill] sm:$0xff] %v4958_v63  ;;  %7864 = vst [vmem:[#allocation149_spill] sm:$0xff] %v4960_v0  ;;  %944 = vperm.xlu1 %3960, %v4953_v62   ;;  %939 = vperm.xlu0 %3959, %v4956_v58   ;;  %v4977_v63 = vld [vmem:[%s4298_s25 + $0x438] sm:$0xff]  ;;  %v4980_v0 = vld [vmem:[%s4298_s25 + $0x430] sm:$0xff] }
 0x122   : > { %7869 = vst [vmem:[#allocation154_spill] sm:$0xff] %v4977_v63  ;;  %7870 = vst [vmem:[#allocation155_spill] sm:$0xff] %v4980_v0 }
 0x124   : > { %v4970_v59 = vpop.permute.xlu1 %634  ;;  %v4972_v60 = vpop.permute.xlu0 %629 }
 0x125   : > { %7867 = vst [vmem:[#allocation152_spill] sm:$0xff] %v4970_v59  ;;  %7868 = vst [vmem:[#allocation153_spill] sm:$0xff] %v4972_v60  ;;  %954 = vperm.xlu1 %3960, %v4965_v57   ;;  %949 = vperm.xlu0 %3959, %v4968_v61   ;;  %v4989_v59 = vld [vmem:[%s4298_s25 + $0x448] sm:$0xff]  ;;  %v4992_v60 = vld [vmem:[%s4298_s25 + $0x440] sm:$0xff] }
 0x126   : > { %7873 = vst [vmem:[#allocation158_spill] sm:$0xff] %v4989_v59  ;;  %7874 = vst [vmem:[#allocation159_spill] sm:$0xff] %v4992_v60 }
 0x128   : > { %v4982_v62 = vpop.permute.xlu1 %644  ;;  %v4984_v58 = vpop.permute.xlu0 %639 }
 0x129   : > { %7871 = vst [vmem:[#allocation156_spill] sm:$0xff] %v4982_v62  ;;  %7872 = vst [vmem:[#allocation157_spill] sm:$0xff] %v4984_v58  ;;  %964 = vperm.xlu1 %3960, %v4977_v63   ;;  %959 = vperm.xlu0 %3959, %v4980_v0   ;;  %v5001_v62 = vld [vmem:[%s4298_s25 + $0x458] sm:$0xff]  ;;  %v5013_v0 = vld [vmem:[%s4298_s25 + $0x460] sm:$0xff] }
 0x12c   : > { %v4994_v57 = vpop.permute.xlu1 %654  ;;  %v4996_v61 = vpop.permute.xlu0 %649 }
 0x12d   : > { %7875 = vst [vmem:[#allocation160_spill] sm:$0xff] %v4994_v57  ;;  %7876 = vst [vmem:[#allocation161_spill] sm:$0xff] %v4996_v61  ;;  %974 = vperm.xlu1 %3960, %v4989_v59   ;;  %969 = vperm.xlu0 %3959, %v4992_v60   ;;  %v4225_v59 = vmov 1  }
 0x130   : > { %v5006_v58 = vpop.permute.xlu1 %664  ;;  %v5008_v63 = vpop.permute.xlu0 %659 }
 0x131   : > { %7877 = vst [vmem:[#allocation162_spill] sm:$0xff] %v5006_v58  ;;  %7878 = vst [vmem:[#allocation163_spill] sm:$0xff] %v5008_v63  ;;  %984 = vperm.xlu1 %3960, %v5001_v62   ;;  %979 = vperm.xlu0 %3959, %v5004_v55  }
 0x134   : > { %v5015_v57 = vpop.permute.xlu1 %674  ;;  %v5017_v61 = vpop.permute.xlu0 %669 }
 0x135   : > { %7879 = vst [vmem:[#allocation164_spill] sm:$0xff] %v5015_v57  ;;  %7880 = vst [vmem:[#allocation165_spill] sm:$0xff] %v5017_v61  ;;  %3961 = vset.pattern.permute.xlu1 %v4225_v59  ;;  %989 = vperm.xlu0 %3959, %v5013_v0  }
 0x136   : > { %1138 = vperm.xlu1 %3961, %v4304_v2  }
 0x138   : > { %v5021_v60 = vpop.permute.xlu1 %684  ;;  %v5023_v58 = vpop.permute.xlu0 %679 }
 0x139   : > { %7881 = vst [vmem:[#allocation166_spill] sm:$0xff] %v5021_v60  ;;  %7882 = vst [vmem:[#allocation167_spill] sm:$0xff] %v5023_v58  ;;  %3962 = vset.pattern.permute.xlu0 %v4225_v59  ;;  %v8062_v58 = vld [vmem:[#allocation123_spill] sm:$0xff] }
 0x13a   : > { %1146 = vperm.xlu1 %3961, %v4301_v1   ;;  %1142 = vperm.xlu0 %3962, %v4312_v4  }
 0x13c   : > { %v5027_v63 = vpop.permute.xlu1 %694  ;;  %v5029_v57 = vpop.permute.xlu0 %689 }
 0x13d   : > { %7883 = vst [vmem:[#allocation168_spill] sm:$0xff] %v5027_v63  ;;  %7884 = vst [vmem:[#allocation169_spill] sm:$0xff] %v5029_v57 }
 0x13e   : > { %1150 = vperm.xlu1 %3961, %v4309_v3   ;;  %1154 = vperm.xlu0 %3962, %v4320_v6  }
 0x140   : > { %v5033_v61 = vpop.permute.xlu1 %704  ;;  %v5035_v2 = vpop.permute.xlu0 %699 }
 0x141   : > { %7885 = vst [vmem:[#allocation170_spill] sm:$0xff] %v5033_v61  ;;  %7886 = vst [vmem:[#allocation171_spill] sm:$0xff] %v5035_v2  ;;  %v8058_v2 = vld [vmem:[#allocation119_spill] sm:$0xff] }
 0x142   : > { %1158 = vperm.xlu1 %3961, %v4317_v5   ;;  %1162 = vperm.xlu0 %3962, %v4328_v8  }
 0x144   : > { %v5039_v59 = vpop.permute.xlu1 %714  ;;  %v5041_v1 = vpop.permute.xlu0 %709 }
 0x145   : > { %7887 = vst [vmem:[#allocation172_spill] sm:$0xff] %v5039_v59  ;;  %7888 = vst [vmem:[#allocation173_spill] sm:$0xff] %v5041_v1  ;;  %v8054_v1 = vld [vmem:[#allocation115_spill] sm:$0xff] }
 0x146   : > { %1166 = vperm.xlu1 %3961, %v4325_v7   ;;  %1170 = vperm.xlu0 %3962, %v4336_v10  }
 0x148   : > { %v5045_v4 = vpop.permute.xlu1 %724  ;;  %v5047_v3 = vpop.permute.xlu0 %719 }
 0x149   : > { %7889 = vst [vmem:[#allocation174_spill] sm:$0xff] %v5045_v4  ;;  %7890 = vst [vmem:[#allocation175_spill] sm:$0xff] %v5047_v3  ;;  %v8050_v3 = vld [vmem:[#allocation111_spill] sm:$0xff] }
 0x14a   : > { %1174 = vperm.xlu1 %3961, %v4333_v9   ;;  %1178 = vperm.xlu0 %3962, %v4344_v12  }
 0x14c   : > { %v5051_v6 = vpop.permute.xlu1 %734  ;;  %v5053_v5 = vpop.permute.xlu0 %729 }
 0x14d   : > { %7891 = vst [vmem:[#allocation176_spill] sm:$0xff] %v5051_v6  ;;  %7892 = vst [vmem:[#allocation177_spill] sm:$0xff] %v5053_v5  ;;  %v8046_v5 = vld [vmem:[#allocation107_spill] sm:$0xff] }
 0x14e   : > { %1182 = vperm.xlu1 %3961, %v4341_v11   ;;  %1186 = vperm.xlu0 %3962, %v4352_v14  }
 0x150   : > { %v5057_v8 = vpop.permute.xlu1 %744  ;;  %v5059_v7 = vpop.permute.xlu0 %739 }
 0x151   : > { %7893 = vst [vmem:[#allocation178_spill] sm:$0xff] %v5057_v8  ;;  %7894 = vst [vmem:[#allocation179_spill] sm:$0xff] %v5059_v7  ;;  %v8042_v7 = vld [vmem:[#allocation103_spill] sm:$0xff] }
 0x152   : > { %1190 = vperm.xlu1 %3961, %v4349_v13   ;;  %1194 = vperm.xlu0 %3962, %v4360_v16  }
 0x154   : > { %v5063_v10 = vpop.permute.xlu1 %754  ;;  %v5065_v9 = vpop.permute.xlu0 %749 }
 0x155   : > { %7895 = vst [vmem:[#allocation180_spill] sm:$0xff] %v5063_v10  ;;  %7896 = vst [vmem:[#allocation181_spill] sm:$0xff] %v5065_v9  ;;  %v8038_v9 = vld [vmem:[#allocation99_spill] sm:$0xff] }
 0x156   : > { %1198 = vperm.xlu1 %3961, %v4357_v15   ;;  %1202 = vperm.xlu0 %3962, %v4368_v18  }
 0x158   : > { %v5069_v12 = vpop.permute.xlu1 %764  ;;  %v5071_v11 = vpop.permute.xlu0 %759 }
 0x159   : > { %7897 = vst [vmem:[#allocation182_spill] sm:$0xff] %v5069_v12  ;;  %7898 = vst [vmem:[#allocation183_spill] sm:$0xff] %v5071_v11  ;;  %v8034_v11 = vld [vmem:[#allocation95_spill] sm:$0xff] }
 0x15a   : > { %1206 = vperm.xlu1 %3961, %v4365_v17   ;;  %1210 = vperm.xlu0 %3962, %v4376_v20  }
 0x15c   : > { %v5075_v14 = vpop.permute.xlu1 %774  ;;  %v5077_v13 = vpop.permute.xlu0 %769 }
 0x15d   : > { %7899 = vst [vmem:[#allocation184_spill] sm:$0xff] %v5075_v14  ;;  %7900 = vst [vmem:[#allocation185_spill] sm:$0xff] %v5077_v13  ;;  %v8030_v13 = vld [vmem:[#allocation91_spill] sm:$0xff] }
 0x15e   : > { %1214 = vperm.xlu1 %3961, %v4373_v19   ;;  %1218 = vperm.xlu0 %3962, %v4384_v22  }
 0x160   : > { %v5081_v16 = vpop.permute.xlu1 %784  ;;  %v5083_v15 = vpop.permute.xlu0 %779 }
 0x161   : > { %7901 = vst [vmem:[#allocation186_spill] sm:$0xff] %v5081_v16  ;;  %7902 = vst [vmem:[#allocation187_spill] sm:$0xff] %v5083_v15  ;;  %v8026_v15 = vld [vmem:[#allocation87_spill] sm:$0xff] }
 0x162   : > { %1222 = vperm.xlu1 %3961, %v4381_v21   ;;  %1226 = vperm.xlu0 %3962, %v4392_v24  }
 0x164   : > { %v5087_v18 = vpop.permute.xlu1 %794  ;;  %v5089_v17 = vpop.permute.xlu0 %789 }
 0x165   : > { %7903 = vst [vmem:[#allocation188_spill] sm:$0xff] %v5087_v18  ;;  %7904 = vst [vmem:[#allocation189_spill] sm:$0xff] %v5089_v17  ;;  %v8022_v17 = vld [vmem:[#allocation83_spill] sm:$0xff] }
 0x166   : > { %1230 = vperm.xlu1 %3961, %v4389_v23   ;;  %1234 = vperm.xlu0 %3962, %v4400_v26  }
 0x168   : > { %v5093_v20 = vpop.permute.xlu1 %804  ;;  %v5095_v19 = vpop.permute.xlu0 %799 }
 0x169   : > { %7905 = vst [vmem:[#allocation190_spill] sm:$0xff] %v5093_v20  ;;  %7906 = vst [vmem:[#allocation191_spill] sm:$0xff] %v5095_v19  ;;  %v8018_v19 = vld [vmem:[#allocation79_spill] sm:$0xff] }
 0x16a   : > { %1238 = vperm.xlu1 %3961, %v4397_v25   ;;  %1242 = vperm.xlu0 %3962, %v4408_v28  }
 0x16c   : > { %v5099_v22 = vpop.permute.xlu1 %814  ;;  %v5101_v21 = vpop.permute.xlu0 %809 }
 0x16d   : > { %7907 = vst [vmem:[#allocation192_spill] sm:$0xff] %v5099_v22  ;;  %7908 = vst [vmem:[#allocation193_spill] sm:$0xff] %v5101_v21  ;;  %v8014_v21 = vld [vmem:[#allocation75_spill] sm:$0xff] }
 0x16e   : > { %1246 = vperm.xlu1 %3961, %v4405_v27   ;;  %1250 = vperm.xlu0 %3962, %v4416_v30  }
 0x170   : > { %v5105_v24 = vpop.permute.xlu1 %824  ;;  %v5107_v23 = vpop.permute.xlu0 %819 }
 0x171   : > { %7909 = vst [vmem:[#allocation194_spill] sm:$0xff] %v5105_v24  ;;  %7910 = vst [vmem:[#allocation195_spill] sm:$0xff] %v5107_v23  ;;  %v8010_v23 = vld [vmem:[#allocation71_spill] sm:$0xff] }
 0x172   : > { %1254 = vperm.xlu1 %3961, %v4413_v29   ;;  %1258 = vperm.xlu0 %3962, %v4424_v32  }
 0x174   : > { %v5111_v26 = vpop.permute.xlu1 %834  ;;  %v5113_v25 = vpop.permute.xlu0 %829 }
 0x175   : > { %7911 = vst [vmem:[#allocation196_spill] sm:$0xff] %v5111_v26  ;;  %7912 = vst [vmem:[#allocation197_spill] sm:$0xff] %v5113_v25  ;;  %v8006_v25 = vld [vmem:[#allocation67_spill] sm:$0xff] }
 0x176   : > { %1262 = vperm.xlu1 %3961, %v4421_v31   ;;  %1266 = vperm.xlu0 %3962, %v4432_v34  }
 0x178   : > { %v5117_v28 = vpop.permute.xlu1 %844  ;;  %v5119_v27 = vpop.permute.xlu0 %839 }
 0x179   : > { %7913 = vst [vmem:[#allocation198_spill] sm:$0xff] %v5117_v28  ;;  %7914 = vst [vmem:[#allocation199_spill] sm:$0xff] %v5119_v27  ;;  %v8002_v27 = vld [vmem:[#allocation63_spill] sm:$0xff] }
 0x17a   : > { %1270 = vperm.xlu1 %3961, %v4429_v33   ;;  %1274 = vperm.xlu0 %3962, %v4440_v36  }
 0x17c   : > { %v5123_v30 = vpop.permute.xlu1 %854  ;;  %v5125_v29 = vpop.permute.xlu0 %849 }
 0x17d   : > { %7915 = vst [vmem:[#allocation200_spill] sm:$0xff] %v5123_v30  ;;  %7916 = vst [vmem:[#allocation201_spill] sm:$0xff] %v5125_v29  ;;  %v7998_v29 = vld [vmem:[#allocation59_spill] sm:$0xff] }
 0x17e   : > { %1278 = vperm.xlu1 %3961, %v4437_v35   ;;  %1282 = vperm.xlu0 %3962, %v4448_v38  }
 0x180   : > { %v5129_v32 = vpop.permute.xlu1 %864  ;;  %v5131_v31 = vpop.permute.xlu0 %859 }
 0x181   : > { %7917 = vst [vmem:[#allocation202_spill] sm:$0xff] %v5129_v32  ;;  %7918 = vst [vmem:[#allocation203_spill] sm:$0xff] %v5131_v31  ;;  %v7994_v31 = vld [vmem:[#allocation55_spill] sm:$0xff] }
 0x182   : > { %1286 = vperm.xlu1 %3961, %v4445_v37   ;;  %1290 = vperm.xlu0 %3962, %v4456_v40  }
 0x184   : > { %v5135_v34 = vpop.permute.xlu1 %874  ;;  %v5137_v33 = vpop.permute.xlu0 %869 }
 0x185   : > { %7919 = vst [vmem:[#allocation204_spill] sm:$0xff] %v5135_v34  ;;  %7920 = vst [vmem:[#allocation205_spill] sm:$0xff] %v5137_v33  ;;  %v7990_v33 = vld [vmem:[#allocation51_spill] sm:$0xff] }
 0x186   : > { %1294 = vperm.xlu1 %3961, %v4453_v39   ;;  %1298 = vperm.xlu0 %3962, %v4464_v42  }
 0x188   : > { %v5141_v36 = vpop.permute.xlu1 %884  ;;  %v5143_v35 = vpop.permute.xlu0 %879 }
 0x189   : > { %7921 = vst [vmem:[#allocation206_spill] sm:$0xff] %v5141_v36  ;;  %7922 = vst [vmem:[#allocation207_spill] sm:$0xff] %v5143_v35  ;;  %v7986_v35 = vld [vmem:[#allocation47_spill] sm:$0xff] }
 0x18a   : > { %1302 = vperm.xlu1 %3961, %v4461_v41   ;;  %1306 = vperm.xlu0 %3962, %v4472_v44  }
 0x18c   : > { %v5147_v38 = vpop.permute.xlu1 %894  ;;  %v5149_v37 = vpop.permute.xlu0 %889 }
 0x18d   : > { %7923 = vst [vmem:[#allocation208_spill] sm:$0xff] %v5147_v38  ;;  %7924 = vst [vmem:[#allocation209_spill] sm:$0xff] %v5149_v37  ;;  %v7982_v37 = vld [vmem:[#allocation43_spill] sm:$0xff] }
 0x18e   : > { %1310 = vperm.xlu1 %3961, %v4469_v43   ;;  %1314 = vperm.xlu0 %3962, %v4480_v46  }
 0x190   : > { %v5153_v40 = vpop.permute.xlu1 %904  ;;  %v5155_v39 = vpop.permute.xlu0 %899 }
 0x191   : > { %7925 = vst [vmem:[#allocation210_spill] sm:$0xff] %v5153_v40  ;;  %7926 = vst [vmem:[#allocation211_spill] sm:$0xff] %v5155_v39  ;;  %v7978_v39 = vld [vmem:[#allocation39_spill] sm:$0xff] }
 0x192   : > { %1318 = vperm.xlu1 %3961, %v4477_v45   ;;  %1322 = vperm.xlu0 %3962, %v4488_v48  }
 0x194   : > { %v5159_v42 = vpop.permute.xlu1 %914  ;;  %v5161_v41 = vpop.permute.xlu0 %909 }
 0x195   : > { %7927 = vst [vmem:[#allocation212_spill] sm:$0xff] %v5159_v42  ;;  %7928 = vst [vmem:[#allocation213_spill] sm:$0xff] %v5161_v41  ;;  %v7974_v41 = vld [vmem:[#allocation35_spill] sm:$0xff] }
 0x196   : > { %1326 = vperm.xlu1 %3961, %v4485_v47   ;;  %1330 = vperm.xlu0 %3962, %v4496_v50  }
 0x198   : > { %v5165_v44 = vpop.permute.xlu1 %924  ;;  %v5167_v43 = vpop.permute.xlu0 %919 }
 0x199   : > { %7929 = vst [vmem:[#allocation214_spill] sm:$0xff] %v5165_v44  ;;  %7930 = vst [vmem:[#allocation215_spill] sm:$0xff] %v5167_v43  ;;  %v7970_v43 = vld [vmem:[#allocation31_spill] sm:$0xff] }
 0x19a   : > { %1334 = vperm.xlu1 %3961, %v4493_v49   ;;  %1338 = vperm.xlu0 %3962, %v4504_v52   ;;  %v7937_v52 = vld [vmem:[#allocation5_spill] sm:$0xff] }
 0x19c   : > { %v5171_v46 = vpop.permute.xlu1 %934  ;;  %v5173_v45 = vpop.permute.xlu0 %929 }
 0x19d   : > { %7931 = vst [vmem:[#allocation216_spill] sm:$0xff] %v5171_v46  ;;  %7932 = vst [vmem:[#allocation217_spill] sm:$0xff] %v5173_v45  ;;  %v7938_v46 = vld [vmem:[#allocation7_spill] sm:$0xff] }
 0x19e   : > { %1342 = vperm.xlu1 %3961, %v4501_v51   ;;  %1346 = vperm.xlu0 %3962, %v4512_v54   ;;  %v7941_v54 = vld [vmem:[#allocation6_spill] sm:$0xff]  ;;  %v7966_v45 = vld [vmem:[#allocation27_spill] sm:$0xff] }
 0x1a0   : > { %v5177_v48 = vpop.permute.xlu1 %944  ;;  %v5179_v47 = vpop.permute.xlu0 %939 }
 0x1a1   : > { %7933 = vst [vmem:[#allocation218_spill] sm:$0xff] %v5177_v48  ;;  %7934 = vst [vmem:[#allocation219_spill] sm:$0xff] %v5179_v47  ;;  %v7942_v48 = vld [vmem:[#allocation9_spill] sm:$0xff] }
 0x1a2   : > { %1350 = vperm.xlu1 %3961, %v4509_v53   ;;  %1354 = vperm.xlu0 %3962, %v4520_v56   ;;  %v7945_v56 = vld [vmem:[#allocation8_spill] sm:$0xff] }
 0x1a4   : > { %v5183_v50 = vpop.permute.xlu1 %954  ;;  %v5185_v49 = vpop.permute.xlu0 %949 }
 0x1a5   : > { %7935 = vst [vmem:[#allocation220_spill] sm:$0xff] %v5183_v50  ;;  %7936 = vst [vmem:[#allocation221_spill] sm:$0xff] %v5185_v49  ;;  %v7946_v50 = vld [vmem:[#allocation11_spill] sm:$0xff] }
 0x1a6   : > { %1358 = vperm.xlu1 %3961, %v7937_v52   ;;  %1362 = vperm.xlu0 %3962, %v7938_v46   ;;  %v7949_v46 = vld [vmem:[#allocation10_spill] sm:$0xff] }
 0x1a8   : > { %v5189_v44 = vpop.permute.xlu1 %964  ;;  %v5191_v51 = vpop.permute.xlu0 %959 }
 0x1a9   : > { %7939 = vst [vmem:[#allocation5_spill] sm:$0xff] %v5189_v44  ;;  %7940 = vst [vmem:[#allocation7_spill] sm:$0xff] %v5191_v51  ;;  %v7950_v44 = vld [vmem:[#allocation13_spill] sm:$0xff] }
 0x1aa   : > { %1366 = vperm.xlu1 %3961, %v7941_v54   ;;  %1370 = vperm.xlu0 %3962, %v7942_v48   ;;  %v7953_v48 = vld [vmem:[#allocation12_spill] sm:$0xff] }
 0x1ac   : > { %v5195_v47 = vpop.permute.xlu1 %974  ;;  %v5197_v53 = vpop.permute.xlu0 %969 }
 0x1ad   : > { %7943 = vst [vmem:[#allocation6_spill] sm:$0xff] %v5195_v47  ;;  %7944 = vst [vmem:[#allocation9_spill] sm:$0xff] %v5197_v53  ;;  %v7954_v47 = vld [vmem:[#allocation15_spill] sm:$0xff] }
 0x1ae   : > { %1374 = vperm.xlu1 %3961, %v7945_v56   ;;  %1378 = vperm.xlu0 %3962, %v7946_v50   ;;  %v7957_v50 = vld [vmem:[#allocation14_spill] sm:$0xff] }
 0x1b0   : > { %v5201_v49 = vpop.permute.xlu1 %984  ;;  %v5203_v52 = vpop.permute.xlu0 %979 }
 0x1b1   : > { %7947 = vst [vmem:[#allocation8_spill] sm:$0xff] %v5201_v49  ;;  %7948 = vst [vmem:[#allocation11_spill] sm:$0xff] %v5203_v52  ;;  %v7958_v49 = vld [vmem:[#allocation19_spill] sm:$0xff] }
 0x1b2   : > { %1382 = vperm.xlu1 %3961, %v7949_v46   ;;  %1386 = vperm.xlu0 %3962, %v7950_v44   ;;  %v7961_v44 = vld [vmem:[#allocation18_spill] sm:$0xff] }
 0x1b4   : > { %v5207_v51 = vpop.permute.xlu0 %989 }
 0x1b5   : > { %7951 = vst [vmem:[#allocation10_spill] sm:$0xff] %v5207_v51  ;;  %v5209_v54 = vpop.permute.xlu1 %1138  ;;  %v7962_v51 = vld [vmem:[#allocation23_spill] sm:$0xff] }
 0x1b6   : > { %7952 = vst [vmem:[#allocation13_spill] sm:$0xff] %v5209_v54  ;;  %1390 = vperm.xlu1 %3961, %v7953_v48   ;;  %1394 = vperm.xlu0 %3962, %v7954_v47   ;;  %v7965_v47 = vld [vmem:[#allocation22_spill] sm:$0xff]  ;;  %v5794_v54 = vld [vmem:[%s4298_s25 + $0x1c8] sm:$0xff] }
 0x1b7   : > { %8169 = vst [vmem:[#allocation288_spill] sm:$0xff] %v5794_v54 }
 0x1b9   : > { %v5213_v53 = vpop.permute.xlu1 %1146  ;;  %v5215_v56 = vpop.permute.xlu0 %1142 }
 0x1ba   : > { %7955 = vst [vmem:[#allocation12_spill] sm:$0xff] %v5213_v53  ;;  %7956 = vst [vmem:[#allocation15_spill] sm:$0xff] %v5215_v56  ;;  %1398 = vperm.xlu1 %3961, %v7957_v50   ;;  %1402 = vperm.xlu0 %3962, %v7958_v49   ;;  %v7969_v49 = vld [vmem:[#allocation26_spill] sm:$0xff] }
 0x1bb   : > { %v5782_v53 = vld [vmem:[%s4298_s25 + $0x1b8] sm:$0xff] }
 0x1bc   : > { %8165 = vst [vmem:[#allocation284_spill] sm:$0xff] %v5782_v53 }
 0x1bd   : > { %v5219_v52 = vpop.permute.xlu1 %1150  ;;  %v5221_v46 = vpop.permute.xlu0 %1154 }
 0x1be   : > { %7959 = vst [vmem:[#allocation14_spill] sm:$0xff] %v5219_v52  ;;  %7960 = vst [vmem:[#allocation19_spill] sm:$0xff] %v5221_v46  ;;  %1406 = vperm.xlu1 %3961, %v7961_v44   ;;  %1410 = vperm.xlu0 %3962, %v7962_v51   ;;  %v7973_v51 = vld [vmem:[#allocation30_spill] sm:$0xff]  ;;  %v5770_v52 = vld [vmem:[%s4298_s25 + $0x1a8] sm:$0xff] }
 0x1bf   : > { %8161 = vst [vmem:[#allocation280_spill] sm:$0xff] %v5770_v52 }
 0x1c1   : > { %v5225_v42 = vpop.permute.xlu1 %1158  ;;  %v5227_v48 = vpop.permute.xlu0 %1162 }
 0x1c2   : > { %7963 = vst [vmem:[#allocation18_spill] sm:$0xff] %v5225_v42  ;;  %7964 = vst [vmem:[#allocation23_spill] sm:$0xff] %v5227_v48  ;;  %1414 = vperm.xlu1 %3961, %v7965_v47   ;;  %1418 = vperm.xlu0 %3962, %v7966_v45   ;;  %v7977_v45 = vld [vmem:[#allocation34_spill] sm:$0xff] }
 0x1c3   : > { %v5758_v42 = vld [vmem:[%s4298_s25 + $0x198] sm:$0xff] }
 0x1c4   : > { %8158 = vst [vmem:[#allocation277_spill] sm:$0xff] %v5758_v42 }
 0x1c5   : > { %v5231_v40 = vpop.permute.xlu1 %1166  ;;  %v5233_v50 = vpop.permute.xlu0 %1170 }
 0x1c6   : > { %7967 = vst [vmem:[#allocation22_spill] sm:$0xff] %v5231_v40  ;;  %7968 = vst [vmem:[#allocation27_spill] sm:$0xff] %v5233_v50  ;;  %1422 = vperm.xlu1 %3961, %v7969_v49   ;;  %1426 = vperm.xlu0 %3962, %v7970_v43   ;;  %v7981_v43 = vld [vmem:[#allocation38_spill] sm:$0xff]  ;;  %v5746_v40 = vld [vmem:[%s4298_s25 + $0x188] sm:$0xff] }
 0x1c9   : > { %v5237_v38 = vpop.permute.xlu1 %1174  ;;  %v5239_v44 = vpop.permute.xlu0 %1178 }
 0x1ca   : > { %7971 = vst [vmem:[#allocation26_spill] sm:$0xff] %v5237_v38  ;;  %7972 = vst [vmem:[#allocation31_spill] sm:$0xff] %v5239_v44  ;;  %1430 = vperm.xlu1 %3961, %v7973_v51   ;;  %1434 = vperm.xlu0 %3962, %v7974_v41   ;;  %v7985_v41 = vld [vmem:[#allocation42_spill] sm:$0xff] }
 0x1cb   : > { %v5734_v38 = vld [vmem:[%s4298_s25 + $0x178] sm:$0xff] }
 0x1cd   : > { %v5243_v36 = vpop.permute.xlu1 %1182  ;;  %v5245_v47 = vpop.permute.xlu0 %1186 }
 0x1ce   : > { %7975 = vst [vmem:[#allocation30_spill] sm:$0xff] %v5243_v36  ;;  %7976 = vst [vmem:[#allocation35_spill] sm:$0xff] %v5245_v47  ;;  %1438 = vperm.xlu1 %3961, %v7977_v45   ;;  %1442 = vperm.xlu0 %3962, %v7978_v39   ;;  %v7989_v39 = vld [vmem:[#allocation46_spill] sm:$0xff]  ;;  %v5722_v36 = vld [vmem:[%s4298_s25 + $0x168] sm:$0xff] }
 0x1d1   : > { %v5249_v34 = vpop.permute.xlu1 %1190  ;;  %v5251_v49 = vpop.permute.xlu0 %1194 }
 0x1d2   : > { %7979 = vst [vmem:[#allocation34_spill] sm:$0xff] %v5249_v34  ;;  %7980 = vst [vmem:[#allocation39_spill] sm:$0xff] %v5251_v49  ;;  %1446 = vperm.xlu1 %3961, %v7981_v43   ;;  %1450 = vperm.xlu0 %3962, %v7982_v37   ;;  %v7993_v37 = vld [vmem:[#allocation50_spill] sm:$0xff] }
 0x1d3   : > { %v5710_v34 = vld [vmem:[%s4298_s25 + $0x158] sm:$0xff] }
 0x1d5   : > { %v5255_v32 = vpop.permute.xlu1 %1198  ;;  %v5257_v51 = vpop.permute.xlu0 %1202 }
 0x1d6   : > { %7983 = vst [vmem:[#allocation38_spill] sm:$0xff] %v5255_v32  ;;  %7984 = vst [vmem:[#allocation43_spill] sm:$0xff] %v5257_v51  ;;  %1454 = vperm.xlu1 %3961, %v7985_v41   ;;  %1458 = vperm.xlu0 %3962, %v7986_v35   ;;  %v7997_v35 = vld [vmem:[#allocation54_spill] sm:$0xff]  ;;  %v5698_v32 = vld [vmem:[%s4298_s25 + $0x148] sm:$0xff] }
 0x1d9   : > { %v5261_v30 = vpop.permute.xlu1 %1206  ;;  %v5263_v45 = vpop.permute.xlu0 %1210 }
 0x1da   : > { %7987 = vst [vmem:[#allocation42_spill] sm:$0xff] %v5261_v30  ;;  %7988 = vst [vmem:[#allocation47_spill] sm:$0xff] %v5263_v45  ;;  %1462 = vperm.xlu1 %3961, %v7989_v39   ;;  %1466 = vperm.xlu0 %3962, %v7990_v33   ;;  %v8001_v33 = vld [vmem:[#allocation58_spill] sm:$0xff] }
 0x1db   : > { %v5686_v30 = vld [vmem:[%s4298_s25 + $0x138] sm:$0xff] }
 0x1dd   : > { %v5267_v28 = vpop.permute.xlu1 %1214  ;;  %v5269_v43 = vpop.permute.xlu0 %1218 }
 0x1de   : > { %7991 = vst [vmem:[#allocation46_spill] sm:$0xff] %v5267_v28  ;;  %7992 = vst [vmem:[#allocation51_spill] sm:$0xff] %v5269_v43  ;;  %1470 = vperm.xlu1 %3961, %v7993_v37   ;;  %1474 = vperm.xlu0 %3962, %v7994_v31   ;;  %v8005_v31 = vld [vmem:[#allocation62_spill] sm:$0xff]  ;;  %v5674_v28 = vld [vmem:[%s4298_s25 + $0x128] sm:$0xff] }
 0x1e1   : > { %v5273_v26 = vpop.permute.xlu1 %1222  ;;  %v5275_v41 = vpop.permute.xlu0 %1226 }
 0x1e2   : > { %7995 = vst [vmem:[#allocation50_spill] sm:$0xff] %v5273_v26  ;;  %7996 = vst [vmem:[#allocation55_spill] sm:$0xff] %v5275_v41  ;;  %1478 = vperm.xlu1 %3961, %v7997_v35   ;;  %1482 = vperm.xlu0 %3962, %v7998_v29   ;;  %v8009_v29 = vld [vmem:[#allocation66_spill] sm:$0xff] }
 0x1e3   : > { %v5662_v26 = vld [vmem:[%s4298_s25 + $0x118] sm:$0xff] }
 0x1e5   : > { %v5279_v24 = vpop.permute.xlu1 %1230  ;;  %v5281_v39 = vpop.permute.xlu0 %1234 }
 0x1e6   : > { %7999 = vst [vmem:[#allocation54_spill] sm:$0xff] %v5279_v24  ;;  %8000 = vst [vmem:[#allocation59_spill] sm:$0xff] %v5281_v39  ;;  %1486 = vperm.xlu1 %3961, %v8001_v33   ;;  %1490 = vperm.xlu0 %3962, %v8002_v27   ;;  %v8013_v27 = vld [vmem:[#allocation70_spill] sm:$0xff]  ;;  %v5650_v24 = vld [vmem:[%s4298_s25 + $0x108] sm:$0xff] }
 0x1e9   : > { %v5285_v22 = vpop.permute.xlu1 %1238  ;;  %v5287_v37 = vpop.permute.xlu0 %1242 }
 0x1ea   : > { %8003 = vst [vmem:[#allocation58_spill] sm:$0xff] %v5285_v22  ;;  %8004 = vst [vmem:[#allocation63_spill] sm:$0xff] %v5287_v37  ;;  %1494 = vperm.xlu1 %3961, %v8005_v31   ;;  %1498 = vperm.xlu0 %3962, %v8006_v25   ;;  %v8017_v25 = vld [vmem:[#allocation74_spill] sm:$0xff] }
 0x1eb   : > { %v5638_v22 = vld [vmem:[%s4298_s25 + $0xf8] sm:$0xff] }
 0x1ed   : > { %v5291_v20 = vpop.permute.xlu1 %1246  ;;  %v5293_v35 = vpop.permute.xlu0 %1250 }
 0x1ee   : > { %8007 = vst [vmem:[#allocation62_spill] sm:$0xff] %v5291_v20  ;;  %8008 = vst [vmem:[#allocation67_spill] sm:$0xff] %v5293_v35  ;;  %1502 = vperm.xlu1 %3961, %v8009_v29   ;;  %1506 = vperm.xlu0 %3962, %v8010_v23   ;;  %v8021_v23 = vld [vmem:[#allocation78_spill] sm:$0xff]  ;;  %v5626_v20 = vld [vmem:[%s4298_s25 + $0xe8] sm:$0xff] }
 0x1f1   : > { %v5297_v18 = vpop.permute.xlu1 %1254  ;;  %v5299_v33 = vpop.permute.xlu0 %1258 }
 0x1f2   : > { %8011 = vst [vmem:[#allocation66_spill] sm:$0xff] %v5297_v18  ;;  %8012 = vst [vmem:[#allocation71_spill] sm:$0xff] %v5299_v33  ;;  %1510 = vperm.xlu1 %3961, %v8013_v27   ;;  %1514 = vperm.xlu0 %3962, %v8014_v21   ;;  %v8025_v21 = vld [vmem:[#allocation82_spill] sm:$0xff] }
 0x1f3   : > { %v5614_v18 = vld [vmem:[%s4298_s25 + $0xd8] sm:$0xff] }
 0x1f5   : > { %v5303_v16 = vpop.permute.xlu1 %1262  ;;  %v5305_v31 = vpop.permute.xlu0 %1266 }
 0x1f6   : > { %8015 = vst [vmem:[#allocation70_spill] sm:$0xff] %v5303_v16  ;;  %8016 = vst [vmem:[#allocation75_spill] sm:$0xff] %v5305_v31  ;;  %1518 = vperm.xlu1 %3961, %v8017_v25   ;;  %1522 = vperm.xlu0 %3962, %v8018_v19   ;;  %v8029_v19 = vld [vmem:[#allocation86_spill] sm:$0xff]  ;;  %v5602_v16 = vld [vmem:[%s4298_s25 + $0xc8] sm:$0xff] }
 0x1f9   : > { %v5309_v14 = vpop.permute.xlu1 %1270  ;;  %v5311_v29 = vpop.permute.xlu0 %1274 }
 0x1fa   : > { %8019 = vst [vmem:[#allocation74_spill] sm:$0xff] %v5309_v14  ;;  %8020 = vst [vmem:[#allocation79_spill] sm:$0xff] %v5311_v29  ;;  %1526 = vperm.xlu1 %3961, %v8021_v23   ;;  %1530 = vperm.xlu0 %3962, %v8022_v17   ;;  %v8033_v17 = vld [vmem:[#allocation90_spill] sm:$0xff] }
 0x1fb   : > { %v5590_v14 = vld [vmem:[%s4298_s25 + $0xb8] sm:$0xff] }
 0x1fd   : > { %v5315_v12 = vpop.permute.xlu1 %1278  ;;  %v5317_v27 = vpop.permute.xlu0 %1282 }
 0x1fe   : > { %8023 = vst [vmem:[#allocation78_spill] sm:$0xff] %v5315_v12  ;;  %8024 = vst [vmem:[#allocation83_spill] sm:$0xff] %v5317_v27  ;;  %1534 = vperm.xlu1 %3961, %v8025_v21   ;;  %1538 = vperm.xlu0 %3962, %v8026_v15   ;;  %v8037_v15 = vld [vmem:[#allocation94_spill] sm:$0xff]  ;;  %v5578_v12 = vld [vmem:[%s4298_s25 + $0xa8] sm:$0xff] }
 0x201   : > { %v5321_v10 = vpop.permute.xlu1 %1286  ;;  %v5323_v25 = vpop.permute.xlu0 %1290 }
 0x202   : > { %8027 = vst [vmem:[#allocation82_spill] sm:$0xff] %v5321_v10  ;;  %8028 = vst [vmem:[#allocation87_spill] sm:$0xff] %v5323_v25  ;;  %1542 = vperm.xlu1 %3961, %v8029_v19   ;;  %1546 = vperm.xlu0 %3962, %v8030_v13   ;;  %v8041_v13 = vld [vmem:[#allocation98_spill] sm:$0xff] }
 0x203   : > { %v5566_v10 = vld [vmem:[%s4298_s25 + $0x98] sm:$0xff] }
 0x205   : > { %v5327_v8 = vpop.permute.xlu1 %1294  ;;  %v5329_v23 = vpop.permute.xlu0 %1298 }
 0x206   : > { %8031 = vst [vmem:[#allocation86_spill] sm:$0xff] %v5327_v8  ;;  %8032 = vst [vmem:[#allocation91_spill] sm:$0xff] %v5329_v23  ;;  %1550 = vperm.xlu1 %3961, %v8033_v17   ;;  %1554 = vperm.xlu0 %3962, %v8034_v11   ;;  %v8045_v11 = vld [vmem:[#allocation102_spill] sm:$0xff]  ;;  %v5554_v8 = vld [vmem:[%s4298_s25 + $0x88] sm:$0xff] }
 0x209   : > { %v5333_v6 = vpop.permute.xlu1 %1302  ;;  %v5335_v21 = vpop.permute.xlu0 %1306 }
 0x20a   : > { %8035 = vst [vmem:[#allocation90_spill] sm:$0xff] %v5333_v6  ;;  %8036 = vst [vmem:[#allocation95_spill] sm:$0xff] %v5335_v21  ;;  %1558 = vperm.xlu1 %3961, %v8037_v15   ;;  %1562 = vperm.xlu0 %3962, %v8038_v9   ;;  %v8049_v9 = vld [vmem:[#allocation106_spill] sm:$0xff] }
 0x20b   : > { %v5542_v6 = vld [vmem:[%s4298_s25 + $0x78] sm:$0xff] }
 0x20d   : > { %v5339_v4 = vpop.permute.xlu1 %1310  ;;  %v5341_v19 = vpop.permute.xlu0 %1314 }
 0x20e   : > { %8039 = vst [vmem:[#allocation94_spill] sm:$0xff] %v5339_v4  ;;  %8040 = vst [vmem:[#allocation99_spill] sm:$0xff] %v5341_v19  ;;  %1566 = vperm.xlu1 %3961, %v8041_v13   ;;  %1570 = vperm.xlu0 %3962, %v8042_v7   ;;  %v8053_v7 = vld [vmem:[#allocation110_spill] sm:$0xff]  ;;  %v5530_v4 = vld [vmem:[%s4298_s25 + $0x68] sm:$0xff] }
 0x211   : > { %v5345_v59 = vpop.permute.xlu1 %1318  ;;  %v5347_v17 = vpop.permute.xlu0 %1322 }
 0x212   : > { %8043 = vst [vmem:[#allocation98_spill] sm:$0xff] %v5345_v59  ;;  %8044 = vst [vmem:[#allocation103_spill] sm:$0xff] %v5347_v17  ;;  %1574 = vperm.xlu1 %3961, %v8045_v11   ;;  %1578 = vperm.xlu0 %3962, %v8046_v5   ;;  %v8057_v5 = vld [vmem:[#allocation114_spill] sm:$0xff] }
 0x213   : > { %v5518_v59 = vld [vmem:[%s4298_s25 + $0x58] sm:$0xff] }
 0x215   : > { %v5351_v61 = vpop.permute.xlu1 %1326  ;;  %v5353_v15 = vpop.permute.xlu0 %1330 }
 0x216   : > { %8047 = vst [vmem:[#allocation102_spill] sm:$0xff] %v5351_v61  ;;  %8048 = vst [vmem:[#allocation107_spill] sm:$0xff] %v5353_v15  ;;  %1582 = vperm.xlu1 %3961, %v8049_v9   ;;  %1586 = vperm.xlu0 %3962, %v8050_v3   ;;  %v8061_v3 = vld [vmem:[#allocation118_spill] sm:$0xff]  ;;  %v5506_v61 = vld [vmem:[%s4298_s25 + $0x48] sm:$0xff] }
 0x219   : > { %v5357_v63 = vpop.permute.xlu1 %1334  ;;  %v5359_v13 = vpop.permute.xlu0 %1338 }
 0x21a   : > { %8051 = vst [vmem:[#allocation106_spill] sm:$0xff] %v5357_v63  ;;  %8052 = vst [vmem:[#allocation111_spill] sm:$0xff] %v5359_v13  ;;  %1590 = vperm.xlu1 %3961, %v8053_v7   ;;  %1594 = vperm.xlu0 %3962, %v8054_v1   ;;  %v8065_v1 = vld [vmem:[#allocation122_spill] sm:$0xff] }
 0x21d   : > { %v5363_v60 = vpop.permute.xlu1 %1342  ;;  %v5365_v11 = vpop.permute.xlu0 %1346 }
 0x21e   : > { %8055 = vst [vmem:[#allocation110_spill] sm:$0xff] %v5363_v60  ;;  %8056 = vst [vmem:[#allocation115_spill] sm:$0xff] %v5365_v11  ;;  %1598 = vperm.xlu1 %3961, %v8057_v5   ;;  %1602 = vperm.xlu0 %3962, %v8058_v2   ;;  %v8066_v60 = vld [vmem:[#allocation127_spill] sm:$0xff]  ;;  %v8069_v2 = vld [vmem:[#allocation126_spill] sm:$0xff] }
 0x221   : > { %v5369_v57 = vpop.permute.xlu1 %1350  ;;  %v5371_v9 = vpop.permute.xlu0 %1354 }
 0x222   : > { %8059 = vst [vmem:[#allocation114_spill] sm:$0xff] %v5369_v57  ;;  %8060 = vst [vmem:[#allocation119_spill] sm:$0xff] %v5371_v9  ;;  %1606 = vperm.xlu1 %3961, %v8061_v3   ;;  %1610 = vperm.xlu0 %3962, %v8062_v58   ;;  %v8070_v57 = vld [vmem:[#allocation131_spill] sm:$0xff]  ;;  %v8073_v58 = vld [vmem:[#allocation130_spill] sm:$0xff] }
 0x225   : > { %v5375_v63 = vpop.permute.xlu1 %1358  ;;  %v5377_v7 = vpop.permute.xlu0 %1362 }
 0x226   : > { %8063 = vst [vmem:[#allocation118_spill] sm:$0xff] %v5375_v63  ;;  %8064 = vst [vmem:[#allocation123_spill] sm:$0xff] %v5377_v7  ;;  %1614 = vperm.xlu1 %3961, %v8065_v1   ;;  %1618 = vperm.xlu0 %3962, %v8066_v60   ;;  %v8074_v63 = vld [vmem:[#allocation135_spill] sm:$0xff]  ;;  %v8077_v60 = vld [vmem:[#allocation134_spill] sm:$0xff] }
 0x229   : > { %v5381_v11 = vpop.permute.xlu1 %1366  ;;  %v5383_v5 = vpop.permute.xlu0 %1370 }
 0x22a   : > { %8067 = vst [vmem:[#allocation122_spill] sm:$0xff] %v5381_v11  ;;  %8068 = vst [vmem:[#allocation127_spill] sm:$0xff] %v5383_v5  ;;  %1622 = vperm.xlu1 %3961, %v8069_v2   ;;  %1626 = vperm.xlu0 %3962, %v8070_v57   ;;  %v8078_v11 = vld [vmem:[#allocation139_spill] sm:$0xff]  ;;  %v8081_v57 = vld [vmem:[#allocation138_spill] sm:$0xff] }
 0x22d   : > { %v5387_v9 = vpop.permute.xlu1 %1374  ;;  %v5389_v3 = vpop.permute.xlu0 %1378 }
 0x22e   : > { %8071 = vst [vmem:[#allocation126_spill] sm:$0xff] %v5387_v9  ;;  %8072 = vst [vmem:[#allocation131_spill] sm:$0xff] %v5389_v3  ;;  %1630 = vperm.xlu1 %3961, %v8073_v58   ;;  %1634 = vperm.xlu0 %3962, %v8074_v63   ;;  %v8082_v9 = vld [vmem:[#allocation143_spill] sm:$0xff]  ;;  %v8085_v63 = vld [vmem:[#allocation142_spill] sm:$0xff] }
 0x231   : > { %v5393_v7 = vpop.permute.xlu1 %1382  ;;  %v5395_v1 = vpop.permute.xlu0 %1386 }
 0x232   : > { %8075 = vst [vmem:[#allocation130_spill] sm:$0xff] %v5393_v7  ;;  %8076 = vst [vmem:[#allocation135_spill] sm:$0xff] %v5395_v1  ;;  %1638 = vperm.xlu1 %3961, %v8077_v60   ;;  %1642 = vperm.xlu0 %3962, %v8078_v11   ;;  %v8086_v7 = vld [vmem:[#allocation147_spill] sm:$0xff]  ;;  %v8089_v11 = vld [vmem:[#allocation146_spill] sm:$0xff] }
 0x235   : > { %v5399_v5 = vpop.permute.xlu1 %1390  ;;  %v5401_v2 = vpop.permute.xlu0 %1394 }
 0x236   : > { %8079 = vst [vmem:[#allocation134_spill] sm:$0xff] %v5399_v5  ;;  %8080 = vst [vmem:[#allocation139_spill] sm:$0xff] %v5401_v2  ;;  %1646 = vperm.xlu1 %3961, %v8081_v57   ;;  %1650 = vperm.xlu0 %3962, %v8082_v9   ;;  %v8090_v5 = vld [vmem:[#allocation151_spill] sm:$0xff]  ;;  %v8093_v9 = vld [vmem:[#allocation150_spill] sm:$0xff] }
 0x239   : > { %v5405_v3 = vpop.permute.xlu1 %1398  ;;  %v5407_v58 = vpop.permute.xlu0 %1402 }
 0x23a   : > { %8083 = vst [vmem:[#allocation138_spill] sm:$0xff] %v5405_v3  ;;  %8084 = vst [vmem:[#allocation143_spill] sm:$0xff] %v5407_v58  ;;  %1654 = vperm.xlu1 %3961, %v8085_v63   ;;  %1658 = vperm.xlu0 %3962, %v8086_v7   ;;  %v8094_v3 = vld [vmem:[#allocation155_spill] sm:$0xff]  ;;  %v8097_v7 = vld [vmem:[#allocation154_spill] sm:$0xff] }
 0x23d   : > { %v5411_v1 = vpop.permute.xlu1 %1406  ;;  %v5413_v60 = vpop.permute.xlu0 %1410 }
 0x23e   : > { %8087 = vst [vmem:[#allocation142_spill] sm:$0xff] %v5411_v1  ;;  %8088 = vst [vmem:[#allocation147_spill] sm:$0xff] %v5413_v60  ;;  %1662 = vperm.xlu1 %3961, %v8089_v11   ;;  %1666 = vperm.xlu0 %3962, %v8090_v5   ;;  %v8098_v1 = vld [vmem:[#allocation159_spill] sm:$0xff] }
 0x241   : > { %v5417_v2 = vpop.permute.xlu1 %1414  ;;  %v5419_v57 = vpop.permute.xlu0 %1418 }
 0x242   : > { %8091 = vst [vmem:[#allocation146_spill] sm:$0xff] %v5417_v2  ;;  %8092 = vst [vmem:[#allocation151_spill] sm:$0xff] %v5419_v57  ;;  %1670 = vperm.xlu1 %3961, %v8093_v9   ;;  %1674 = vperm.xlu0 %3962, %v8094_v3   ;;  %v8101_v2 = vld [vmem:[#allocation158_spill] sm:$0xff] }
 0x243   : > { %v5494_v57 = vld [vmem:[%s4298_s25 + $0x38] sm:$0xff] }
 0x245   : > { %v5423_v58 = vpop.permute.xlu1 %1422  ;;  %v5425_v63 = vpop.permute.xlu0 %1426 }
 0x246   : > { %8095 = vst [vmem:[#allocation150_spill] sm:$0xff] %v5423_v58  ;;  %8096 = vst [vmem:[#allocation155_spill] sm:$0xff] %v5425_v63  ;;  %1678 = vperm.xlu1 %3961, %v8097_v7   ;;  %1682 = vperm.xlu0 %3962, %v8098_v1  }
 0x249   : > { %v5429_v11 = vpop.permute.xlu1 %1430  ;;  %v5431_v5 = vpop.permute.xlu0 %1434 }
 0x24a   : > { %8099 = vst [vmem:[#allocation154_spill] sm:$0xff] %v5429_v11  ;;  %8100 = vst [vmem:[#allocation159_spill] sm:$0xff] %v5431_v5  ;;  %1686 = vperm.xlu1 %3961, %v8101_v2   ;;  %1690 = vperm.xlu0 %3962, %v5004_v55   ;;  %v4226_v11 = vmov 2   ;;  %v5446_v55 = vld [vmem:[%s4298_s25] sm:$0xff]  ;;  %v5450_v2 = vld [vmem:[%s4298_s25 + $0x8] sm:$0xff] }
 0x24b   : > { %v5482_v5 = vld [vmem:[%s4298_s25 + $0x28] sm:$0xff] }
 0x24d   : > { %v5435_v3 = vpop.permute.xlu1 %1438  ;;  %v5437_v9 = vpop.permute.xlu0 %1442 }
 0x24e   : > { %8102 = vst [vmem:[#allocation158_spill] sm:$0xff] %v5435_v3  ;;  %8103 = vst [vmem:[#allocation222_spill] sm:$0xff] %v5437_v9  ;;  %1694 = vperm.xlu1 %3961, %v5001_v62   ;;  %1698 = vperm.xlu0 %3962, %v5013_v0   ;;  %v5462_v3 = vld [vmem:[%s4298_s25 + $0x20] sm:$0xff]  ;;  %v5470_v9 = vld [vmem:[%s4298_s25 + $0x18] sm:$0xff] }
 0x251   : > { %v5441_v1 = vpop.permute.xlu1 %1446  ;;  %v5443_v7 = vpop.permute.xlu0 %1450 }
 0x252   : > { %8104 = vst [vmem:[#allocation223_spill] sm:$0xff] %v5441_v1  ;;  %8105 = vst [vmem:[#allocation224_spill] sm:$0xff] %v5443_v7  ;;  %3963 = vset.pattern.permute.xlu1 %v4226_v11  ;;  %3964 = vset.pattern.permute.xlu0 %v4226_v11  ;;  %v5458_v1 = vld [vmem:[%s4298_s25 + $0x10] sm:$0xff] }
 0x253   : > { %1988 = vperm.xlu1 %3963, %v5446_v55   ;;  %1992 = vperm.xlu0 %3964, %v5450_v2  }
 0x255   : > { %v5453_v62 = vpop.permute.xlu1 %1454  ;;  %v5455_v0 = vpop.permute.xlu0 %1458 }
 0x256   : > { %8106 = vst [vmem:[#allocation225_spill] sm:$0xff] %v5453_v62  ;;  %8107 = vst [vmem:[#allocation226_spill] sm:$0xff] %v5455_v0  ;;  %v5474_v62 = vld [vmem:[%s4298_s25 + $0x30] sm:$0xff] }
 0x257   : > { %1996 = vperm.xlu1 %3963, %v5458_v1   ;;  %2004 = vperm.xlu0 %3964, %v5462_v3  }
 0x259   : > { %v5465_v11 = vpop.permute.xlu1 %1462  ;;  %v5467_v7 = vpop.permute.xlu0 %1466 }
 0x25a   : > { %8108 = vst [vmem:[#allocation227_spill] sm:$0xff] %v5465_v11  ;;  %8109 = vst [vmem:[#allocation228_spill] sm:$0xff] %v5467_v7  ;;  %v5486_v11 = vld [vmem:[%s4298_s25 + $0x40] sm:$0xff] }
 0x25b   : > { %2000 = vperm.xlu1 %3963, %v5470_v9   ;;  %2012 = vperm.xlu0 %3964, %v5474_v62  }
 0x25d   : > { %v5477_v0 = vpop.permute.xlu1 %1470  ;;  %v5479_v58 = vpop.permute.xlu0 %1474 }
 0x25e   : > { %8110 = vst [vmem:[#allocation229_spill] sm:$0xff] %v5477_v0  ;;  %8111 = vst [vmem:[#allocation230_spill] sm:$0xff] %v5479_v58  ;;  %v5498_v0 = vld [vmem:[%s4298_s25 + $0x50] sm:$0xff] }
 0x25f   : > { %2008 = vperm.xlu1 %3963, %v5482_v5   ;;  %2020 = vperm.xlu0 %3964, %v5486_v11  }
 0x261   : > { %v5489_v7 = vpop.permute.xlu1 %1478  ;;  %v5491_v63 = vpop.permute.xlu0 %1482 }
 0x262   : > { %8112 = vst [vmem:[#allocation231_spill] sm:$0xff] %v5489_v7  ;;  %8113 = vst [vmem:[#allocation232_spill] sm:$0xff] %v5491_v63  ;;  %v5510_v7 = vld [vmem:[%s4298_s25 + $0x60] sm:$0xff] }
 0x263   : > { %2016 = vperm.xlu1 %3963, %v5494_v57   ;;  %2028 = vperm.xlu0 %3964, %v5498_v0  }
 0x265   : > { %v5501_v58 = vpop.permute.xlu1 %1486  ;;  %v5503_v60 = vpop.permute.xlu0 %1490 }
 0x266   : > { %8114 = vst [vmem:[#allocation233_spill] sm:$0xff] %v5501_v58  ;;  %8115 = vst [vmem:[#allocation234_spill] sm:$0xff] %v5503_v60  ;;  %v5522_v58 = vld [vmem:[%s4298_s25 + $0x70] sm:$0xff] }
 0x267   : > { %2024 = vperm.xlu1 %3963, %v5506_v61   ;;  %2036 = vperm.xlu0 %3964, %v5510_v7  }
 0x269   : > { %v5513_v63 = vpop.permute.xlu1 %1494  ;;  %v5515_v13 = vpop.permute.xlu0 %1498 }
 0x26a   : > { %8116 = vst [vmem:[#allocation235_spill] sm:$0xff] %v5513_v63  ;;  %8117 = vst [vmem:[#allocation236_spill] sm:$0xff] %v5515_v13  ;;  %v5534_v63 = vld [vmem:[%s4298_s25 + $0x80] sm:$0xff] }
 0x26b   : > { %2032 = vperm.xlu1 %3963, %v5518_v59   ;;  %2044 = vperm.xlu0 %3964, %v5522_v58  }
 0x26d   : > { %v5525_v60 = vpop.permute.xlu1 %1502  ;;  %v5527_v15 = vpop.permute.xlu0 %1506 }
 0x26e   : > { %8118 = vst [vmem:[#allocation237_spill] sm:$0xff] %v5525_v60  ;;  %8119 = vst [vmem:[#allocation238_spill] sm:$0xff] %v5527_v15  ;;  %v5546_v60 = vld [vmem:[%s4298_s25 + $0x90] sm:$0xff] }
 0x26f   : > { %2040 = vperm.xlu1 %3963, %v5530_v4   ;;  %2052 = vperm.xlu0 %3964, %v5534_v63  }
 0x271   : > { %v5537_v13 = vpop.permute.xlu1 %1510  ;;  %v5539_v17 = vpop.permute.xlu0 %1514 }
 0x272   : > { %8120 = vst [vmem:[#allocation239_spill] sm:$0xff] %v5537_v13  ;;  %8121 = vst [vmem:[#allocation240_spill] sm:$0xff] %v5539_v17  ;;  %v5558_v13 = vld [vmem:[%s4298_s25 + $0xa0] sm:$0xff] }
 0x273   : > { %2048 = vperm.xlu1 %3963, %v5542_v6   ;;  %2060 = vperm.xlu0 %3964, %v5546_v60  }
 0x275   : > { %v5549_v15 = vpop.permute.xlu1 %1518  ;;  %v5551_v19 = vpop.permute.xlu0 %1522 }
 0x276   : > { %8122 = vst [vmem:[#allocation241_spill] sm:$0xff] %v5549_v15  ;;  %8123 = vst [vmem:[#allocation242_spill] sm:$0xff] %v5551_v19  ;;  %v5570_v15 = vld [vmem:[%s4298_s25 + $0xb0] sm:$0xff] }
 0x277   : > { %2056 = vperm.xlu1 %3963, %v5554_v8   ;;  %2068 = vperm.xlu0 %3964, %v5558_v13  }
 0x279   : > { %v5561_v17 = vpop.permute.xlu1 %1526  ;;  %v5563_v21 = vpop.permute.xlu0 %1530 }
 0x27a   : > { %8124 = vst [vmem:[#allocation243_spill] sm:$0xff] %v5561_v17  ;;  %8125 = vst [vmem:[#allocation244_spill] sm:$0xff] %v5563_v21  ;;  %v5582_v17 = vld [vmem:[%s4298_s25 + $0xc0] sm:$0xff] }
 0x27b   : > { %2064 = vperm.xlu1 %3963, %v5566_v10   ;;  %2076 = vperm.xlu0 %3964, %v5570_v15  }
 0x27d   : > { %v5573_v19 = vpop.permute.xlu1 %1534  ;;  %v5575_v23 = vpop.permute.xlu0 %1538 }
 0x27e   : > { %8126 = vst [vmem:[#allocation245_spill] sm:$0xff] %v5573_v19  ;;  %8127 = vst [vmem:[#allocation246_spill] sm:$0xff] %v5575_v23  ;;  %v5594_v19 = vld [vmem:[%s4298_s25 + $0xd0] sm:$0xff] }
 0x27f   : > { %2072 = vperm.xlu1 %3963, %v5578_v12   ;;  %2084 = vperm.xlu0 %3964, %v5582_v17  }
 0x281   : > { %v5585_v21 = vpop.permute.xlu1 %1542  ;;  %v5587_v25 = vpop.permute.xlu0 %1546 }
 0x282   : > { %8128 = vst [vmem:[#allocation247_spill] sm:$0xff] %v5585_v21  ;;  %8129 = vst [vmem:[#allocation248_spill] sm:$0xff] %v5587_v25  ;;  %v5606_v21 = vld [vmem:[%s4298_s25 + $0xe0] sm:$0xff] }
 0x283   : > { %2080 = vperm.xlu1 %3963, %v5590_v14   ;;  %2092 = vperm.xlu0 %3964, %v5594_v19  }
 0x285   : > { %v5597_v23 = vpop.permute.xlu1 %1550  ;;  %v5599_v27 = vpop.permute.xlu0 %1554 }
 0x286   : > { %8130 = vst [vmem:[#allocation249_spill] sm:$0xff] %v5597_v23  ;;  %8131 = vst [vmem:[#allocation250_spill] sm:$0xff] %v5599_v27  ;;  %v5618_v23 = vld [vmem:[%s4298_s25 + $0xf0] sm:$0xff] }
 0x287   : > { %2088 = vperm.xlu1 %3963, %v5602_v16   ;;  %2100 = vperm.xlu0 %3964, %v5606_v21  }
 0x289   : > { %v5609_v25 = vpop.permute.xlu1 %1558  ;;  %v5611_v29 = vpop.permute.xlu0 %1562 }
 0x28a   : > { %8132 = vst [vmem:[#allocation251_spill] sm:$0xff] %v5609_v25  ;;  %8133 = vst [vmem:[#allocation252_spill] sm:$0xff] %v5611_v29  ;;  %v5630_v25 = vld [vmem:[%s4298_s25 + $0x100] sm:$0xff] }
 0x28b   : > { %2096 = vperm.xlu1 %3963, %v5614_v18   ;;  %2108 = vperm.xlu0 %3964, %v5618_v23  }
 0x28d   : > { %v5621_v27 = vpop.permute.xlu1 %1566  ;;  %v5623_v31 = vpop.permute.xlu0 %1570 }
 0x28e   : > { %8134 = vst [vmem:[#allocation253_spill] sm:$0xff] %v5621_v27  ;;  %8135 = vst [vmem:[#allocation254_spill] sm:$0xff] %v5623_v31  ;;  %v5642_v27 = vld [vmem:[%s4298_s25 + $0x110] sm:$0xff] }
 0x28f   : > { %2104 = vperm.xlu1 %3963, %v5626_v20   ;;  %2116 = vperm.xlu0 %3964, %v5630_v25  }
 0x291   : > { %v5633_v29 = vpop.permute.xlu1 %1574  ;;  %v5635_v33 = vpop.permute.xlu0 %1578 }
 0x292   : > { %8136 = vst [vmem:[#allocation255_spill] sm:$0xff] %v5633_v29  ;;  %8137 = vst [vmem:[#allocation256_spill] sm:$0xff] %v5635_v33  ;;  %v5654_v29 = vld [vmem:[%s4298_s25 + $0x120] sm:$0xff] }
 0x293   : > { %2112 = vperm.xlu1 %3963, %v5638_v22   ;;  %2124 = vperm.xlu0 %3964, %v5642_v27  }
 0x295   : > { %v5645_v31 = vpop.permute.xlu1 %1582  ;;  %v5647_v35 = vpop.permute.xlu0 %1586 }
 0x296   : > { %8138 = vst [vmem:[#allocation257_spill] sm:$0xff] %v5645_v31  ;;  %8139 = vst [vmem:[#allocation258_spill] sm:$0xff] %v5647_v35  ;;  %v5666_v31 = vld [vmem:[%s4298_s25 + $0x130] sm:$0xff] }
 0x297   : > { %2120 = vperm.xlu1 %3963, %v5650_v24   ;;  %2132 = vperm.xlu0 %3964, %v5654_v29  }
 0x299   : > { %v5657_v33 = vpop.permute.xlu1 %1590  ;;  %v5659_v37 = vpop.permute.xlu0 %1594 }
 0x29a   : > { %8140 = vst [vmem:[#allocation259_spill] sm:$0xff] %v5657_v33  ;;  %8141 = vst [vmem:[#allocation260_spill] sm:$0xff] %v5659_v37  ;;  %v5678_v33 = vld [vmem:[%s4298_s25 + $0x140] sm:$0xff] }
 0x29b   : > { %2128 = vperm.xlu1 %3963, %v5662_v26   ;;  %2140 = vperm.xlu0 %3964, %v5666_v31  }
 0x29d   : > { %v5669_v35 = vpop.permute.xlu1 %1598  ;;  %v5671_v39 = vpop.permute.xlu0 %1602 }
 0x29e   : > { %8142 = vst [vmem:[#allocation261_spill] sm:$0xff] %v5669_v35  ;;  %8143 = vst [vmem:[#allocation262_spill] sm:$0xff] %v5671_v39  ;;  %v5690_v35 = vld [vmem:[%s4298_s25 + $0x150] sm:$0xff] }
 0x29f   : > { %2136 = vperm.xlu1 %3963, %v5674_v28   ;;  %2148 = vperm.xlu0 %3964, %v5678_v33  }
 0x2a1   : > { %v5681_v37 = vpop.permute.xlu1 %1606  ;;  %v5683_v41 = vpop.permute.xlu0 %1610 }
 0x2a2   : > { %8144 = vst [vmem:[#allocation263_spill] sm:$0xff] %v5681_v37  ;;  %8145 = vst [vmem:[#allocation264_spill] sm:$0xff] %v5683_v41  ;;  %v5702_v37 = vld [vmem:[%s4298_s25 + $0x160] sm:$0xff] }
 0x2a3   : > { %2144 = vperm.xlu1 %3963, %v5686_v30   ;;  %2156 = vperm.xlu0 %3964, %v5690_v35  }
 0x2a5   : > { %v5693_v39 = vpop.permute.xlu1 %1614  ;;  %v5695_v43 = vpop.permute.xlu0 %1618 }
 0x2a6   : > { %8146 = vst [vmem:[#allocation265_spill] sm:$0xff] %v5693_v39  ;;  %8147 = vst [vmem:[#allocation266_spill] sm:$0xff] %v5695_v43  ;;  %v5714_v39 = vld [vmem:[%s4298_s25 + $0x170] sm:$0xff] }
 0x2a7   : > { %2152 = vperm.xlu1 %3963, %v5698_v32   ;;  %2164 = vperm.xlu0 %3964, %v5702_v37  }
 0x2a9   : > { %v5705_v41 = vpop.permute.xlu1 %1622  ;;  %v5707_v45 = vpop.permute.xlu0 %1626 }
 0x2aa   : > { %8148 = vst [vmem:[#allocation267_spill] sm:$0xff] %v5705_v41  ;;  %8149 = vst [vmem:[#allocation268_spill] sm:$0xff] %v5707_v45  ;;  %v5726_v41 = vld [vmem:[%s4298_s25 + $0x180] sm:$0xff] }
 0x2ab   : > { %2160 = vperm.xlu1 %3963, %v5710_v34   ;;  %2172 = vperm.xlu0 %3964, %v5714_v39  }
 0x2ad   : > { %v5717_v43 = vpop.permute.xlu1 %1630  ;;  %v5719_v51 = vpop.permute.xlu0 %1634 }
 0x2ae   : > { %8150 = vst [vmem:[#allocation269_spill] sm:$0xff] %v5717_v43  ;;  %8151 = vst [vmem:[#allocation270_spill] sm:$0xff] %v5719_v51  ;;  %v5738_v43 = vld [vmem:[%s4298_s25 + $0x190] sm:$0xff] }
 0x2af   : > { %2168 = vperm.xlu1 %3963, %v5722_v36   ;;  %2180 = vperm.xlu0 %3964, %v5726_v41  }
 0x2b1   : > { %v5729_v45 = vpop.permute.xlu1 %1638  ;;  %v5731_v49 = vpop.permute.xlu0 %1642 }
 0x2b2   : > { %8152 = vst [vmem:[#allocation271_spill] sm:$0xff] %v5729_v45  ;;  %8153 = vst [vmem:[#allocation272_spill] sm:$0xff] %v5731_v49  ;;  %v5750_v45 = vld [vmem:[%s4298_s25 + $0x1a0] sm:$0xff] }
 0x2b3   : > { %2176 = vperm.xlu1 %3963, %v5734_v38   ;;  %2188 = vperm.xlu0 %3964, %v5738_v43  }
 0x2b5   : > { %v5741_v51 = vpop.permute.xlu1 %1646  ;;  %v5743_v47 = vpop.permute.xlu0 %1650 }
 0x2b6   : > { %8154 = vst [vmem:[#allocation273_spill] sm:$0xff] %v5741_v51  ;;  %8155 = vst [vmem:[#allocation274_spill] sm:$0xff] %v5743_v47  ;;  %v5762_v51 = vld [vmem:[%s4298_s25 + $0x1b0] sm:$0xff] }
 0x2b7   : > { %2184 = vperm.xlu1 %3963, %v5746_v40   ;;  %2196 = vperm.xlu0 %3964, %v5750_v45  }
 0x2b9   : > { %v5753_v49 = vpop.permute.xlu1 %1654  ;;  %v5755_v44 = vpop.permute.xlu0 %1658 }
 0x2ba   : > { %8156 = vst [vmem:[#allocation275_spill] sm:$0xff] %v5753_v49  ;;  %8157 = vst [vmem:[#allocation276_spill] sm:$0xff] %v5755_v44  ;;  %v5774_v49 = vld [vmem:[%s4298_s25 + $0x1c0] sm:$0xff] }
 0x2bb   : > { %2192 = vperm.xlu1 %3963, %v5758_v42   ;;  %2204 = vperm.xlu0 %3964, %v5762_v51   ;;  %8162 = vst [vmem:[#allocation281_spill] sm:$0xff] %v5774_v49 }
 0x2bd   : > { %v5765_v47 = vpop.permute.xlu1 %1662  ;;  %v5767_v50 = vpop.permute.xlu0 %1666 }
 0x2be   : > { %8159 = vst [vmem:[#allocation278_spill] sm:$0xff] %v5765_v47  ;;  %8160 = vst [vmem:[#allocation279_spill] sm:$0xff] %v5767_v50  ;;  %v5786_v47 = vld [vmem:[%s4298_s25 + $0x1d0] sm:$0xff] }
 0x2bf   : > { %2200 = vperm.xlu1 %3963, %v5770_v52   ;;  %2212 = vperm.xlu0 %3964, %v5774_v49   ;;  %8166 = vst [vmem:[#allocation285_spill] sm:$0xff] %v5786_v47  ;;  %v4060_v52 = vld [vmem:[%s4298_s25 + $0x2f0] sm:$0xff] }
 0x2c1   : > { %v5777_v44 = vpop.permute.xlu1 %1670  ;;  %v5779_v48 = vpop.permute.xlu0 %1674 }
 0x2c2   : > { %8163 = vst [vmem:[#allocation282_spill] sm:$0xff] %v5777_v44  ;;  %8164 = vst [vmem:[#allocation283_spill] sm:$0xff] %v5779_v48  ;;  %v5798_v44 = vld [vmem:[%s4298_s25 + $0x1e0] sm:$0xff] }
 0x2c3   : > { %2208 = vperm.xlu1 %3963, %v5782_v53   ;;  %2220 = vperm.xlu0 %3964, %v5786_v47   ;;  %8170 = vst [vmem:[#allocation289_spill] sm:$0xff] %v5798_v44  ;;  %v5806_v53 = vld [vmem:[%s4298_s25 + $0x1d8] sm:$0xff]  ;;  %v4057_v47 = vld [vmem:[%s4298_s25 + $0x2c8] sm:$0xff] }
 0x2c4   : > { %8173 = vst [vmem:[#allocation292_spill] sm:$0xff] %v5806_v53 }
 0x2c5   : > { %v5789_v50 = vpop.permute.xlu1 %1678  ;;  %v5791_v46 = vpop.permute.xlu0 %1682 }
 0x2c6   : > { %8167 = vst [vmem:[#allocation286_spill] sm:$0xff] %v5789_v50  ;;  %8168 = vst [vmem:[#allocation287_spill] sm:$0xff] %v5791_v46  ;;  %v5810_v50 = vld [vmem:[%s4298_s25 + $0x1f0] sm:$0xff] }
 0x2c7   : > { %2216 = vperm.xlu1 %3963, %v5794_v54   ;;  %2228 = vperm.xlu0 %3964, %v5798_v44   ;;  %8174 = vst [vmem:[#allocation293_spill] sm:$0xff] %v5810_v50  ;;  %v5818_v44 = vld [vmem:[%s4298_s25 + $0x1e8] sm:$0xff] }
 0x2c8   : > { %8177 = vst [vmem:[#allocation296_spill] sm:$0xff] %v5818_v44 }
 0x2c9   : > { %v5801_v48 = vpop.permute.xlu1 %1686  ;;  %v5803_v56 = vpop.permute.xlu0 %1690 }
 0x2ca   : > { %8171 = vst [vmem:[#allocation290_spill] sm:$0xff] %v5801_v48  ;;  %8172 = vst [vmem:[#allocation291_spill] sm:$0xff] %v5803_v56  ;;  %v5822_v48 = vld [vmem:[%s4298_s25 + $0x200] sm:$0xff] }
 0x2cb   : > { %2224 = vperm.xlu1 %3963, %v5806_v53   ;;  %2236 = vperm.xlu0 %3964, %v5810_v50   ;;  %8178 = vst [vmem:[#allocation297_spill] sm:$0xff] %v5822_v48  ;;  %v5830_v50 = vld [vmem:[%s4298_s25 + $0x1f8] sm:$0xff] }
 0x2cc   : > { %8181 = vst [vmem:[#allocation300_spill] sm:$0xff] %v5830_v50 }
 0x2cd   : > { %v5813_v46 = vpop.permute.xlu1 %1694  ;;  %v5815_v54 = vpop.permute.xlu0 %1698 }
 0x2ce   : > { %8175 = vst [vmem:[#allocation294_spill] sm:$0xff] %v5813_v46  ;;  %8176 = vst [vmem:[#allocation295_spill] sm:$0xff] %v5815_v54  ;;  %v5834_v46 = vld [vmem:[%s4298_s25 + $0x210] sm:$0xff] }
 0x2cf   : > { %2232 = vperm.xlu1 %3963, %v5818_v44   ;;  %2244 = vperm.xlu0 %3964, %v5822_v48   ;;  %8182 = vst [vmem:[#allocation301_spill] sm:$0xff] %v5834_v46  ;;  %v5842_v48 = vld [vmem:[%s4298_s25 + $0x208] sm:$0xff] }
 0x2d0   : > { %8185 = vst [vmem:[#allocation304_spill] sm:$0xff] %v5842_v48 }
 0x2d2   : > { %v5825_v56 = vpop.permute.xlu1 %1988  ;;  %v5827_v53 = vpop.permute.xlu0 %1992 }
 0x2d3   : > { %8179 = vst [vmem:[#allocation298_spill] sm:$0xff] %v5825_v56  ;;  %8180 = vst [vmem:[#allocation299_spill] sm:$0xff] %v5827_v53  ;;  %2240 = vperm.xlu1 %3963, %v5830_v50   ;;  %2252 = vperm.xlu0 %3964, %v5834_v46   ;;  %v5846_v56 = vld [vmem:[%s4298_s25 + $0x220] sm:$0xff]  ;;  %v5854_v46 = vld [vmem:[%s4298_s25 + $0x218] sm:$0xff] }
 0x2d4   : > { %8186 = vst [vmem:[#allocation305_spill] sm:$0xff] %v5846_v56  ;;  %8189 = vst [vmem:[#allocation308_spill] sm:$0xff] %v5854_v46 }
 0x2d6   : > { %v5837_v54 = vpop.permute.xlu1 %1996  ;;  %v5839_v44 = vpop.permute.xlu0 %2004 }
 0x2d7   : > { %8183 = vst [vmem:[#allocation302_spill] sm:$0xff] %v5837_v54  ;;  %8184 = vst [vmem:[#allocation303_spill] sm:$0xff] %v5839_v44  ;;  %2248 = vperm.xlu1 %3963, %v5842_v48   ;;  %2260 = vperm.xlu0 %3964, %v5846_v56   ;;  %v5858_v54 = vld [vmem:[%s4298_s25 + $0x230] sm:$0xff]  ;;  %v5866_v56 = vld [vmem:[%s4298_s25 + $0x228] sm:$0xff] }
 0x2d8   : > { %8190 = vst [vmem:[#allocation309_spill] sm:$0xff] %v5858_v54  ;;  %8193 = vst [vmem:[#allocation312_spill] sm:$0xff] %v5866_v56 }
 0x2da   : > { %v5849_v50 = vpop.permute.xlu1 %2000  ;;  %v5851_v53 = vpop.permute.xlu0 %2012 }
 0x2db   : > { %8187 = vst [vmem:[#allocation306_spill] sm:$0xff] %v5849_v50  ;;  %8188 = vst [vmem:[#allocation307_spill] sm:$0xff] %v5851_v53  ;;  %2256 = vperm.xlu1 %3963, %v5854_v46   ;;  %2268 = vperm.xlu0 %3964, %v5858_v54   ;;  %v5870_v50 = vld [vmem:[%s4298_s25 + $0x240] sm:$0xff]  ;;  %v5878_v54 = vld [vmem:[%s4298_s25 + $0x238] sm:$0xff] }
 0x2dc   : > { %8194 = vst [vmem:[#allocation313_spill] sm:$0xff] %v5870_v50  ;;  %8197 = vst [vmem:[#allocation316_spill] sm:$0xff] %v5878_v54 }
 0x2de   : > { %v5861_v48 = vpop.permute.xlu1 %2008  ;;  %v5863_v44 = vpop.permute.xlu0 %2020 }
 0x2df   : > { %8191 = vst [vmem:[#allocation310_spill] sm:$0xff] %v5861_v48  ;;  %8192 = vst [vmem:[#allocation311_spill] sm:$0xff] %v5863_v44  ;;  %2264 = vperm.xlu1 %3963, %v5866_v56   ;;  %2276 = vperm.xlu0 %3964, %v5870_v50   ;;  %v5882_v48 = vld [vmem:[%s4298_s25 + $0x250] sm:$0xff]  ;;  %v5890_v50 = vld [vmem:[%s4298_s25 + $0x248] sm:$0xff] }
 0x2e0   : > { %8198 = vst [vmem:[#allocation317_spill] sm:$0xff] %v5882_v48  ;;  %8201 = vst [vmem:[#allocation320_spill] sm:$0xff] %v5890_v50 }
 0x2e2   : > { %v5873_v46 = vpop.permute.xlu1 %2016  ;;  %v5875_v53 = vpop.permute.xlu0 %2028 }
 0x2e3   : > { %8195 = vst [vmem:[#allocation314_spill] sm:$0xff] %v5873_v46  ;;  %8196 = vst [vmem:[#allocation315_spill] sm:$0xff] %v5875_v53  ;;  %2272 = vperm.xlu1 %3963, %v5878_v54   ;;  %2284 = vperm.xlu0 %3964, %v5882_v48   ;;  %v5894_v46 = vld [vmem:[%s4298_s25 + $0x260] sm:$0xff]  ;;  %v5902_v48 = vld [vmem:[%s4298_s25 + $0x258] sm:$0xff] }
 0x2e4   : > { %8202 = vst [vmem:[#allocation321_spill] sm:$0xff] %v5894_v46  ;;  %8205 = vst [vmem:[#allocation324_spill] sm:$0xff] %v5902_v48 }
 0x2e6   : > { %v5885_v56 = vpop.permute.xlu1 %2024  ;;  %v5887_v44 = vpop.permute.xlu0 %2036 }
 0x2e7   : > { %8199 = vst [vmem:[#allocation318_spill] sm:$0xff] %v5885_v56  ;;  %8200 = vst [vmem:[#allocation319_spill] sm:$0xff] %v5887_v44  ;;  %2280 = vperm.xlu1 %3963, %v5890_v50   ;;  %2292 = vperm.xlu0 %3964, %v5894_v46   ;;  %v5906_v56 = vld [vmem:[%s4298_s25 + $0x270] sm:$0xff]  ;;  %v5914_v46 = vld [vmem:[%s4298_s25 + $0x268] sm:$0xff] }
 0x2e8   : > { %8206 = vst [vmem:[#allocation325_spill] sm:$0xff] %v5906_v56  ;;  %8209 = vst [vmem:[#allocation328_spill] sm:$0xff] %v5914_v46 }
 0x2ea   : > { %v5897_v54 = vpop.permute.xlu1 %2032  ;;  %v5899_v53 = vpop.permute.xlu0 %2044 }
 0x2eb   : > { %8203 = vst [vmem:[#allocation322_spill] sm:$0xff] %v5897_v54  ;;  %8204 = vst [vmem:[#allocation323_spill] sm:$0xff] %v5899_v53  ;;  %2288 = vperm.xlu1 %3963, %v5902_v48   ;;  %2300 = vperm.xlu0 %3964, %v5906_v56   ;;  %v5918_v54 = vld [vmem:[%s4298_s25 + $0x280] sm:$0xff]  ;;  %v5926_v56 = vld [vmem:[%s4298_s25 + $0x278] sm:$0xff] }
 0x2ec   : > { %8210 = vst [vmem:[#allocation329_spill] sm:$0xff] %v5918_v54  ;;  %8213 = vst [vmem:[#allocation332_spill] sm:$0xff] %v5926_v56 }
 0x2ee   : > { %v5909_v50 = vpop.permute.xlu1 %2040  ;;  %v5911_v44 = vpop.permute.xlu0 %2052 }
 0x2ef   : > { %8207 = vst [vmem:[#allocation326_spill] sm:$0xff] %v5909_v50  ;;  %8208 = vst [vmem:[#allocation327_spill] sm:$0xff] %v5911_v44  ;;  %2296 = vperm.xlu1 %3963, %v5914_v46   ;;  %2308 = vperm.xlu0 %3964, %v5918_v54   ;;  %v5930_v50 = vld [vmem:[%s4298_s25 + $0x290] sm:$0xff]  ;;  %v5938_v54 = vld [vmem:[%s4298_s25 + $0x288] sm:$0xff] }
 0x2f0   : > { %8214 = vst [vmem:[#allocation333_spill] sm:$0xff] %v5930_v50  ;;  %8217 = vst [vmem:[#allocation336_spill] sm:$0xff] %v5938_v54 }
 0x2f2   : > { %v5921_v48 = vpop.permute.xlu1 %2048  ;;  %v5923_v53 = vpop.permute.xlu0 %2060 }
 0x2f3   : > { %8211 = vst [vmem:[#allocation330_spill] sm:$0xff] %v5921_v48  ;;  %8212 = vst [vmem:[#allocation331_spill] sm:$0xff] %v5923_v53  ;;  %2304 = vperm.xlu1 %3963, %v5926_v56   ;;  %2316 = vperm.xlu0 %3964, %v5930_v50   ;;  %v5942_v48 = vld [vmem:[%s4298_s25 + $0x2a0] sm:$0xff]  ;;  %v5950_v50 = vld [vmem:[%s4298_s25 + $0x298] sm:$0xff] }
 0x2f4   : > { %8218 = vst [vmem:[#allocation337_spill] sm:$0xff] %v5942_v48  ;;  %8221 = vst [vmem:[#allocation340_spill] sm:$0xff] %v5950_v50 }
 0x2f6   : > { %v5933_v46 = vpop.permute.xlu1 %2056  ;;  %v5935_v44 = vpop.permute.xlu0 %2068 }
 0x2f7   : > { %8215 = vst [vmem:[#allocation334_spill] sm:$0xff] %v5933_v46  ;;  %8216 = vst [vmem:[#allocation335_spill] sm:$0xff] %v5935_v44  ;;  %2312 = vperm.xlu1 %3963, %v5938_v54   ;;  %2324 = vperm.xlu0 %3964, %v5942_v48   ;;  %v5954_v46 = vld [vmem:[%s4298_s25 + $0x2b0] sm:$0xff]  ;;  %v5962_v48 = vld [vmem:[%s4298_s25 + $0x2a8] sm:$0xff] }
 0x2f8   : > { %8222 = vst [vmem:[#allocation341_spill] sm:$0xff] %v5954_v46  ;;  %8225 = vst [vmem:[#allocation344_spill] sm:$0xff] %v5962_v48 }
 0x2fa   : > { %v5945_v56 = vpop.permute.xlu1 %2064  ;;  %v5947_v53 = vpop.permute.xlu0 %2076 }
 0x2fb   : > { %8219 = vst [vmem:[#allocation338_spill] sm:$0xff] %v5945_v56  ;;  %8220 = vst [vmem:[#allocation339_spill] sm:$0xff] %v5947_v53  ;;  %2320 = vperm.xlu1 %3963, %v5950_v50   ;;  %2332 = vperm.xlu0 %3964, %v5954_v46   ;;  %v5966_v56 = vld [vmem:[%s4298_s25 + $0x2c0] sm:$0xff]  ;;  %v4055_v46 = vld [vmem:[%s4298_s25 + $0x2b8] sm:$0xff] }
 0x2fc   : > { %8226 = vst [vmem:[#allocation345_spill] sm:$0xff] %v5966_v56 }
 0x2fe   : > { %v5957_v54 = vpop.permute.xlu1 %2072  ;;  %v5959_v44 = vpop.permute.xlu0 %2084 }
 0x2ff   : > { %8223 = vst [vmem:[#allocation342_spill] sm:$0xff] %v5957_v54  ;;  %8224 = vst [vmem:[#allocation343_spill] sm:$0xff] %v5959_v44  ;;  %2328 = vperm.xlu1 %3963, %v5962_v48   ;;  %2340 = vperm.xlu0 %3964, %v5966_v56   ;;  %v5975_v54 = vld [vmem:[%s4298_s25 + $0x2d0] sm:$0xff]  ;;  %v4058_v56 = vld [vmem:[%s4298_s25 + $0x2e0] sm:$0xff] }
 0x300   : > { %8229 = vst [vmem:[#allocation348_spill] sm:$0xff] %v5975_v54 }
 0x302   : > { %v5969_v50 = vpop.permute.xlu1 %2080  ;;  %v5971_v53 = vpop.permute.xlu0 %2092 }
 0x303   : > { %8227 = vst [vmem:[#allocation346_spill] sm:$0xff] %v5969_v50  ;;  %8228 = vst [vmem:[#allocation347_spill] sm:$0xff] %v5971_v53  ;;  %2336 = vperm.xlu1 %3963, %v4055_v46   ;;  %2348 = vperm.xlu0 %3964, %v5975_v54   ;;  %v4059_v46 = vld [vmem:[%s4298_s25 + $0x2d8] sm:$0xff] }
 0x306   : > { %v5978_v44 = vpop.permute.xlu1 %2088  ;;  %v5980_v48 = vpop.permute.xlu0 %2100 }
 0x307   : > { %8230 = vst [vmem:[#allocation349_spill] sm:$0xff] %v5978_v44  ;;  %8231 = vst [vmem:[#allocation350_spill] sm:$0xff] %v5980_v48  ;;  %2344 = vperm.xlu1 %3963, %v4057_v47   ;;  %2356 = vperm.xlu0 %3964, %v4058_v56   ;;  %v4061_v48 = vld [vmem:[%s4298_s25 + $0x2e8] sm:$0xff]  ;;  %v4062_v47 = vld [vmem:[%s4298_s25 + $0x300] sm:$0xff] }
 0x30a   : > { %v5984_v50 = vpop.permute.xlu1 %2096  ;;  %v5986_v53 = vpop.permute.xlu0 %2108 }
 0x30b   : > { %8232 = vst [vmem:[#allocation351_spill] sm:$0xff] %v5984_v50  ;;  %8233 = vst [vmem:[#allocation352_spill] sm:$0xff] %v5986_v53  ;;  %2352 = vperm.xlu1 %3963, %v4059_v46   ;;  %2364 = vperm.xlu0 %3964, %v4060_v52   ;;  %v4063_v53 = vld [vmem:[%s4298_s25 + $0x2f8] sm:$0xff]  ;;  %v4064_v46 = vld [vmem:[%s4298_s25 + $0x310] sm:$0xff] }
 0x30e   : > { %v5990_v54 = vpop.permute.xlu1 %2104  ;;  %v5992_v44 = vpop.permute.xlu0 %2116 }
 0x30f   : > { %8234 = vst [vmem:[#allocation353_spill] sm:$0xff] %v5990_v54  ;;  %8235 = vst [vmem:[#allocation354_spill] sm:$0xff] %v5992_v44  ;;  %2360 = vperm.xlu1 %3963, %v4061_v48   ;;  %2372 = vperm.xlu0 %3964, %v4062_v47   ;;  %v4065_v44 = vld [vmem:[%s4298_s25 + $0x308] sm:$0xff]  ;;  %v4066_v48 = vld [vmem:[%s4298_s25 + $0x320] sm:$0xff] }
 0x312   : > { %v5996_v56 = vpop.permute.xlu1 %2112  ;;  %v5998_v50 = vpop.permute.xlu0 %2124 }
 0x313   : > { %8236 = vst [vmem:[#allocation355_spill] sm:$0xff] %v5996_v56  ;;  %8237 = vst [vmem:[#allocation356_spill] sm:$0xff] %v5998_v50  ;;  %2368 = vperm.xlu1 %3963, %v4063_v53   ;;  %2380 = vperm.xlu0 %3964, %v4064_v46   ;;  %v4067_v50 = vld [vmem:[%s4298_s25 + $0x318] sm:$0xff]  ;;  %v4068_v53 = vld [vmem:[%s4298_s25 + $0x330] sm:$0xff] }
 0x316   : > { %v6002_v52 = vpop.permute.xlu1 %2120  ;;  %v6004_v54 = vpop.permute.xlu0 %2132 }
 0x317   : > { %8238 = vst [vmem:[#allocation357_spill] sm:$0xff] %v6002_v52  ;;  %8239 = vst [vmem:[#allocation358_spill] sm:$0xff] %v6004_v54  ;;  %2376 = vperm.xlu1 %3963, %v4065_v44   ;;  %2388 = vperm.xlu0 %3964, %v4066_v48   ;;  %v4069_v54 = vld [vmem:[%s4298_s25 + $0x328] sm:$0xff]  ;;  %v4070_v44 = vld [vmem:[%s4298_s25 + $0x340] sm:$0xff] }
 0x31a   : > { %v6008_v47 = vpop.permute.xlu1 %2128  ;;  %v6010_v56 = vpop.permute.xlu0 %2140 }
 0x31b   : > { %8240 = vst [vmem:[#allocation359_spill] sm:$0xff] %v6008_v47  ;;  %8241 = vst [vmem:[#allocation360_spill] sm:$0xff] %v6010_v56  ;;  %2384 = vperm.xlu1 %3963, %v4067_v50   ;;  %2396 = vperm.xlu0 %3964, %v4068_v53   ;;  %v4071_v56 = vld [vmem:[%s4298_s25 + $0x338] sm:$0xff]  ;;  %v4072_v50 = vld [vmem:[%s4298_s25 + $0x350] sm:$0xff] }
 0x31e   : > { %v6014_v46 = vpop.permute.xlu1 %2136  ;;  %v6016_v52 = vpop.permute.xlu0 %2148 }
 0x31f   : > { %8242 = vst [vmem:[#allocation361_spill] sm:$0xff] %v6014_v46  ;;  %8243 = vst [vmem:[#allocation362_spill] sm:$0xff] %v6016_v52  ;;  %2392 = vperm.xlu1 %3963, %v4069_v54   ;;  %2404 = vperm.xlu0 %3964, %v4070_v44   ;;  %v4073_v52 = vld [vmem:[%s4298_s25 + $0x348] sm:$0xff]  ;;  %v4074_v54 = vld [vmem:[%s4298_s25 + $0x360] sm:$0xff] }
 0x322   : > { %v6020_v48 = vpop.permute.xlu1 %2144  ;;  %v6022_v47 = vpop.permute.xlu0 %2156 }
 0x323   : > { %8244 = vst [vmem:[#allocation363_spill] sm:$0xff] %v6020_v48  ;;  %8245 = vst [vmem:[#allocation364_spill] sm:$0xff] %v6022_v47  ;;  %2400 = vperm.xlu1 %3963, %v4071_v56   ;;  %2412 = vperm.xlu0 %3964, %v4072_v50   ;;  %v4075_v47 = vld [vmem:[%s4298_s25 + $0x358] sm:$0xff]  ;;  %v4076_v56 = vld [vmem:[%s4298_s25 + $0x370] sm:$0xff] }
 0x326   : > { %v6026_v53 = vpop.permute.xlu1 %2152  ;;  %v6028_v46 = vpop.permute.xlu0 %2164 }
 0x327   : > { %8246 = vst [vmem:[#allocation365_spill] sm:$0xff] %v6026_v53  ;;  %8247 = vst [vmem:[#allocation366_spill] sm:$0xff] %v6028_v46  ;;  %2408 = vperm.xlu1 %3963, %v4073_v52   ;;  %2420 = vperm.xlu0 %3964, %v4074_v54   ;;  %v4077_v46 = vld [vmem:[%s4298_s25 + $0x368] sm:$0xff]  ;;  %v4078_v52 = vld [vmem:[%s4298_s25 + $0x380] sm:$0xff] }
 0x32a   : > { %v6032_v44 = vpop.permute.xlu1 %2160  ;;  %v6034_v48 = vpop.permute.xlu0 %2172 }
 0x32b   : > { %8248 = vst [vmem:[#allocation367_spill] sm:$0xff] %v6032_v44  ;;  %8249 = vst [vmem:[#allocation368_spill] sm:$0xff] %v6034_v48  ;;  %2416 = vperm.xlu1 %3963, %v4075_v47   ;;  %2428 = vperm.xlu0 %3964, %v4076_v56   ;;  %v4079_v48 = vld [vmem:[%s4298_s25 + $0x378] sm:$0xff]  ;;  %v4080_v47 = vld [vmem:[%s4298_s25 + $0x390] sm:$0xff] }
 0x32e   : > { %v6038_v50 = vpop.permute.xlu1 %2168  ;;  %v6040_v53 = vpop.permute.xlu0 %2180 }
 0x32f   : > { %8250 = vst [vmem:[#allocation369_spill] sm:$0xff] %v6038_v50  ;;  %8251 = vst [vmem:[#allocation370_spill] sm:$0xff] %v6040_v53  ;;  %2424 = vperm.xlu1 %3963, %v4077_v46   ;;  %2436 = vperm.xlu0 %3964, %v4078_v52   ;;  %v4081_v53 = vld [vmem:[%s4298_s25 + $0x388] sm:$0xff]  ;;  %v4082_v46 = vld [vmem:[%s4298_s25 + $0x3a0] sm:$0xff] }
 0x332   : > { %v6044_v54 = vpop.permute.xlu1 %2176  ;;  %v6046_v44 = vpop.permute.xlu0 %2188 }
 0x333   : > { %8252 = vst [vmem:[#allocation371_spill] sm:$0xff] %v6044_v54  ;;  %8253 = vst [vmem:[#allocation372_spill] sm:$0xff] %v6046_v44  ;;  %2432 = vperm.xlu1 %3963, %v4079_v48   ;;  %2444 = vperm.xlu0 %3964, %v4080_v47   ;;  %v4083_v44 = vld [vmem:[%s4298_s25 + $0x398] sm:$0xff]  ;;  %v4084_v48 = vld [vmem:[%s4298_s25 + $0x3b0] sm:$0xff] }
 0x336   : > { %v6050_v56 = vpop.permute.xlu1 %2184  ;;  %v6052_v50 = vpop.permute.xlu0 %2196 }
 0x337   : > { %8254 = vst [vmem:[#allocation373_spill] sm:$0xff] %v6050_v56  ;;  %8255 = vst [vmem:[#allocation374_spill] sm:$0xff] %v6052_v50  ;;  %2440 = vperm.xlu1 %3963, %v4081_v53   ;;  %2452 = vperm.xlu0 %3964, %v4082_v46   ;;  %v4085_v50 = vld [vmem:[%s4298_s25 + $0x3a8] sm:$0xff]  ;;  %v4086_v53 = vld [vmem:[%s4298_s25 + $0x3c0] sm:$0xff] }
 0x33a   : > { %v6056_v52 = vpop.permute.xlu1 %2192  ;;  %v6058_v54 = vpop.permute.xlu0 %2204 }
 0x33b   : > { %8256 = vst [vmem:[#allocation375_spill] sm:$0xff] %v6056_v52  ;;  %8257 = vst [vmem:[#allocation376_spill] sm:$0xff] %v6058_v54  ;;  %2448 = vperm.xlu1 %3963, %v4083_v44   ;;  %2460 = vperm.xlu0 %3964, %v4084_v48   ;;  %v4087_v54 = vld [vmem:[%s4298_s25 + $0x3b8] sm:$0xff]  ;;  %v4088_v44 = vld [vmem:[%s4298_s25 + $0x3d0] sm:$0xff] }
 0x33e   : > { %v6062_v47 = vpop.permute.xlu1 %2200  ;;  %v6064_v56 = vpop.permute.xlu0 %2212 }
 0x33f   : > { %8258 = vst [vmem:[#allocation377_spill] sm:$0xff] %v6062_v47  ;;  %8259 = vst [vmem:[#allocation378_spill] sm:$0xff] %v6064_v56  ;;  %2456 = vperm.xlu1 %3963, %v4085_v50   ;;  %2468 = vperm.xlu0 %3964, %v4086_v53   ;;  %v4089_v56 = vld [vmem:[%s4298_s25 + $0x3c8] sm:$0xff]  ;;  %v4090_v50 = vld [vmem:[%s4298_s25 + $0x3e0] sm:$0xff] }
 0x342   : > { %v6068_v46 = vpop.permute.xlu1 %2208  ;;  %v6070_v52 = vpop.permute.xlu0 %2220 }
 0x343   : > { %8260 = vst [vmem:[#allocation379_spill] sm:$0xff] %v6068_v46  ;;  %8261 = vst [vmem:[#allocation380_spill] sm:$0xff] %v6070_v52  ;;  %2464 = vperm.xlu1 %3963, %v4087_v54   ;;  %2476 = vperm.xlu0 %3964, %v4088_v44   ;;  %v4091_v52 = vld [vmem:[%s4298_s25 + $0x3d8] sm:$0xff]  ;;  %v4092_v54 = vld [vmem:[%s4298_s25 + $0x3f0] sm:$0xff] }
 0x346   : > { %v6074_v48 = vpop.permute.xlu1 %2216  ;;  %v6076_v47 = vpop.permute.xlu0 %2228 }
 0x347   : > { %8262 = vst [vmem:[#allocation381_spill] sm:$0xff] %v6074_v48  ;;  %8263 = vst [vmem:[#allocation382_spill] sm:$0xff] %v6076_v47  ;;  %2472 = vperm.xlu1 %3963, %v4089_v56   ;;  %2484 = vperm.xlu0 %3964, %v4090_v50   ;;  %v4093_v47 = vld [vmem:[%s4298_s25 + $0x3e8] sm:$0xff]  ;;  %v4094_v56 = vld [vmem:[%s4298_s25 + $0x400] sm:$0xff] }
 0x34a   : > { %v6080_v53 = vpop.permute.xlu1 %2224  ;;  %v6082_v46 = vpop.permute.xlu0 %2236 }
 0x34b   : > { %8264 = vst [vmem:[#allocation383_spill] sm:$0xff] %v6080_v53  ;;  %8265 = vst [vmem:[#allocation384_spill] sm:$0xff] %v6082_v46  ;;  %2480 = vperm.xlu1 %3963, %v4091_v52   ;;  %2492 = vperm.xlu0 %3964, %v4092_v54   ;;  %v4095_v46 = vld [vmem:[%s4298_s25 + $0x3f8] sm:$0xff]  ;;  %v4096_v52 = vld [vmem:[%s4298_s25 + $0x410] sm:$0xff] }
 0x34e   : > { %v6086_v44 = vpop.permute.xlu1 %2232  ;;  %v6088_v48 = vpop.permute.xlu0 %2244 }
 0x34f   : > { %8266 = vst [vmem:[#allocation385_spill] sm:$0xff] %v6086_v44  ;;  %8267 = vst [vmem:[#allocation386_spill] sm:$0xff] %v6088_v48  ;;  %2488 = vperm.xlu1 %3963, %v4093_v47   ;;  %2500 = vperm.xlu0 %3964, %v4094_v56   ;;  %v4097_v48 = vld [vmem:[%s4298_s25 + $0x408] sm:$0xff]  ;;  %v4098_v47 = vld [vmem:[%s4298_s25 + $0x420] sm:$0xff] }
 0x352   : > { %v6092_v50 = vpop.permute.xlu1 %2240  ;;  %v6094_v53 = vpop.permute.xlu0 %2252 }
 0x353   : > { %8268 = vst [vmem:[#allocation387_spill] sm:$0xff] %v6092_v50  ;;  %8269 = vst [vmem:[#allocation388_spill] sm:$0xff] %v6094_v53  ;;  %2496 = vperm.xlu1 %3963, %v4095_v46   ;;  %2508 = vperm.xlu0 %3964, %v4096_v52   ;;  %v4099_v53 = vld [vmem:[%s4298_s25 + $0x418] sm:$0xff]  ;;  %v4100_v46 = vld [vmem:[%s4298_s25 + $0x430] sm:$0xff] }
 0x356   : > { %v6098_v54 = vpop.permute.xlu1 %2248  ;;  %v6100_v44 = vpop.permute.xlu0 %2260 }
 0x357   : > { %8270 = vst [vmem:[#allocation389_spill] sm:$0xff] %v6098_v54  ;;  %8271 = vst [vmem:[#allocation390_spill] sm:$0xff] %v6100_v44  ;;  %2504 = vperm.xlu1 %3963, %v4097_v48   ;;  %2516 = vperm.xlu0 %3964, %v4098_v47   ;;  %v4101_v44 = vld [vmem:[%s4298_s25 + $0x428] sm:$0xff]  ;;  %v4102_v48 = vld [vmem:[%s4298_s25 + $0x440] sm:$0xff] }
 0x35a   : > { %v6104_v56 = vpop.permute.xlu1 %2256  ;;  %v6106_v50 = vpop.permute.xlu0 %2268 }
 0x35b   : > { %8272 = vst [vmem:[#allocation391_spill] sm:$0xff] %v6104_v56  ;;  %8273 = vst [vmem:[#allocation392_spill] sm:$0xff] %v6106_v50  ;;  %2512 = vperm.xlu1 %3963, %v4099_v53   ;;  %2524 = vperm.xlu0 %3964, %v4100_v46   ;;  %v4103_v50 = vld [vmem:[%s4298_s25 + $0x438] sm:$0xff]  ;;  %v4104_v53 = vld [vmem:[%s4298_s25 + $0x450] sm:$0xff] }
 0x35e   : > { %v6110_v52 = vpop.permute.xlu1 %2264  ;;  %v6112_v54 = vpop.permute.xlu0 %2276 }
 0x35f   : > { %8274 = vst [vmem:[#allocation393_spill] sm:$0xff] %v6110_v52  ;;  %8275 = vst [vmem:[#allocation394_spill] sm:$0xff] %v6112_v54  ;;  %2520 = vperm.xlu1 %3963, %v4101_v44   ;;  %2532 = vperm.xlu0 %3964, %v4102_v48   ;;  %v4105_v52 = vld [vmem:[%s4298_s25 + $0x448] sm:$0xff]  ;;  %v4106_v54 = vld [vmem:[%s4298_s25 + $0x460] sm:$0xff] }
 0x360   : > { %v4107_v48 = vld [vmem:[%s4298_s25 + $0x458] sm:$0xff] }
 0x362   : > { %v6116_v47 = vpop.permute.xlu1 %2272  ;;  %v6118_v56 = vpop.permute.xlu0 %2284 }
 0x363   : > { %8276 = vst [vmem:[#allocation395_spill] sm:$0xff] %v6116_v47  ;;  %2528 = vperm.xlu1 %3963, %v4103_v50   ;;  %2540 = vperm.xlu0 %3964, %v4104_v53   ;;  %v4227_v47 = vmov 3  }
 0x366   : > { %v6122_v49 = vpop.permute.xlu1 %2280  ;;  %v6124_v46 = vpop.permute.xlu0 %2292 }
 0x367   : > { %2536 = vperm.xlu1 %3963, %v4105_v52   ;;  %2548 = vperm.xlu0 %3964, %v4106_v54  }
 0x36a   : > { %v6128_v44 = vpop.permute.xlu1 %2288  ;;  %v6130_v42 = vpop.permute.xlu0 %2300 }
 0x36b   : > { %2544 = vperm.xlu1 %3963, %v4107_v48   ;;  %3966 = vset.pattern.permute.xlu0 %v4227_v47 }
 0x36c   : > { %2842 = vperm.xlu0 %3966, %v5450_v2  }
 0x36e   : > { %v6134_v50 = vpop.permute.xlu1 %2296  ;;  %v6136_v53 = vpop.permute.xlu0 %2308 }
 0x36f   : > { %3965 = vset.pattern.permute.xlu1 %v4227_v47 }
 0x370   : > { %2838 = vperm.xlu1 %3965, %v5446_v55   ;;  %2854 = vperm.xlu0 %3966, %v5462_v3  }
 0x372   : > { %v6140_v54 = vpop.permute.xlu1 %2304  ;;  %v6142_v52 = vpop.permute.xlu0 %2316 }
 0x374   : > { %2846 = vperm.xlu1 %3965, %v5458_v1   ;;  %2862 = vperm.xlu0 %3966, %v5474_v62  }
 0x376   : > { %v6146_v48 = vpop.permute.xlu1 %2312  ;;  %v6148_v2 = vpop.permute.xlu0 %2324 }
 0x378   : > { %2850 = vperm.xlu1 %3965, %v5470_v9   ;;  %2870 = vperm.xlu0 %3966, %v5486_v11  }
 0x37a   : > { %v6152_v47 = vpop.permute.xlu1 %2320  ;;  %v6154_v55 = vpop.permute.xlu0 %2332 }
 0x37c   : > { %2858 = vperm.xlu1 %3965, %v5482_v5   ;;  %2878 = vperm.xlu0 %3966, %v5498_v0  }
 0x37e   : > { %v6158_v3 = vpop.permute.xlu1 %2328  ;;  %v6160_v1 = vpop.permute.xlu0 %2340 }
 0x380   : > { %2866 = vperm.xlu1 %3965, %v5494_v57   ;;  %2886 = vperm.xlu0 %3966, %v5510_v7  }
 0x382   : > { %v6164_v62 = vpop.permute.xlu1 %2336  ;;  %v6166_v9 = vpop.permute.xlu0 %2348 }
 0x384   : > { %2874 = vperm.xlu1 %3965, %v5506_v61   ;;  %2894 = vperm.xlu0 %3966, %v5522_v58  }
 0x386   : > { %v6170_v11 = vpop.permute.xlu1 %2344  ;;  %v6172_v5 = vpop.permute.xlu0 %2356 }
 0x388   : > { %2882 = vperm.xlu1 %3965, %v5518_v59   ;;  %2902 = vperm.xlu0 %3966, %v5534_v63  }
 0x38a   : > { %v6176_v0 = vpop.permute.xlu1 %2352  ;;  %v6178_v57 = vpop.permute.xlu0 %2364 }
 0x38c   : > { %2890 = vperm.xlu1 %3965, %v5530_v4   ;;  %2910 = vperm.xlu0 %3966, %v5546_v60  }
 0x38e   : > { %v6182_v7 = vpop.permute.xlu1 %2360  ;;  %v6184_v61 = vpop.permute.xlu0 %2372 }
 0x390   : > { %2898 = vperm.xlu1 %3965, %v5542_v6   ;;  %2918 = vperm.xlu0 %3966, %v5558_v13  }
 0x392   : > { %v6188_v58 = vpop.permute.xlu1 %2368  ;;  %v6190_v59 = vpop.permute.xlu0 %2380 }
 0x394   : > { %2906 = vperm.xlu1 %3965, %v5554_v8   ;;  %2926 = vperm.xlu0 %3966, %v5570_v15  }
 0x396   : > { %v6194_v63 = vpop.permute.xlu1 %2376  ;;  %v6196_v4 = vpop.permute.xlu0 %2388 }
 0x398   : > { %2914 = vperm.xlu1 %3965, %v5566_v10   ;;  %2934 = vperm.xlu0 %3966, %v5582_v17  }
 0x39a   : > { %v6200_v60 = vpop.permute.xlu1 %2384  ;;  %v6202_v6 = vpop.permute.xlu0 %2396 }
 0x39c   : > { %2922 = vperm.xlu1 %3965, %v5578_v12   ;;  %2942 = vperm.xlu0 %3966, %v5594_v19  }
 0x39e   : > { %v6206_v13 = vpop.permute.xlu1 %2392  ;;  %v6208_v8 = vpop.permute.xlu0 %2404 }
 0x3a0   : > { %2930 = vperm.xlu1 %3965, %v5590_v14   ;;  %2950 = vperm.xlu0 %3966, %v5606_v21  }
 0x3a2   : > { %v6212_v15 = vpop.permute.xlu1 %2400  ;;  %v6214_v10 = vpop.permute.xlu0 %2412 }
 0x3a4   : > { %2938 = vperm.xlu1 %3965, %v5602_v16   ;;  %2958 = vperm.xlu0 %3966, %v5618_v23  }
 0x3a6   : > { %v6218_v17 = vpop.permute.xlu1 %2408  ;;  %v6220_v12 = vpop.permute.xlu0 %2420 }
 0x3a7   : > { %8277 = vst [vmem:[#allocation396_spill] sm:$0xff] %v6218_v17  ;;  %8278 = vst [vmem:[#allocation397_spill] sm:$0xff] %v6220_v12 }
 0x3a8   : > { %2946 = vperm.xlu1 %3965, %v5614_v18   ;;  %2966 = vperm.xlu0 %3966, %v5630_v25  }
 0x3aa   : > { %v6224_v19 = vpop.permute.xlu1 %2416  ;;  %v6226_v14 = vpop.permute.xlu0 %2428 }
 0x3ab   : > { %8279 = vst [vmem:[#allocation398_spill] sm:$0xff] %v6224_v19  ;;  %8280 = vst [vmem:[#allocation399_spill] sm:$0xff] %v6226_v14  ;;  %v8338_v19 = vld [vmem:[#allocation307_spill] sm:$0xff]  ;;  %v8345_v14 = vld [vmem:[#allocation306_spill] sm:$0xff] }
 0x3ac   : > { %2954 = vperm.xlu1 %3965, %v5626_v20   ;;  %2974 = vperm.xlu0 %3966, %v5642_v27  }
 0x3ae   : > { %v6230_v21 = vpop.permute.xlu1 %2424  ;;  %v6232_v16 = vpop.permute.xlu0 %2436 }
 0x3af   : > { %8281 = vst [vmem:[#allocation400_spill] sm:$0xff] %v6230_v21  ;;  %8282 = vst [vmem:[#allocation401_spill] sm:$0xff] %v6232_v16  ;;  %v8336_v16 = vld [vmem:[#allocation29_spill] sm:$0xff] }
 0x3b0   : > { %2962 = vperm.xlu1 %3965, %v5638_v22   ;;  %2982 = vperm.xlu0 %3966, %v5654_v29  }
 0x3b2   : > { %v6236_v23 = vpop.permute.xlu1 %2432  ;;  %v6238_v18 = vpop.permute.xlu0 %2444 }
 0x3b3   : > { %8283 = vst [vmem:[#allocation402_spill] sm:$0xff] %v6236_v23  ;;  %8284 = vst [vmem:[#allocation403_spill] sm:$0xff] %v6238_v18 }
 0x3b4   : > { %2970 = vperm.xlu1 %3965, %v5650_v24   ;;  %2990 = vperm.xlu0 %3966, %v5666_v31  }
 0x3b6   : > { %v6242_v25 = vpop.permute.xlu1 %2440  ;;  %v6244_v20 = vpop.permute.xlu0 %2452 }
 0x3b7   : > { %8285 = vst [vmem:[#allocation404_spill] sm:$0xff] %v6242_v25  ;;  %8286 = vst [vmem:[#allocation405_spill] sm:$0xff] %v6244_v20  ;;  %v8331_v20 = vld [vmem:[#allocation296_spill] sm:$0xff] }
 0x3b8   : > { %2978 = vperm.xlu1 %3965, %v5662_v26   ;;  %2998 = vperm.xlu0 %3966, %v5678_v33  }
 0x3ba   : > { %v6248_v27 = vpop.permute.xlu1 %2448  ;;  %v6250_v22 = vpop.permute.xlu0 %2460 }
 0x3bb   : > { %8287 = vst [vmem:[#allocation406_spill] sm:$0xff] %v6248_v27  ;;  %8288 = vst [vmem:[#allocation407_spill] sm:$0xff] %v6250_v22  ;;  %v8328_v27 = vld [vmem:[#allocation25_spill] sm:$0xff] }
 0x3bc   : > { %2986 = vperm.xlu1 %3965, %v5674_v28   ;;  %3006 = vperm.xlu0 %3966, %v5690_v35  }
 0x3be   : > { %v6254_v29 = vpop.permute.xlu1 %2456  ;;  %v6256_v24 = vpop.permute.xlu0 %2468 }
 0x3bf   : > { %8289 = vst [vmem:[#allocation408_spill] sm:$0xff] %v6254_v29  ;;  %8290 = vst [vmem:[#allocation409_spill] sm:$0xff] %v6256_v24  ;;  %v8325_v29 = vld [vmem:[#allocation19_spill] sm:$0xff] }
 0x3c0   : > { %2994 = vperm.xlu1 %3965, %v5686_v30   ;;  %3014 = vperm.xlu0 %3966, %v5702_v37  }
 0x3c2   : > { %v6260_v31 = vpop.permute.xlu1 %2464  ;;  %v6262_v26 = vpop.permute.xlu0 %2476 }
 0x3c3   : > { %8291 = vst [vmem:[#allocation410_spill] sm:$0xff] %v6260_v31  ;;  %8292 = vst [vmem:[#allocation411_spill] sm:$0xff] %v6262_v26  ;;  %v8321_v31 = vld [vmem:[#allocation299_spill] sm:$0xff] }
 0x3c4   : > { %3002 = vperm.xlu1 %3965, %v5698_v32   ;;  %3022 = vperm.xlu0 %3966, %v5714_v39  }
 0x3c6   : > { %v6266_v33 = vpop.permute.xlu1 %2472  ;;  %v6268_v28 = vpop.permute.xlu0 %2484 }
 0x3c7   : > { %8293 = vst [vmem:[#allocation412_spill] sm:$0xff] %v6266_v33  ;;  %8294 = vst [vmem:[#allocation413_spill] sm:$0xff] %v6268_v28  ;;  %v8317_v33 = vld [vmem:[#allocation15_spill] sm:$0xff] }
 0x3c8   : > { %3010 = vperm.xlu1 %3965, %v5710_v34   ;;  %3030 = vperm.xlu0 %3966, %v5726_v41  }
 0x3ca   : > { %v6272_v35 = vpop.permute.xlu1 %2480  ;;  %v6274_v30 = vpop.permute.xlu0 %2492 }
 0x3cb   : > { %8295 = vst [vmem:[#allocation414_spill] sm:$0xff] %v6272_v35  ;;  %8296 = vst [vmem:[#allocation415_spill] sm:$0xff] %v6274_v30  ;;  %v8311_v30 = vld [vmem:[#allocation284_spill] sm:$0xff] }
 0x3cc   : > { %3018 = vperm.xlu1 %3965, %v5722_v36   ;;  %3038 = vperm.xlu0 %3966, %v5738_v43   ;;  %v8303_v43 = vld [vmem:[#allocation277_spill] sm:$0xff] }
 0x3ce   : > { %v6278_v37 = vpop.permute.xlu1 %2488  ;;  %v6280_v32 = vpop.permute.xlu0 %2500 }
 0x3cf   : > { %8297 = vst [vmem:[#allocation416_spill] sm:$0xff] %v6278_v37  ;;  %8298 = vst [vmem:[#allocation417_spill] sm:$0xff] %v6280_v32  ;;  %v8304_v37 = vld [vmem:[#allocation281_spill] sm:$0xff]  ;;  %v992_v32 = vlaneseq }
 0x3d0   : > { %3026 = vperm.xlu1 %3965, %v5734_v38   ;;  %3046 = vperm.xlu0 %3966, %v5750_v45  }
 0x3d2   : > { %v6284_v39 = vpop.permute.xlu1 %2496  ;;  %v6286_v34 = vpop.permute.xlu0 %2508 }
 0x3d3   : > { %8299 = vst [vmem:[#allocation418_spill] sm:$0xff] %v6284_v39  ;;  %8300 = vst [vmem:[#allocation419_spill] sm:$0xff] %v6286_v34  ;;  %v8307_v39 = vld [vmem:[#allocation280_spill] sm:$0xff]  ;;  %v8308_v34 = vld [vmem:[#allocation285_spill] sm:$0xff] }
 0x3d4   : > { %3034 = vperm.xlu1 %3965, %v5746_v40   ;;  %3054 = vperm.xlu0 %3966, %v5762_v51   ;;  %v993_v40 = vshrl.u32 %v992_v32, 7  ;;  %v286_v32 = vld [vmem:[%s7597_s1] sm:$0xf] }
 0x3d6   : > { %v6290_v41 = vpop.permute.xlu1 %2504  ;;  %v6292_v36 = vpop.permute.xlu0 %2516 }
 0x3d7   : > { %8301 = vst [vmem:[#allocation420_spill] sm:$0xff] %v6290_v41  ;;  %8302 = vst [vmem:[#allocation421_spill] sm:$0xff] %v6292_v36  ;;  %v1703_v41 = vsub.s32 1, %v993_v40  ;;  %v2553_v36 = vsub.s32 2, %v993_v40 }
 0x3d8   : > { %3042 = vperm.xlu1 %3965, %v8303_v43   ;;  %3062 = vperm.xlu0 %3966, %v8304_v37   ;;  %v8312_v37 = vld [vmem:[#allocation289_spill] sm:$0xff]  ;;  %v994_v43 = vsub.s32 0, %v993_v40 }
 0x3da   : > { %v6296_v38 = vpop.permute.xlu1 %2512  ;;  %v6298_v45 = vpop.permute.xlu0 %2524 }
 0x3db   : > { %8305 = vst [vmem:[#allocation277_spill] sm:$0xff] %v6296_v38  ;;  %8306 = vst [vmem:[#allocation281_spill] sm:$0xff] %v6298_v45 }
 0x3dc   : > { %3050 = vperm.xlu1 %3965, %v8307_v39   ;;  %3070 = vperm.xlu0 %3966, %v8308_v34   ;;  %v6315_v39 = vrot.slane %v286_v32, %v1703_v41  ;;  %v6317_v34 = vrot.slane %v286_v32, %v2553_v36  ;;  %v8320_v41 = vld [vmem:[#allocation21_spill] sm:$0xff] }
 0x3de   : > { %v6302_v35 = vpop.permute.xlu1 %2520  ;;  %v6304_v51 = vpop.permute.xlu0 %2532  ;;  %v2556_v26 = vmul.f32 %v6317_v34, %v8321_v31 }
 0x3df   : > { %8309 = vst [vmem:[#allocation280_spill] sm:$0xff] %v6302_v35  ;;  %8310 = vst [vmem:[#allocation285_spill] sm:$0xff] %v6304_v51  ;;  %v8315_v35 = vld [vmem:[#allocation288_spill] sm:$0xff]  ;;  %v8316_v51 = vld [vmem:[#allocation293_spill] sm:$0xff] }
 0x3e0   : > { %3058 = vperm.xlu1 %3965, %v8311_v30   ;;  %3078 = vperm.xlu0 %3966, %v8312_v37   ;;  %v3403_v30 = vsub.s32 3, %v993_v40  ;;  %v6321_v37 = vrot.slane %v286_v32, %v994_v43  ;;  %v8324_v43 = vld [vmem:[#allocation13_spill] sm:$0xff] }
 0x3e2   : > { %v6308_v38 = vpop.permute.xlu1 %2528  ;;  %v6310_v45 = vpop.permute.xlu0 %2540  ;;  %v997_v36 = vmul.f32 %v6321_v37, %v8320_v41  ;;  %v6336_v40 = vrot.slane %v286_v32, %v3403_v30  ;;  %v8327_v41 = vld [vmem:[#allocation17_spill] sm:$0xff]  ;;  %v8330_v30 = vld [vmem:[#allocation303_spill] sm:$0xff] }
 0x3e3   : > { %8313 = vst [vmem:[#allocation284_spill] sm:$0xff] %v6308_v38  ;;  %8314 = vst [vmem:[#allocation289_spill] sm:$0xff] %v6310_v45  ;;  %v1706_v38 = vmul.f32 %v6315_v39, %v8317_v33  ;;  %v1705_v33 = vmul.f32 %v6315_v39, %v8324_v43  ;;  %v996_v31 = vmul.f32 %v6321_v37, %v8327_v41 }
 0x3e4   : > { %3066 = vperm.xlu1 %3965, %v8315_v35   ;;  %3086 = vperm.xlu0 %3966, %v8316_v51   ;;  %v8322_v35 = vld [vmem:[#allocation292_spill] sm:$0xff]  ;;  %v8323_v51 = vld [vmem:[#allocation297_spill] sm:$0xff]  ;;  %v2559_v43 = vmul.f32 %v6317_v34, %v8330_v30 }
 0x3e6   : > { %v6325_v45 = vpop.permute.xlu1 %2536  ;;  %v6327_v28 = vpop.permute.xlu0 %2548 }
 0x3e7   : > { %8318 = vst [vmem:[#allocation288_spill] sm:$0xff] %v6325_v45  ;;  %8319 = vst [vmem:[#allocation293_spill] sm:$0xff] %v6327_v28  ;;  %v1709_v45 = vmul.f32 %v6315_v39, %v8325_v29  ;;  %v1847_v28 = vadd.f32 %v1706_v38, %v997_v36  ;;  %v8332_v38 = vld [vmem:[#allocation301_spill] sm:$0xff]  ;;  %v1846_v36 = vadd.f32 %v1705_v33, %v996_v31 }
 0x3e8   : > { %3074 = vperm.xlu1 %3965, %v8322_v35   ;;  %3094 = vperm.xlu0 %3966, %v8323_v51   ;;  %v1000_v35 = vmul.f32 %v6321_v37, %v8328_v27  ;;  %v8329_v51 = vld [vmem:[#allocation298_spill] sm:$0xff]  ;;  %v8334_v27 = vld [vmem:[#allocation16_spill] sm:$0xff] }
 0x3e9   : > { %v2555_v32 = vmul.f32 %v6317_v34, %v8329_v51  ;;  %v2697_v25 = vadd.f32 %v2556_v26, %v1847_v28  ;;  %v998_v18 = vmul.f32 %v6321_v37, %v8334_v27  ;;  %v8335_v51 = vld [vmem:[#allocation23_spill] sm:$0xff]  ;;  %v1002_v26 = vmul.f32 %v6321_v37, %v8336_v16  ;;  %v8337_v28 = vld [vmem:[#allocation302_spill] sm:$0xff]  ;;  %v8340_v16 = vld [vmem:[#allocation305_spill] sm:$0xff] }
 0x3ea   : > { %v6344_v24 = vpop.permute.xlu1 %2544  ;;  %v1850_v23 = vadd.f32 %v1709_v45, %v1000_v35  ;;  %v1711_v21 = vmul.f32 %v6315_v39, %v8335_v51  ;;  %v8339_v35 = vld [vmem:[#allocation300_spill] sm:$0xff] }
 0x3eb   : > { %8326 = vst [vmem:[#allocation15_spill] sm:$0xff] %v6344_v24  ;;  %v2843_v22 = vpop.permute.xlu0 %2842  ;;  %v8333_v24 = vld [vmem:[#allocation12_spill] sm:$0xff] }
 0x3ec   : > { %v3406_v29 = vmul.f32 %v6336_v40, %v2843_v22  ;;  %3082 = vperm.xlu1 %3965, %v8331_v20   ;;  %3102 = vperm.xlu0 %3966, %v8332_v38   ;;  %v1707_v41 = vmul.f32 %v6315_v39, %v8333_v24  ;;  %v2696_v22 = vadd.f32 %v2555_v32, %v1846_v36  ;;  %v8341_v32 = vld [vmem:[#allocation14_spill] sm:$0xff]  ;;  %v8343_v36 = vld [vmem:[#allocation20_spill] sm:$0xff] }
 0x3ed   : > { %v2557_v20 = vmul.f32 %v6317_v34, %v8337_v28  ;;  %v2700_v38 = vadd.f32 %v2559_v43, %v1850_v23  ;;  %v2561_v24 = vmul.f32 %v6317_v34, %v8338_v19  ;;  %v1708_v43 = vmul.f32 %v6315_v39, %v8341_v32 }
 0x3ee   : > { %v3547_v30 = vadd.f32 %v3406_v29, %v2697_v25  ;;  %v1848_v23 = vadd.f32 %v1707_v41, %v998_v18  ;;  %v8342_v29 = vld [vmem:[#allocation27_spill] sm:$0xff]  ;;  %v999_v27 = vmul.f32 %v6321_v37, %v8343_v36  ;;  %v1852_v51 = vadd.f32 %v1711_v21, %v1002_v26  ;;  %v8347_v26 = vld [vmem:[#allocation304_spill] sm:$0xff] }
 0x3ef   : > { %v2839_v33 = vpop.permute.xlu1 %2838  ;;  %v2855_v31 = vpop.permute.xlu0 %2854  ;;  %v1713_v19 = vmul.f32 %v6315_v39, %v8342_v29  ;;  %v8346_v18 = vld [vmem:[#allocation311_spill] sm:$0xff] }
 0x3f0   : > { %3688 = vst [vmem:[%s6369_s30 + $0x8] sm:$0xff] %v3547_v30  ;;  %v3405_v45 = vmul.f32 %v6336_v40, %v2839_v33  ;;  %v3409_v25 = vmul.f32 %v6336_v40, %v2855_v31  ;;  %3090 = vperm.xlu1 %3965, %v8339_v35   ;;  %3110 = vperm.xlu0 %3966, %v8340_v16   ;;  %v8344_v33 = vld [vmem:[#allocation33_spill] sm:$0xff] }
 0x3f1   : > { %v1004_v31 = vmul.f32 %v6321_v37, %v8344_v33  ;;  %v2698_v35 = vadd.f32 %v2557_v20, %v1848_v23  ;;  %v2558_v16 = vmul.f32 %v6317_v34, %v8345_v14  ;;  %v2563_v41 = vmul.f32 %v6317_v34, %v8346_v18  ;;  %v8349_v14 = vld [vmem:[#allocation18_spill] sm:$0xff]  ;;  %v8351_v23 = vld [vmem:[#allocation31_spill] sm:$0xff] }
 0x3f2   : > { %v3546_v30 = vadd.f32 %v3405_v45, %v2696_v22  ;;  %v3550_v28 = vadd.f32 %v3409_v25, %v2700_v38  ;;  %v2702_v12 = vadd.f32 %v2561_v24, %v1852_v51  ;;  %v8348_v22 = vld [vmem:[#allocation309_spill] sm:$0xff]  ;;  %v1849_v20 = vadd.f32 %v1708_v43, %v999_v27  ;;  %v8350_v25 = vld [vmem:[#allocation24_spill] sm:$0xff]  ;;  %v8353_v18 = vld [vmem:[#allocation310_spill] sm:$0xff] }
 0x3f3   : > { %v2847_v32 = vpop.permute.xlu1 %2846  ;;  %v2863_v17 = vpop.permute.xlu0 %2862  ;;  %v1710_v38 = vmul.f32 %v6315_v39, %v8349_v14  ;;  %v1854_v45 = vadd.f32 %v1713_v19, %v1004_v31  ;;  %v1001_v24 = vmul.f32 %v6321_v37, %v8350_v25  ;;  %v1715_v36 = vmul.f32 %v6315_v39, %v8351_v23 }
 0x3f4   : > { %3687 = vst [vmem:[%s6369_s30] sm:$0xff] %v3546_v30  ;;  %3691 = vst [vmem:[%s6369_s30 + $0x20] sm:$0xff] %v3550_v28  ;;  %v3407_v29 = vmul.f32 %v6336_v40, %v2847_v32  ;;  %v3411_v21 = vmul.f32 %v6336_v40, %v2863_v17  ;;  %3098 = vperm.xlu1 %3965, %v8347_v26   ;;  %3118 = vperm.xlu0 %3966, %v8348_v22   ;;  %v8352_v17 = vld [vmem:[#allocation37_spill] sm:$0xff]  ;;  %v8354_v22 = vld [vmem:[#allocation315_spill] sm:$0xff] }
 0x3f5   : > { %v1006_v28 = vmul.f32 %v6321_v37, %v8352_v17  ;;  %v2699_v33 = vadd.f32 %v2558_v16, %v1849_v20  ;;  %v2560_v32 = vmul.f32 %v6317_v34, %v8353_v18  ;;  %v2704_v43 = vadd.f32 %v2563_v41, %v1854_v45  ;;  %v8358_v20 = vld [vmem:[#allocation35_spill] sm:$0xff]  ;;  %v8359_v45 = vld [vmem:[#allocation28_spill] sm:$0xff]  ;;  %v8360_v17 = vld [vmem:[#allocation41_spill] sm:$0xff] }
 0x3f6   : > { %v3548_v51 = vadd.f32 %v3407_v29, %v2698_v35  ;;  %v3552_v30 = vadd.f32 %v3411_v21, %v2702_v12  ;;  %v2565_v19 = vmul.f32 %v6317_v34, %v8354_v22  ;;  %v8355_v12 = vld [vmem:[#allocation308_spill] sm:$0xff]  ;;  %v8356_v29 = vld [vmem:[#allocation313_spill] sm:$0xff]  ;;  %v1851_v16 = vadd.f32 %v1710_v38, %v1001_v24  ;;  %v8357_v21 = vld [vmem:[#allocation22_spill] sm:$0xff] }
 0x3f7   : > { %v2851_v27 = vpop.permute.xlu1 %2850  ;;  %v2871_v26 = vpop.permute.xlu0 %2870  ;;  %v1712_v41 = vmul.f32 %v6315_v39, %v8357_v21  ;;  %v1717_v14 = vmul.f32 %v6315_v39, %v8358_v20  ;;  %v1003_v25 = vmul.f32 %v6321_v37, %v8359_v45  ;;  %v1856_v23 = vadd.f32 %v1715_v36, %v1006_v28  ;;  %v8362_v38 = vld [vmem:[#allocation319_spill] sm:$0xff]  ;;  %v8363_v28 = vld [vmem:[#allocation312_spill] sm:$0xff] }
 0x3f8   : > { %3689 = vst [vmem:[%s6369_s30 + $0x10] sm:$0xff] %v3548_v51  ;;  %3693 = vst [vmem:[%s6369_s30 + $0x30] sm:$0xff] %v3552_v30  ;;  %v3408_v31 = vmul.f32 %v6336_v40, %v2851_v27  ;;  %v3413_v35 = vmul.f32 %v6336_v40, %v2871_v26  ;;  %3106 = vperm.xlu1 %3965, %v8355_v12   ;;  %3126 = vperm.xlu0 %3966, %v8356_v29   ;;  %v8361_v26 = vld [vmem:[#allocation314_spill] sm:$0xff]  ;;  %v8367_v45 = vld [vmem:[#allocation39_spill] sm:$0xff] }
 0x3f9   : > { %v1008_v18 = vmul.f32 %v6321_v37, %v8360_v17  ;;  %v2701_v27 = vadd.f32 %v2560_v32, %v1851_v16  ;;  %v2562_v22 = vmul.f32 %v6317_v34, %v8361_v26  ;;  %v2567_v24 = vmul.f32 %v6317_v34, %v8362_v38  ;;  %v8366_v16 = vld [vmem:[#allocation32_spill] sm:$0xff]  ;;  %v8368_v17 = vld [vmem:[#allocation45_spill] sm:$0xff] }
 0x3fa   : > { %v3549_v51 = vadd.f32 %v3408_v31, %v2699_v33  ;;  %v3554_v30 = vadd.f32 %v3413_v35, %v2704_v43  ;;  %v2706_v21 = vadd.f32 %v2565_v19, %v1856_v23  ;;  %v8364_v33 = vld [vmem:[#allocation317_spill] sm:$0xff]  ;;  %v1853_v32 = vadd.f32 %v1712_v41, %v1003_v25  ;;  %v8365_v43 = vld [vmem:[#allocation26_spill] sm:$0xff] }
 0x3fb   : > { %v2859_v12 = vpop.permute.xlu1 %2858  ;;  %v2879_v29 = vpop.permute.xlu0 %2878  ;;  %v1714_v31 = vmul.f32 %v6315_v39, %v8365_v43  ;;  %v1858_v35 = vadd.f32 %v1717_v14, %v1008_v18  ;;  %v1005_v19 = vmul.f32 %v6321_v37, %v8366_v16  ;;  %v1719_v23 = vmul.f32 %v6315_v39, %v8367_v45 }
 0x3fc   : > { %3690 = vst [vmem:[%s6369_s30 + $0x18] sm:$0xff] %v3549_v51  ;;  %3695 = vst [vmem:[%s6369_s30 + $0x40] sm:$0xff] %v3554_v30  ;;  %v3410_v20 = vmul.f32 %v6336_v40, %v2859_v12  ;;  %v3415_v36 = vmul.f32 %v6336_v40, %v2879_v29  ;;  %3114 = vperm.xlu1 %3965, %v8363_v28   ;;  %3134 = vperm.xlu0 %3966, %v8364_v33   ;;  %v8369_v12 = vld [vmem:[#allocation318_spill] sm:$0xff]  ;;  %v8370_v33 = vld [vmem:[#allocation323_spill] sm:$0xff] }
 0x3fd   : > { %v1010_v26 = vmul.f32 %v6321_v37, %v8368_v17  ;;  %v2703_v38 = vadd.f32 %v2562_v22, %v1853_v32  ;;  %v2564_v29 = vmul.f32 %v6317_v34, %v8369_v12  ;;  %v2708_v41 = vadd.f32 %v2567_v24, %v1858_v35  ;;  %v8374_v32 = vld [vmem:[#allocation43_spill] sm:$0xff]  ;;  %v8375_v35 = vld [vmem:[#allocation36_spill] sm:$0xff]  ;;  %v8376_v17 = vld [vmem:[#allocation49_spill] sm:$0xff] }
 0x3fe   : > { %v3551_v51 = vadd.f32 %v3410_v20, %v2701_v27  ;;  %v3556_v30 = vadd.f32 %v3415_v36, %v2706_v21  ;;  %v2569_v14 = vmul.f32 %v6317_v34, %v8370_v33  ;;  %v8371_v21 = vld [vmem:[#allocation316_spill] sm:$0xff]  ;;  %v8372_v20 = vld [vmem:[#allocation321_spill] sm:$0xff]  ;;  %v1855_v22 = vadd.f32 %v1714_v31, %v1005_v19  ;;  %v8373_v36 = vld [vmem:[#allocation30_spill] sm:$0xff] }
 0x3ff   : > { %v2867_v25 = vpop.permute.xlu1 %2866  ;;  %v2887_v28 = vpop.permute.xlu0 %2886  ;;  %v1716_v24 = vmul.f32 %v6315_v39, %v8373_v36  ;;  %v1721_v43 = vmul.f32 %v6315_v39, %v8374_v32  ;;  %v1007_v16 = vmul.f32 %v6321_v37, %v8375_v35  ;;  %v1860_v45 = vadd.f32 %v1719_v23, %v1010_v26  ;;  %v8378_v31 = vld [vmem:[#allocation327_spill] sm:$0xff]  ;;  %v8379_v26 = vld [vmem:[#allocation320_spill] sm:$0xff] }
 0x400   : > { %3692 = vst [vmem:[%s6369_s30 + $0x28] sm:$0xff] %v3551_v51  ;;  %3697 = vst [vmem:[%s6369_s30 + $0x50] sm:$0xff] %v3556_v30  ;;  %v3412_v18 = vmul.f32 %v6336_v40, %v2867_v25  ;;  %v3417_v27 = vmul.f32 %v6336_v40, %v2887_v28  ;;  %3122 = vperm.xlu1 %3965, %v8371_v21   ;;  %3142 = vperm.xlu0 %3966, %v8372_v20   ;;  %v8377_v28 = vld [vmem:[#allocation322_spill] sm:$0xff]  ;;  %v8383_v35 = vld [vmem:[#allocation47_spill] sm:$0xff] }
 0x401   : > { %v1012_v12 = vmul.f32 %v6321_v37, %v8376_v17  ;;  %v2705_v25 = vadd.f32 %v2564_v29, %v1855_v22  ;;  %v2566_v33 = vmul.f32 %v6317_v34, %v8377_v28  ;;  %v2571_v19 = vmul.f32 %v6317_v34, %v8378_v31  ;;  %v8382_v22 = vld [vmem:[#allocation40_spill] sm:$0xff]  ;;  %v8384_v17 = vld [vmem:[#allocation53_spill] sm:$0xff] }
 0x402   : > { %v3553_v51 = vadd.f32 %v3412_v18, %v2703_v38  ;;  %v3558_v30 = vadd.f32 %v3417_v27, %v2708_v41  ;;  %v2710_v36 = vadd.f32 %v2569_v14, %v1860_v45  ;;  %v8380_v38 = vld [vmem:[#allocation325_spill] sm:$0xff]  ;;  %v1857_v29 = vadd.f32 %v1716_v24, %v1007_v16  ;;  %v8381_v41 = vld [vmem:[#allocation34_spill] sm:$0xff] }
 0x403   : > { %v2875_v21 = vpop.permute.xlu1 %2874  ;;  %v2895_v20 = vpop.permute.xlu0 %2894  ;;  %v1718_v18 = vmul.f32 %v6315_v39, %v8381_v41  ;;  %v1862_v27 = vadd.f32 %v1721_v43, %v1012_v12  ;;  %v1009_v14 = vmul.f32 %v6321_v37, %v8382_v22  ;;  %v1723_v45 = vmul.f32 %v6315_v39, %v8383_v35 }
 0x404   : > { %3694 = vst [vmem:[%s6369_s30 + $0x38] sm:$0xff] %v3553_v51  ;;  %3699 = vst [vmem:[%s6369_s30 + $0x60] sm:$0xff] %v3558_v30  ;;  %v3414_v32 = vmul.f32 %v6336_v40, %v2875_v21  ;;  %v3419_v23 = vmul.f32 %v6336_v40, %v2895_v20  ;;  %3130 = vperm.xlu1 %3965, %v8379_v26   ;;  %3150 = vperm.xlu0 %3966, %v8380_v38   ;;  %v8385_v21 = vld [vmem:[#allocation326_spill] sm:$0xff]  ;;  %v8386_v38 = vld [vmem:[#allocation331_spill] sm:$0xff] }
 0x405   : > { %v1014_v28 = vmul.f32 %v6321_v37, %v8384_v17  ;;  %v2707_v31 = vadd.f32 %v2566_v33, %v1857_v29  ;;  %v2568_v20 = vmul.f32 %v6317_v34, %v8385_v21  ;;  %v2712_v24 = vadd.f32 %v2571_v19, %v1862_v27  ;;  %v8390_v29 = vld [vmem:[#allocation51_spill] sm:$0xff]  ;;  %v8391_v27 = vld [vmem:[#allocation44_spill] sm:$0xff]  ;;  %v8392_v17 = vld [vmem:[#allocation57_spill] sm:$0xff] }
 0x406   : > { %v3555_v51 = vadd.f32 %v3414_v32, %v2705_v25  ;;  %v3560_v30 = vadd.f32 %v3419_v23, %v2710_v36  ;;  %v2573_v43 = vmul.f32 %v6317_v34, %v8386_v38  ;;  %v8387_v36 = vld [vmem:[#allocation324_spill] sm:$0xff]  ;;  %v8388_v32 = vld [vmem:[#allocation329_spill] sm:$0xff]  ;;  %v1859_v33 = vadd.f32 %v1718_v18, %v1009_v14  ;;  %v8389_v23 = vld [vmem:[#allocation38_spill] sm:$0xff] }
 0x407   : > { %v2883_v16 = vpop.permute.xlu1 %2882  ;;  %v2903_v26 = vpop.permute.xlu0 %2902  ;;  %v1720_v19 = vmul.f32 %v6315_v39, %v8389_v23  ;;  %v1725_v41 = vmul.f32 %v6315_v39, %v8390_v29  ;;  %v1011_v22 = vmul.f32 %v6321_v37, %v8391_v27  ;;  %v1864_v35 = vadd.f32 %v1723_v45, %v1014_v28  ;;  %v8394_v18 = vld [vmem:[#allocation335_spill] sm:$0xff]  ;;  %v8395_v28 = vld [vmem:[#allocation328_spill] sm:$0xff] }
 0x408   : > { %3696 = vst [vmem:[%s6369_s30 + $0x48] sm:$0xff] %v3555_v51  ;;  %3701 = vst [vmem:[%s6369_s30 + $0x70] sm:$0xff] %v3560_v30  ;;  %v3416_v12 = vmul.f32 %v6336_v40, %v2883_v16  ;;  %v3421_v25 = vmul.f32 %v6336_v40, %v2903_v26  ;;  %3138 = vperm.xlu1 %3965, %v8387_v36   ;;  %3158 = vperm.xlu0 %3966, %v8388_v32   ;;  %v8393_v26 = vld [vmem:[#allocation330_spill] sm:$0xff]  ;;  %v8399_v27 = vld [vmem:[#allocation55_spill] sm:$0xff] }
 0x409   : > { %v1016_v21 = vmul.f32 %v6321_v37, %v8392_v17  ;;  %v2709_v16 = vadd.f32 %v2568_v20, %v1859_v33  ;;  %v2570_v38 = vmul.f32 %v6317_v34, %v8393_v26  ;;  %v2575_v14 = vmul.f32 %v6317_v34, %v8394_v18  ;;  %v8398_v33 = vld [vmem:[#allocation48_spill] sm:$0xff]  ;;  %v8400_v17 = vld [vmem:[#allocation61_spill] sm:$0xff] }
 0x40a   : > { %v3557_v51 = vadd.f32 %v3416_v12, %v2707_v31  ;;  %v3562_v30 = vadd.f32 %v3421_v25, %v2712_v24  ;;  %v2714_v23 = vadd.f32 %v2573_v43, %v1864_v35  ;;  %v8396_v31 = vld [vmem:[#allocation333_spill] sm:$0xff]  ;;  %v1861_v20 = vadd.f32 %v1720_v19, %v1011_v22  ;;  %v8397_v24 = vld [vmem:[#allocation42_spill] sm:$0xff] }
 0x40b   : > { %v2891_v36 = vpop.permute.xlu1 %2890  ;;  %v2911_v32 = vpop.permute.xlu0 %2910  ;;  %v1722_v12 = vmul.f32 %v6315_v39, %v8397_v24  ;;  %v1866_v25 = vadd.f32 %v1725_v41, %v1016_v21  ;;  %v1013_v43 = vmul.f32 %v6321_v37, %v8398_v33  ;;  %v1727_v35 = vmul.f32 %v6315_v39, %v8399_v27 }
 0x40c   : > { %3698 = vst [vmem:[%s6369_s30 + $0x58] sm:$0xff] %v3557_v51  ;;  %3703 = vst [vmem:[%s6369_s30 + $0x80] sm:$0xff] %v3562_v30  ;;  %v3418_v29 = vmul.f32 %v6336_v40, %v2891_v36  ;;  %v3423_v45 = vmul.f32 %v6336_v40, %v2911_v32  ;;  %3146 = vperm.xlu1 %3965, %v8395_v28   ;;  %3166 = vperm.xlu0 %3966, %v8396_v31   ;;  %v8401_v36 = vld [vmem:[#allocation334_spill] sm:$0xff]  ;;  %v8402_v31 = vld [vmem:[#allocation339_spill] sm:$0xff] }
 0x40d   : > { %v1018_v26 = vmul.f32 %v6321_v37, %v8400_v17  ;;  %v2711_v18 = vadd.f32 %v2570_v38, %v1861_v20  ;;  %v2572_v32 = vmul.f32 %v6317_v34, %v8401_v36  ;;  %v2716_v19 = vadd.f32 %v2575_v14, %v1866_v25  ;;  %v8406_v20 = vld [vmem:[#allocation59_spill] sm:$0xff]  ;;  %v8407_v25 = vld [vmem:[#allocation52_spill] sm:$0xff]  ;;  %v8408_v17 = vld [vmem:[#allocation65_spill] sm:$0xff] }
 0x40e   : > { %v3559_v51 = vadd.f32 %v3418_v29, %v2709_v16  ;;  %v3564_v30 = vadd.f32 %v3423_v45, %v2714_v23  ;;  %v2577_v41 = vmul.f32 %v6317_v34, %v8402_v31  ;;  %v8403_v23 = vld [vmem:[#allocation332_spill] sm:$0xff]  ;;  %v8404_v29 = vld [vmem:[#allocation337_spill] sm:$0xff]  ;;  %v1863_v38 = vadd.f32 %v1722_v12, %v1013_v43  ;;  %v8405_v45 = vld [vmem:[#allocation46_spill] sm:$0xff] }
 0x40f   : > { %v2899_v22 = vpop.permute.xlu1 %2898  ;;  %v2919_v28 = vpop.permute.xlu0 %2918  ;;  %v1724_v14 = vmul.f32 %v6315_v39, %v8405_v45  ;;  %v1729_v24 = vmul.f32 %v6315_v39, %v8406_v20  ;;  %v1015_v33 = vmul.f32 %v6321_v37, %v8407_v25  ;;  %v1868_v27 = vadd.f32 %v1727_v35, %v1018_v26  ;;  %v8410_v12 = vld [vmem:[#allocation343_spill] sm:$0xff]  ;;  %v8411_v26 = vld [vmem:[#allocation336_spill] sm:$0xff] }
 0x410   : > { %3700 = vst [vmem:[%s6369_s30 + $0x68] sm:$0xff] %v3559_v51  ;;  %3705 = vst [vmem:[%s6369_s30 + $0x90] sm:$0xff] %v3564_v30  ;;  %v3420_v21 = vmul.f32 %v6336_v40, %v2899_v22  ;;  %v3425_v16 = vmul.f32 %v6336_v40, %v2919_v28  ;;  %3154 = vperm.xlu1 %3965, %v8403_v23   ;;  %3174 = vperm.xlu0 %3966, %v8404_v29   ;;  %v8409_v28 = vld [vmem:[#allocation338_spill] sm:$0xff]  ;;  %v8415_v25 = vld [vmem:[#allocation63_spill] sm:$0xff] }
 0x411   : > { %v1020_v36 = vmul.f32 %v6321_v37, %v8408_v17  ;;  %v2713_v22 = vadd.f32 %v2572_v32, %v1863_v38  ;;  %v2574_v31 = vmul.f32 %v6317_v34, %v8409_v28  ;;  %v2579_v43 = vmul.f32 %v6317_v34, %v8410_v12  ;;  %v8414_v38 = vld [vmem:[#allocation56_spill] sm:$0xff]  ;;  %v8416_v17 = vld [vmem:[#allocation69_spill] sm:$0xff] }
 0x412   : > { %v3561_v51 = vadd.f32 %v3420_v21, %v2711_v18  ;;  %v3566_v30 = vadd.f32 %v3425_v16, %v2716_v19  ;;  %v2718_v45 = vadd.f32 %v2577_v41, %v1868_v27  ;;  %v8412_v18 = vld [vmem:[#allocation341_spill] sm:$0xff]  ;;  %v1865_v32 = vadd.f32 %v1724_v14, %v1015_v33  ;;  %v8413_v19 = vld [vmem:[#allocation50_spill] sm:$0xff] }
 0x413   : > { %v2907_v23 = vpop.permute.xlu1 %2906  ;;  %v2927_v29 = vpop.permute.xlu0 %2926  ;;  %v1726_v21 = vmul.f32 %v6315_v39, %v8413_v19  ;;  %v1870_v16 = vadd.f32 %v1729_v24, %v1020_v36  ;;  %v1017_v41 = vmul.f32 %v6321_v37, %v8414_v38  ;;  %v1731_v27 = vmul.f32 %v6315_v39, %v8415_v25 }
 0x414   : > { %3702 = vst [vmem:[%s6369_s30 + $0x78] sm:$0xff] %v3561_v51  ;;  %3707 = vst [vmem:[%s6369_s30 + $0xa0] sm:$0xff] %v3566_v30  ;;  %v3422_v20 = vmul.f32 %v6336_v40, %v2907_v23  ;;  %v3427_v35 = vmul.f32 %v6336_v40, %v2927_v29  ;;  %3162 = vperm.xlu1 %3965, %v8411_v26   ;;  %3182 = vperm.xlu0 %3966, %v8412_v18   ;;  %v8417_v23 = vld [vmem:[#allocation342_spill] sm:$0xff]  ;;  %v8418_v18 = vld [vmem:[#allocation347_spill] sm:$0xff] }
 0x415   : > { %v1022_v28 = vmul.f32 %v6321_v37, %v8416_v17  ;;  %v2715_v12 = vadd.f32 %v2574_v31, %v1865_v32  ;;  %v2576_v29 = vmul.f32 %v6317_v34, %v8417_v23  ;;  %v2720_v14 = vadd.f32 %v2579_v43, %v1870_v16  ;;  %v8422_v32 = vld [vmem:[#allocation67_spill] sm:$0xff]  ;;  %v8423_v16 = vld [vmem:[#allocation60_spill] sm:$0xff]  ;;  %v8424_v17 = vld [vmem:[#allocation73_spill] sm:$0xff] }
 0x416   : > { %v3563_v51 = vadd.f32 %v3422_v20, %v2713_v22  ;;  %v3568_v30 = vadd.f32 %v3427_v35, %v2718_v45  ;;  %v2581_v24 = vmul.f32 %v6317_v34, %v8418_v18  ;;  %v8419_v45 = vld [vmem:[#allocation340_spill] sm:$0xff]  ;;  %v8420_v20 = vld [vmem:[#allocation345_spill] sm:$0xff]  ;;  %v1867_v31 = vadd.f32 %v1726_v21, %v1017_v41  ;;  %v8421_v35 = vld [vmem:[#allocation54_spill] sm:$0xff] }
 0x417   : > { %v2915_v33 = vpop.permute.xlu1 %2914  ;;  %v2935_v26 = vpop.permute.xlu0 %2934  ;;  %v1728_v43 = vmul.f32 %v6315_v39, %v8421_v35  ;;  %v1733_v19 = vmul.f32 %v6315_v39, %v8422_v32  ;;  %v1019_v38 = vmul.f32 %v6321_v37, %v8423_v16  ;;  %v1872_v25 = vadd.f32 %v1731_v27, %v1022_v28  ;;  %v8426_v21 = vld [vmem:[#allocation350_spill] sm:$0xff]  ;;  %v8427_v28 = vld [vmem:[#allocation344_spill] sm:$0xff]  ;;  %v8431_v16 = vld [vmem:[#allocation71_spill] sm:$0xff] }
 0x418   : > { %3704 = vst [vmem:[%s6369_s30 + $0x88] sm:$0xff] %v3563_v51  ;;  %3709 = vst [vmem:[%s6369_s30 + $0xb0] sm:$0xff] %v3568_v30  ;;  %v3424_v36 = vmul.f32 %v6336_v40, %v2915_v33  ;;  %v3429_v22 = vmul.f32 %v6336_v40, %v2935_v26  ;;  %3170 = vperm.xlu1 %3965, %v8419_v45   ;;  %3190 = vperm.xlu0 %3966, %v8420_v20   ;;  %v8425_v26 = vld [vmem:[#allocation346_spill] sm:$0xff] }
 0x419   : > { %v1024_v23 = vmul.f32 %v6321_v37, %v8424_v17  ;;  %v2717_v33 = vadd.f32 %v2576_v29, %v1867_v31  ;;  %v2578_v18 = vmul.f32 %v6317_v34, %v8425_v26  ;;  %v2583_v41 = vmul.f32 %v6317_v34, %v8426_v21  ;;  %v8430_v31 = vld [vmem:[#allocation64_spill] sm:$0xff]  ;;  %v8432_v17 = vld [vmem:[#allocation77_spill] sm:$0xff] }
 0x41a   : > { %v3565_v51 = vadd.f32 %v3424_v36, %v2715_v12  ;;  %v3570_v30 = vadd.f32 %v3429_v22, %v2720_v14  ;;  %v2722_v35 = vadd.f32 %v2581_v24, %v1872_v25  ;;  %v8428_v12 = vld [vmem:[#allocation348_spill] sm:$0xff]  ;;  %v1869_v29 = vadd.f32 %v1728_v43, %v1019_v38  ;;  %v8429_v14 = vld [vmem:[#allocation58_spill] sm:$0xff] }
 0x41b   : > { %v2923_v45 = vpop.permute.xlu1 %2922  ;;  %v2943_v20 = vpop.permute.xlu0 %2942  ;;  %v1730_v36 = vmul.f32 %v6315_v39, %v8429_v14  ;;  %v1874_v22 = vadd.f32 %v1733_v19, %v1024_v23  ;;  %v1021_v24 = vmul.f32 %v6321_v37, %v8430_v31  ;;  %v1735_v25 = vmul.f32 %v6315_v39, %v8431_v16  ;;  %v8434_v23 = vld [vmem:[#allocation352_spill] sm:$0xff] }
 0x41c   : > { %3706 = vst [vmem:[%s6369_s30 + $0x98] sm:$0xff] %v3565_v51  ;;  %3711 = vst [vmem:[%s6369_s30 + $0xc0] sm:$0xff] %v3570_v30  ;;  %v3426_v32 = vmul.f32 %v6336_v40, %v2923_v45  ;;  %v3431_v27 = vmul.f32 %v6336_v40, %v2943_v20  ;;  %3178 = vperm.xlu1 %3965, %v8427_v28   ;;  %3198 = vperm.xlu0 %3966, %v8428_v12   ;;  %v8433_v45 = vld [vmem:[#allocation349_spill] sm:$0xff] }
 0x41d   : > { %v1026_v26 = vmul.f32 %v6321_v37, %v8432_v17  ;;  %v2719_v21 = vadd.f32 %v2578_v18, %v1869_v29  ;;  %v2580_v43 = vmul.f32 %v6317_v34, %v8433_v45  ;;  %v2724_v38 = vadd.f32 %v2583_v41, %v1874_v22  ;;  %v8436_v29 = vld [vmem:[#allocation75_spill] sm:$0xff]  ;;  %v8437_v22 = vld [vmem:[#allocation68_spill] sm:$0xff]  ;;  %v8438_v17 = vld [vmem:[#allocation81_spill] sm:$0xff] }
 0x41e   : > { %v3567_v51 = vadd.f32 %v3426_v32, %v2717_v33  ;;  %v3572_v30 = vadd.f32 %v3431_v27, %v2722_v35  ;;  %v2585_v28 = vmul.f32 %v6317_v34, %v8434_v23  ;;  %v4108_v35 = vld [vmem:[%s4298_s25 + $0x2b8] sm:$0xff]  ;;  %v4109_v32 = vld [vmem:[%s4298_s25 + $0x2e0] sm:$0xff]  ;;  %v1871_v18 = vadd.f32 %v1730_v36, %v1021_v24 }
 0x41f   : > { %v2931_v20 = vpop.permute.xlu1 %2930  ;;  %v2951_v19 = vpop.permute.xlu0 %2950  ;;  %v8435_v27 = vld [vmem:[#allocation62_spill] sm:$0xff]  ;;  %v1737_v14 = vmul.f32 %v6315_v39, %v8436_v29  ;;  %v1023_v31 = vmul.f32 %v6321_v37, %v8437_v22  ;;  %v1876_v16 = vadd.f32 %v1735_v25, %v1026_v26  ;;  %v1028_v45 = vmul.f32 %v6321_v37, %v8438_v17  ;;  %v8442_v29 = vld [vmem:[#allocation72_spill] sm:$0xff]  ;;  %v8443_v22 = vld [vmem:[#allocation79_spill] sm:$0xff] }
 0x420   : > { %3708 = vst [vmem:[%s6369_s30 + $0xa8] sm:$0xff] %v3567_v51  ;;  %3713 = vst [vmem:[%s6369_s30 + $0xd0] sm:$0xff] %v3572_v30  ;;  %v3428_v12 = vmul.f32 %v6336_v40, %v2931_v20  ;;  %v3433_v33 = vmul.f32 %v6336_v40, %v2951_v19  ;;  %3186 = vperm.xlu1 %3965, %v4108_v35   ;;  %3206 = vperm.xlu0 %3966, %v4109_v32   ;;  %v8439_v19 = vld [vmem:[#allocation351_spill] sm:$0xff]  ;;  %v8440_v24 = vld [vmem:[#allocation354_spill] sm:$0xff] }
 0x421   : > { %v1732_v41 = vmul.f32 %v6315_v39, %v8435_v27  ;;  %v2721_v20 = vadd.f32 %v2580_v43, %v1871_v18  ;;  %v2582_v36 = vmul.f32 %v6317_v34, %v8439_v19  ;;  %v2587_v23 = vmul.f32 %v6317_v34, %v8440_v24  ;;  %v8444_v17 = vld [vmem:[#allocation85_spill] sm:$0xff] }
 0x422   : > { %v3569_v51 = vadd.f32 %v3428_v12, %v2719_v21  ;;  %v3574_v30 = vadd.f32 %v3433_v33, %v2724_v38  ;;  %v2726_v27 = vadd.f32 %v2585_v28, %v1876_v16  ;;  %v4110_v21 = vld [vmem:[%s4298_s25 + $0x2c8] sm:$0xff]  ;;  %v4111_v38 = vld [vmem:[%s4298_s25 + $0x2f0] sm:$0xff]  ;;  %v8441_v12 = vld [vmem:[#allocation66_spill] sm:$0xff]  ;;  %v1878_v18 = vadd.f32 %v1737_v14, %v1028_v45 }
 0x423   : > { %v2939_v35 = vpop.permute.xlu1 %2938  ;;  %v2959_v32 = vpop.permute.xlu0 %2958  ;;  %v1873_v43 = vadd.f32 %v1732_v41, %v1023_v31  ;;  %v1734_v33 = vmul.f32 %v6315_v39, %v8441_v12  ;;  %v1025_v28 = vmul.f32 %v6321_v37, %v8442_v29  ;;  %v1739_v16 = vmul.f32 %v6315_v39, %v8443_v22  ;;  %v8446_v45 = vld [vmem:[#allocation356_spill] sm:$0xff] }
 0x424   : > { %3710 = vst [vmem:[%s6369_s30 + $0xb8] sm:$0xff] %v3569_v51  ;;  %3715 = vst [vmem:[%s6369_s30 + $0xe0] sm:$0xff] %v3574_v30  ;;  %v3430_v25 = vmul.f32 %v6336_v40, %v2939_v35  ;;  %v3435_v26 = vmul.f32 %v6336_v40, %v2959_v32  ;;  %3194 = vperm.xlu1 %3965, %v4110_v21   ;;  %3214 = vperm.xlu0 %3966, %v4111_v38   ;;  %v8445_v35 = vld [vmem:[#allocation353_spill] sm:$0xff] }
 0x425   : > { %v1030_v19 = vmul.f32 %v6321_v37, %v8444_v17  ;;  %v2723_v24 = vadd.f32 %v2582_v36, %v1873_v43  ;;  %v2584_v41 = vmul.f32 %v6317_v34, %v8445_v35  ;;  %v2728_v31 = vadd.f32 %v2587_v23, %v1878_v18  ;;  %v8448_v43 = vld [vmem:[#allocation83_spill] sm:$0xff]  ;;  %v8449_v18 = vld [vmem:[#allocation76_spill] sm:$0xff]  ;;  %v8450_v17 = vld [vmem:[#allocation89_spill] sm:$0xff] }
 0x426   : > { %v3571_v51 = vadd.f32 %v3430_v25, %v2721_v20  ;;  %v3576_v30 = vadd.f32 %v3435_v26, %v2726_v27  ;;  %v2589_v21 = vmul.f32 %v6317_v34, %v8446_v45  ;;  %v4112_v27 = vld [vmem:[%s4298_s25 + $0x2d8] sm:$0xff]  ;;  %v4113_v25 = vld [vmem:[%s4298_s25 + $0x300] sm:$0xff]  ;;  %v1875_v36 = vadd.f32 %v1734_v33, %v1025_v28 }
 0x427   : > { %v2947_v32 = vpop.permute.xlu1 %2946  ;;  %v2967_v14 = vpop.permute.xlu0 %2966  ;;  %v8447_v26 = vld [vmem:[#allocation70_spill] sm:$0xff]  ;;  %v1741_v12 = vmul.f32 %v6315_v39, %v8448_v43  ;;  %v1027_v29 = vmul.f32 %v6321_v37, %v8449_v18  ;;  %v1880_v22 = vadd.f32 %v1739_v16, %v1030_v19  ;;  %v1032_v35 = vmul.f32 %v6321_v37, %v8450_v17  ;;  %v8454_v43 = vld [vmem:[#allocation80_spill] sm:$0xff]  ;;  %v8455_v18 = vld [vmem:[#allocation87_spill] sm:$0xff] }
 0x428   : > { %3712 = vst [vmem:[%s6369_s30 + $0xc8] sm:$0xff] %v3571_v51  ;;  %3717 = vst [vmem:[%s6369_s30 + $0xf0] sm:$0xff] %v3576_v30  ;;  %v3432_v38 = vmul.f32 %v6336_v40, %v2947_v32  ;;  %v3437_v20 = vmul.f32 %v6336_v40, %v2967_v14  ;;  %3202 = vperm.xlu1 %3965, %v4112_v27   ;;  %3222 = vperm.xlu0 %3966, %v4113_v25   ;;  %v8451_v14 = vld [vmem:[#allocation355_spill] sm:$0xff]  ;;  %v8452_v28 = vld [vmem:[#allocation358_spill] sm:$0xff] }
 0x429   : > { %v1736_v23 = vmul.f32 %v6315_v39, %v8447_v26  ;;  %v2725_v32 = vadd.f32 %v2584_v41, %v1875_v36  ;;  %v2586_v33 = vmul.f32 %v6317_v34, %v8451_v14  ;;  %v2591_v45 = vmul.f32 %v6317_v34, %v8452_v28  ;;  %v8456_v17 = vld [vmem:[#allocation93_spill] sm:$0xff] }
 0x42a   : > { %v3573_v51 = vadd.f32 %v3432_v38, %v2723_v24  ;;  %v3578_v30 = vadd.f32 %v3437_v20, %v2728_v31  ;;  %v2730_v26 = vadd.f32 %v2589_v21, %v1880_v22  ;;  %v4114_v24 = vld [vmem:[%s4298_s25 + $0x2e8] sm:$0xff]  ;;  %v4115_v31 = vld [vmem:[%s4298_s25 + $0x310] sm:$0xff]  ;;  %v8453_v38 = vld [vmem:[#allocation74_spill] sm:$0xff]  ;;  %v1882_v36 = vadd.f32 %v1741_v12, %v1032_v35 }
 0x42b   : > { %v2955_v27 = vpop.permute.xlu1 %2954  ;;  %v2975_v25 = vpop.permute.xlu0 %2974  ;;  %v1877_v41 = vadd.f32 %v1736_v23, %v1027_v29  ;;  %v1738_v20 = vmul.f32 %v6315_v39, %v8453_v38  ;;  %v1029_v21 = vmul.f32 %v6321_v37, %v8454_v43  ;;  %v1743_v22 = vmul.f32 %v6315_v39, %v8455_v18  ;;  %v8458_v35 = vld [vmem:[#allocation360_spill] sm:$0xff] }
 0x42c   : > { %3714 = vst [vmem:[%s6369_s30 + $0xd8] sm:$0xff] %v3573_v51  ;;  %3719 = vst [vmem:[%s6369_s30 + $0x100] sm:$0xff] %v3578_v30  ;;  %v3434_v16 = vmul.f32 %v6336_v40, %v2955_v27  ;;  %v3439_v19 = vmul.f32 %v6336_v40, %v2975_v25  ;;  %3210 = vperm.xlu1 %3965, %v4114_v24   ;;  %3230 = vperm.xlu0 %3966, %v4115_v31   ;;  %v8457_v27 = vld [vmem:[#allocation357_spill] sm:$0xff] }
 0x42d   : > { %v1034_v14 = vmul.f32 %v6321_v37, %v8456_v17  ;;  %v2727_v28 = vadd.f32 %v2586_v33, %v1877_v41  ;;  %v2588_v23 = vmul.f32 %v6317_v34, %v8457_v27  ;;  %v2732_v29 = vadd.f32 %v2591_v45, %v1882_v36  ;;  %v8460_v41 = vld [vmem:[#allocation91_spill] sm:$0xff]  ;;  %v8461_v36 = vld [vmem:[#allocation84_spill] sm:$0xff]  ;;  %v8462_v17 = vld [vmem:[#allocation97_spill] sm:$0xff] }
 0x42e   : > { %v3575_v51 = vadd.f32 %v3434_v16, %v2725_v32  ;;  %v3580_v30 = vadd.f32 %v3439_v19, %v2730_v26  ;;  %v2593_v24 = vmul.f32 %v6317_v34, %v8458_v35  ;;  %v4116_v26 = vld [vmem:[%s4298_s25 + $0x2f8] sm:$0xff]  ;;  %v4117_v16 = vld [vmem:[%s4298_s25 + $0x320] sm:$0xff]  ;;  %v1879_v33 = vadd.f32 %v1738_v20, %v1029_v21 }
 0x42f   : > { %v2963_v25 = vpop.permute.xlu1 %2962  ;;  %v2983_v12 = vpop.permute.xlu0 %2982  ;;  %v8459_v19 = vld [vmem:[#allocation78_spill] sm:$0xff]  ;;  %v1745_v38 = vmul.f32 %v6315_v39, %v8460_v41  ;;  %v1031_v43 = vmul.f32 %v6321_v37, %v8461_v36  ;;  %v1884_v18 = vadd.f32 %v1743_v22, %v1034_v14  ;;  %v1036_v27 = vmul.f32 %v6321_v37, %v8462_v17  ;;  %v8466_v41 = vld [vmem:[#allocation88_spill] sm:$0xff]  ;;  %v8467_v36 = vld [vmem:[#allocation95_spill] sm:$0xff] }
 0x430   : > { %3716 = vst [vmem:[%s6369_s30 + $0xe8] sm:$0xff] %v3575_v51  ;;  %3721 = vst [vmem:[%s6369_s30 + $0x110] sm:$0xff] %v3580_v30  ;;  %v3436_v31 = vmul.f32 %v6336_v40, %v2963_v25  ;;  %v3441_v32 = vmul.f32 %v6336_v40, %v2983_v12  ;;  %3218 = vperm.xlu1 %3965, %v4116_v26   ;;  %3238 = vperm.xlu0 %3966, %v4117_v16   ;;  %v8463_v12 = vld [vmem:[#allocation359_spill] sm:$0xff]  ;;  %v8464_v21 = vld [vmem:[#allocation362_spill] sm:$0xff] }
 0x431   : > { %v1740_v45 = vmul.f32 %v6315_v39, %v8459_v19  ;;  %v2729_v25 = vadd.f32 %v2588_v23, %v1879_v33  ;;  %v2590_v20 = vmul.f32 %v6317_v34, %v8463_v12  ;;  %v2595_v35 = vmul.f32 %v6317_v34, %v8464_v21  ;;  %v8468_v17 = vld [vmem:[#allocation101_spill] sm:$0xff] }
 0x432   : > { %v3577_v51 = vadd.f32 %v3436_v31, %v2727_v28  ;;  %v3582_v30 = vadd.f32 %v3441_v32, %v2732_v29  ;;  %v2734_v19 = vadd.f32 %v2593_v24, %v1884_v18  ;;  %v4118_v28 = vld [vmem:[%s4298_s25 + $0x308] sm:$0xff]  ;;  %v4119_v29 = vld [vmem:[%s4298_s25 + $0x330] sm:$0xff]  ;;  %v8465_v31 = vld [vmem:[#allocation82_spill] sm:$0xff]  ;;  %v1886_v33 = vadd.f32 %v1745_v38, %v1036_v27 }
 0x433   : > { %v2971_v26 = vpop.permute.xlu1 %2970  ;;  %v2991_v16 = vpop.permute.xlu0 %2990  ;;  %v1881_v23 = vadd.f32 %v1740_v45, %v1031_v43  ;;  %v1742_v32 = vmul.f32 %v6315_v39, %v8465_v31  ;;  %v1033_v24 = vmul.f32 %v6321_v37, %v8466_v41  ;;  %v1747_v18 = vmul.f32 %v6315_v39, %v8467_v36  ;;  %v8470_v27 = vld [vmem:[#allocation364_spill] sm:$0xff] }
 0x434   : > { %3718 = vst [vmem:[%s6369_s30 + $0xf8] sm:$0xff] %v3577_v51  ;;  %3723 = vst [vmem:[%s6369_s30 + $0x120] sm:$0xff] %v3582_v30  ;;  %v3438_v22 = vmul.f32 %v6336_v40, %v2971_v26  ;;  %v3443_v14 = vmul.f32 %v6336_v40, %v2991_v16  ;;  %3226 = vperm.xlu1 %3965, %v4118_v28   ;;  %3246 = vperm.xlu0 %3966, %v4119_v29   ;;  %v8469_v26 = vld [vmem:[#allocation361_spill] sm:$0xff] }
 0x435   : > { %v1038_v12 = vmul.f32 %v6321_v37, %v8468_v17  ;;  %v2731_v21 = vadd.f32 %v2590_v20, %v1881_v23  ;;  %v2592_v45 = vmul.f32 %v6317_v34, %v8469_v26  ;;  %v2736_v43 = vadd.f32 %v2595_v35, %v1886_v33  ;;  %v8472_v23 = vld [vmem:[#allocation99_spill] sm:$0xff]  ;;  %v8473_v33 = vld [vmem:[#allocation92_spill] sm:$0xff]  ;;  %v8474_v17 = vld [vmem:[#allocation105_spill] sm:$0xff] }
 0x436   : > { %v3579_v51 = vadd.f32 %v3438_v22, %v2729_v25  ;;  %v3584_v30 = vadd.f32 %v3443_v14, %v2734_v19  ;;  %v2597_v28 = vmul.f32 %v6317_v34, %v8470_v27  ;;  %v4120_v19 = vld [vmem:[%s4298_s25 + $0x318] sm:$0xff]  ;;  %v4121_v22 = vld [vmem:[%s4298_s25 + $0x340] sm:$0xff]  ;;  %v1883_v20 = vadd.f32 %v1742_v32, %v1033_v24 }
 0x437   : > { %v2979_v16 = vpop.permute.xlu1 %2978  ;;  %v2999_v38 = vpop.permute.xlu0 %2998  ;;  %v8471_v14 = vld [vmem:[#allocation86_spill] sm:$0xff]  ;;  %v1749_v31 = vmul.f32 %v6315_v39, %v8472_v23  ;;  %v1035_v41 = vmul.f32 %v6321_v37, %v8473_v33  ;;  %v1888_v36 = vadd.f32 %v1747_v18, %v1038_v12  ;;  %v1040_v26 = vmul.f32 %v6321_v37, %v8474_v17  ;;  %v8478_v23 = vld [vmem:[#allocation96_spill] sm:$0xff]  ;;  %v8479_v33 = vld [vmem:[#allocation103_spill] sm:$0xff] }
 0x438   : > { %3720 = vst [vmem:[%s6369_s30 + $0x108] sm:$0xff] %v3579_v51  ;;  %3725 = vst [vmem:[%s6369_s30 + $0x130] sm:$0xff] %v3584_v30  ;;  %v3440_v29 = vmul.f32 %v6336_v40, %v2979_v16  ;;  %v3445_v25 = vmul.f32 %v6336_v40, %v2999_v38  ;;  %3234 = vperm.xlu1 %3965, %v4120_v19   ;;  %3254 = vperm.xlu0 %3966, %v4121_v22   ;;  %v8475_v38 = vld [vmem:[#allocation363_spill] sm:$0xff]  ;;  %v8476_v24 = vld [vmem:[#allocation366_spill] sm:$0xff] }
 0x439   : > { %v1744_v35 = vmul.f32 %v6315_v39, %v8471_v14  ;;  %v2733_v16 = vadd.f32 %v2592_v45, %v1883_v20  ;;  %v2594_v32 = vmul.f32 %v6317_v34, %v8475_v38  ;;  %v2599_v27 = vmul.f32 %v6317_v34, %v8476_v24  ;;  %v8480_v17 = vld [vmem:[#allocation109_spill] sm:$0xff] }
 0x43a   : > { %v3581_v51 = vadd.f32 %v3440_v29, %v2731_v21  ;;  %v3586_v30 = vadd.f32 %v3445_v25, %v2736_v43  ;;  %v2738_v14 = vadd.f32 %v2597_v28, %v1888_v36  ;;  %v4122_v21 = vld [vmem:[%s4298_s25 + $0x328] sm:$0xff]  ;;  %v4123_v43 = vld [vmem:[%s4298_s25 + $0x350] sm:$0xff]  ;;  %v8477_v29 = vld [vmem:[#allocation90_spill] sm:$0xff]  ;;  %v1890_v20 = vadd.f32 %v1749_v31, %v1040_v26 }
 0x43b   : > { %v2987_v19 = vpop.permute.xlu1 %2986  ;;  %v3007_v22 = vpop.permute.xlu0 %3006  ;;  %v1885_v45 = vadd.f32 %v1744_v35, %v1035_v41  ;;  %v1746_v25 = vmul.f32 %v6315_v39, %v8477_v29  ;;  %v1037_v28 = vmul.f32 %v6321_v37, %v8478_v23  ;;  %v1751_v36 = vmul.f32 %v6315_v39, %v8479_v33  ;;  %v8482_v26 = vld [vmem:[#allocation368_spill] sm:$0xff] }
 0x43c   : > { %3722 = vst [vmem:[%s6369_s30 + $0x118] sm:$0xff] %v3581_v51  ;;  %3727 = vst [vmem:[%s6369_s30 + $0x140] sm:$0xff] %v3586_v30  ;;  %v3442_v18 = vmul.f32 %v6336_v40, %v2987_v19  ;;  %v3447_v12 = vmul.f32 %v6336_v40, %v3007_v22  ;;  %3242 = vperm.xlu1 %3965, %v4122_v21   ;;  %3262 = vperm.xlu0 %3966, %v4123_v43   ;;  %v8481_v19 = vld [vmem:[#allocation365_spill] sm:$0xff] }
 0x43d   : > { %v1042_v38 = vmul.f32 %v6321_v37, %v8480_v17  ;;  %v2735_v24 = vadd.f32 %v2594_v32, %v1885_v45  ;;  %v2596_v35 = vmul.f32 %v6317_v34, %v8481_v19  ;;  %v2740_v41 = vadd.f32 %v2599_v27, %v1890_v20  ;;  %v8484_v45 = vld [vmem:[#allocation107_spill] sm:$0xff]  ;;  %v8485_v20 = vld [vmem:[#allocation100_spill] sm:$0xff]  ;;  %v8486_v17 = vld [vmem:[#allocation113_spill] sm:$0xff] }
 0x43e   : > { %v3583_v51 = vadd.f32 %v3442_v18, %v2733_v16  ;;  %v3588_v30 = vadd.f32 %v3447_v12, %v2738_v14  ;;  %v2601_v21 = vmul.f32 %v6317_v34, %v8482_v26  ;;  %v4124_v14 = vld [vmem:[%s4298_s25 + $0x338] sm:$0xff]  ;;  %v4125_v18 = vld [vmem:[%s4298_s25 + $0x360] sm:$0xff]  ;;  %v1887_v32 = vadd.f32 %v1746_v25, %v1037_v28 }
 0x43f   : > { %v2995_v22 = vpop.permute.xlu1 %2994  ;;  %v3015_v31 = vpop.permute.xlu0 %3014  ;;  %v8483_v12 = vld [vmem:[#allocation94_spill] sm:$0xff]  ;;  %v1753_v29 = vmul.f32 %v6315_v39, %v8484_v45  ;;  %v1039_v23 = vmul.f32 %v6321_v37, %v8485_v20  ;;  %v1892_v33 = vadd.f32 %v1751_v36, %v1042_v38  ;;  %v1044_v19 = vmul.f32 %v6321_v37, %v8486_v17  ;;  %v8490_v45 = vld [vmem:[#allocation104_spill] sm:$0xff]  ;;  %v8491_v20 = vld [vmem:[#allocation111_spill] sm:$0xff] }
 0x440   : > { %3724 = vst [vmem:[%s6369_s30 + $0x128] sm:$0xff] %v3583_v51  ;;  %3729 = vst [vmem:[%s6369_s30 + $0x150] sm:$0xff] %v3588_v30  ;;  %v3444_v43 = vmul.f32 %v6336_v40, %v2995_v22  ;;  %v3449_v16 = vmul.f32 %v6336_v40, %v3015_v31  ;;  %3250 = vperm.xlu1 %3965, %v4124_v14   ;;  %3270 = vperm.xlu0 %3966, %v4125_v18   ;;  %v8487_v31 = vld [vmem:[#allocation367_spill] sm:$0xff]  ;;  %v8488_v28 = vld [vmem:[#allocation370_spill] sm:$0xff] }
 0x441   : > { %v1748_v27 = vmul.f32 %v6315_v39, %v8483_v12  ;;  %v2737_v22 = vadd.f32 %v2596_v35, %v1887_v32  ;;  %v2598_v25 = vmul.f32 %v6317_v34, %v8487_v31  ;;  %v2603_v26 = vmul.f32 %v6317_v34, %v8488_v28  ;;  %v8492_v17 = vld [vmem:[#allocation117_spill] sm:$0xff] }
 0x442   : > { %v3585_v51 = vadd.f32 %v3444_v43, %v2735_v24  ;;  %v3590_v30 = vadd.f32 %v3449_v16, %v2740_v41  ;;  %v2742_v12 = vadd.f32 %v2601_v21, %v1892_v33  ;;  %v4126_v24 = vld [vmem:[%s4298_s25 + $0x348] sm:$0xff]  ;;  %v4127_v41 = vld [vmem:[%s4298_s25 + $0x370] sm:$0xff]  ;;  %v8489_v43 = vld [vmem:[#allocation98_spill] sm:$0xff]  ;;  %v1894_v32 = vadd.f32 %v1753_v29, %v1044_v19 }
 0x443   : > { %v3003_v14 = vpop.permute.xlu1 %3002  ;;  %v3023_v18 = vpop.permute.xlu0 %3022  ;;  %v1889_v35 = vadd.f32 %v1748_v27, %v1039_v23  ;;  %v1750_v16 = vmul.f32 %v6315_v39, %v8489_v43  ;;  %v1041_v21 = vmul.f32 %v6321_v37, %v8490_v45  ;;  %v1755_v33 = vmul.f32 %v6315_v39, %v8491_v20  ;;  %v8494_v19 = vld [vmem:[#allocation372_spill] sm:$0xff] }
 0x444   : > { %3726 = vst [vmem:[%s6369_s30 + $0x138] sm:$0xff] %v3585_v51  ;;  %3731 = vst [vmem:[%s6369_s30 + $0x160] sm:$0xff] %v3590_v30  ;;  %v3446_v36 = vmul.f32 %v6336_v40, %v3003_v14  ;;  %v3451_v38 = vmul.f32 %v6336_v40, %v3023_v18  ;;  %3258 = vperm.xlu1 %3965, %v4126_v24   ;;  %3278 = vperm.xlu0 %3966, %v4127_v41   ;;  %v8493_v14 = vld [vmem:[#allocation369_spill] sm:$0xff] }
 0x445   : > { %v1046_v31 = vmul.f32 %v6321_v37, %v8492_v17  ;;  %v2739_v28 = vadd.f32 %v2598_v25, %v1889_v35  ;;  %v2600_v27 = vmul.f32 %v6317_v34, %v8493_v14  ;;  %v2744_v23 = vadd.f32 %v2603_v26, %v1894_v32  ;;  %v8496_v35 = vld [vmem:[#allocation115_spill] sm:$0xff]  ;;  %v8497_v32 = vld [vmem:[#allocation108_spill] sm:$0xff]  ;;  %v8498_v17 = vld [vmem:[#allocation121_spill] sm:$0xff] }
 0x446   : > { %v3587_v51 = vadd.f32 %v3446_v36, %v2737_v22  ;;  %v3592_v30 = vadd.f32 %v3451_v38, %v2742_v12  ;;  %v2605_v24 = vmul.f32 %v6317_v34, %v8494_v19  ;;  %v4128_v12 = vld [vmem:[%s4298_s25 + $0x358] sm:$0xff]  ;;  %v4129_v36 = vld [vmem:[%s4298_s25 + $0x380] sm:$0xff]  ;;  %v1891_v25 = vadd.f32 %v1750_v16, %v1041_v21 }
 0x447   : > { %v3011_v18 = vpop.permute.xlu1 %3010  ;;  %v3031_v29 = vpop.permute.xlu0 %3030  ;;  %v8495_v38 = vld [vmem:[#allocation102_spill] sm:$0xff]  ;;  %v1757_v43 = vmul.f32 %v6315_v39, %v8496_v35  ;;  %v1043_v45 = vmul.f32 %v6321_v37, %v8497_v32  ;;  %v1896_v20 = vadd.f32 %v1755_v33, %v1046_v31  ;;  %v1048_v14 = vmul.f32 %v6321_v37, %v8498_v17  ;;  %v8502_v35 = vld [vmem:[#allocation112_spill] sm:$0xff]  ;;  %v8503_v32 = vld [vmem:[#allocation119_spill] sm:$0xff] }
 0x448   : > { %3728 = vst [vmem:[%s6369_s30 + $0x148] sm:$0xff] %v3587_v51  ;;  %3733 = vst [vmem:[%s6369_s30 + $0x170] sm:$0xff] %v3592_v30  ;;  %v3448_v41 = vmul.f32 %v6336_v40, %v3011_v18  ;;  %v3453_v22 = vmul.f32 %v6336_v40, %v3031_v29  ;;  %3266 = vperm.xlu1 %3965, %v4128_v12   ;;  %3286 = vperm.xlu0 %3966, %v4129_v36   ;;  %v8499_v29 = vld [vmem:[#allocation371_spill] sm:$0xff]  ;;  %v8500_v21 = vld [vmem:[#allocation374_spill] sm:$0xff] }
 0x449   : > { %v1752_v26 = vmul.f32 %v6315_v39, %v8495_v38  ;;  %v2741_v18 = vadd.f32 %v2600_v27, %v1891_v25  ;;  %v2602_v16 = vmul.f32 %v6317_v34, %v8499_v29  ;;  %v2607_v19 = vmul.f32 %v6317_v34, %v8500_v21  ;;  %v8504_v17 = vld [vmem:[#allocation125_spill] sm:$0xff] }
 0x44a   : > { %v3589_v51 = vadd.f32 %v3448_v41, %v2739_v28  ;;  %v3594_v30 = vadd.f32 %v3453_v22, %v2744_v23  ;;  %v2746_v38 = vadd.f32 %v2605_v24, %v1896_v20  ;;  %v4130_v28 = vld [vmem:[%s4298_s25 + $0x368] sm:$0xff]  ;;  %v4131_v23 = vld [vmem:[%s4298_s25 + $0x390] sm:$0xff]  ;;  %v8501_v41 = vld [vmem:[#allocation106_spill] sm:$0xff]  ;;  %v1898_v25 = vadd.f32 %v1757_v43, %v1048_v14 }
 0x44b   : > { %v3019_v12 = vpop.permute.xlu1 %3018  ;;  %v3039_v36 = vpop.permute.xlu0 %3038  ;;  %v1893_v27 = vadd.f32 %v1752_v26, %v1043_v45  ;;  %v1754_v22 = vmul.f32 %v6315_v39, %v8501_v41  ;;  %v1045_v24 = vmul.f32 %v6321_v37, %v8502_v35  ;;  %v1759_v20 = vmul.f32 %v6315_v39, %v8503_v32  ;;  %v8506_v14 = vld [vmem:[#allocation376_spill] sm:$0xff] }
 0x44c   : > { %3730 = vst [vmem:[%s6369_s30 + $0x158] sm:$0xff] %v3589_v51  ;;  %3735 = vst [vmem:[%s6369_s30 + $0x180] sm:$0xff] %v3594_v30  ;;  %v3450_v33 = vmul.f32 %v6336_v40, %v3019_v12  ;;  %v3455_v31 = vmul.f32 %v6336_v40, %v3039_v36  ;;  %3274 = vperm.xlu1 %3965, %v4130_v28   ;;  %3294 = vperm.xlu0 %3966, %v4131_v23   ;;  %v8505_v12 = vld [vmem:[#allocation373_spill] sm:$0xff] }
 0x44d   : > { %v1050_v29 = vmul.f32 %v6321_v37, %v8504_v17  ;;  %v2743_v21 = vadd.f32 %v2602_v16, %v1893_v27  ;;  %v2604_v26 = vmul.f32 %v6317_v34, %v8505_v12  ;;  %v2748_v45 = vadd.f32 %v2607_v19, %v1898_v25  ;;  %v8508_v27 = vld [vmem:[#allocation123_spill] sm:$0xff]  ;;  %v8509_v25 = vld [vmem:[#allocation116_spill] sm:$0xff]  ;;  %v8510_v17 = vld [vmem:[#allocation129_spill] sm:$0xff] }
 0x44e   : > { %v3591_v51 = vadd.f32 %v3450_v33, %v2741_v18  ;;  %v3596_v30 = vadd.f32 %v3455_v31, %v2746_v38  ;;  %v2609_v28 = vmul.f32 %v6317_v34, %v8506_v14  ;;  %v4132_v38 = vld [vmem:[%s4298_s25 + $0x378] sm:$0xff]  ;;  %v4133_v33 = vld [vmem:[%s4298_s25 + $0x3a0] sm:$0xff]  ;;  %v1895_v16 = vadd.f32 %v1754_v22, %v1045_v24 }
 0x44f   : > { %v3027_v36 = vpop.permute.xlu1 %3026  ;;  %v3047_v43 = vpop.permute.xlu0 %3046  ;;  %v8507_v31 = vld [vmem:[#allocation110_spill] sm:$0xff]  ;;  %v1761_v41 = vmul.f32 %v6315_v39, %v8508_v27  ;;  %v1047_v35 = vmul.f32 %v6321_v37, %v8509_v25  ;;  %v1900_v32 = vadd.f32 %v1759_v20, %v1050_v29  ;;  %v1052_v12 = vmul.f32 %v6321_v37, %v8510_v17  ;;  %v8514_v27 = vld [vmem:[#allocation120_spill] sm:$0xff]  ;;  %v8515_v25 = vld [vmem:[#allocation127_spill] sm:$0xff] }
 0x450   : > { %3732 = vst [vmem:[%s6369_s30 + $0x168] sm:$0xff] %v3591_v51  ;;  %3737 = vst [vmem:[%s6369_s30 + $0x190] sm:$0xff] %v3596_v30  ;;  %v3452_v23 = vmul.f32 %v6336_v40, %v3027_v36  ;;  %v3457_v18 = vmul.f32 %v6336_v40, %v3047_v43  ;;  %3282 = vperm.xlu1 %3965, %v4132_v38   ;;  %3302 = vperm.xlu0 %3966, %v4133_v33   ;;  %v8511_v43 = vld [vmem:[#allocation375_spill] sm:$0xff]  ;;  %v8512_v24 = vld [vmem:[#allocation378_spill] sm:$0xff] }
 0x451   : > { %v1756_v19 = vmul.f32 %v6315_v39, %v8507_v31  ;;  %v2745_v36 = vadd.f32 %v2604_v26, %v1895_v16  ;;  %v2606_v22 = vmul.f32 %v6317_v34, %v8511_v43  ;;  %v2611_v14 = vmul.f32 %v6317_v34, %v8512_v24  ;;  %v8516_v17 = vld [vmem:[#allocation133_spill] sm:$0xff] }
 0x452   : > { %v3593_v51 = vadd.f32 %v3452_v23, %v2743_v21  ;;  %v3598_v30 = vadd.f32 %v3457_v18, %v2748_v45  ;;  %v2750_v31 = vadd.f32 %v2609_v28, %v1900_v32  ;;  %v4134_v21 = vld [vmem:[%s4298_s25 + $0x388] sm:$0xff]  ;;  %v4135_v45 = vld [vmem:[%s4298_s25 + $0x3b0] sm:$0xff]  ;;  %v8513_v23 = vld [vmem:[#allocation114_spill] sm:$0xff]  ;;  %v1902_v16 = vadd.f32 %v1761_v41, %v1052_v12 }
 0x453   : > { %v3035_v38 = vpop.permute.xlu1 %3034  ;;  %v3055_v33 = vpop.permute.xlu0 %3054  ;;  %v1897_v26 = vadd.f32 %v1756_v19, %v1047_v35  ;;  %v1758_v18 = vmul.f32 %v6315_v39, %v8513_v23  ;;  %v1049_v28 = vmul.f32 %v6321_v37, %v8514_v27  ;;  %v1763_v32 = vmul.f32 %v6315_v39, %v8515_v25  ;;  %v8518_v12 = vld [vmem:[#allocation380_spill] sm:$0xff] }
 0x454   : > { %3734 = vst [vmem:[%s6369_s30 + $0x178] sm:$0xff] %v3593_v51  ;;  %3739 = vst [vmem:[%s6369_s30 + $0x1a0] sm:$0xff] %v3598_v30  ;;  %v3454_v20 = vmul.f32 %v6336_v40, %v3035_v38  ;;  %v3459_v29 = vmul.f32 %v6336_v40, %v3055_v33  ;;  %3290 = vperm.xlu1 %3965, %v4134_v21   ;;  %3310 = vperm.xlu0 %3966, %v4135_v45   ;;  %v8517_v38 = vld [vmem:[#allocation377_spill] sm:$0xff] }
 0x455   : > { %v1054_v43 = vmul.f32 %v6321_v37, %v8516_v17  ;;  %v2747_v24 = vadd.f32 %v2606_v22, %v1897_v26  ;;  %v2608_v19 = vmul.f32 %v6317_v34, %v8517_v38  ;;  %v2752_v35 = vadd.f32 %v2611_v14, %v1902_v16  ;;  %v8520_v26 = vld [vmem:[#allocation131_spill] sm:$0xff]  ;;  %v8521_v16 = vld [vmem:[#allocation124_spill] sm:$0xff]  ;;  %v8522_v17 = vld [vmem:[#allocation137_spill] sm:$0xff] }
 0x456   : > { %v3595_v51 = vadd.f32 %v3454_v20, %v2745_v36  ;;  %v3600_v30 = vadd.f32 %v3459_v29, %v2750_v31  ;;  %v2613_v21 = vmul.f32 %v6317_v34, %v8518_v12  ;;  %v4136_v31 = vld [vmem:[%s4298_s25 + $0x398] sm:$0xff]  ;;  %v4137_v20 = vld [vmem:[%s4298_s25 + $0x3c0] sm:$0xff]  ;;  %v1899_v22 = vadd.f32 %v1758_v18, %v1049_v28 }
 0x457   : > { %v3043_v33 = vpop.permute.xlu1 %3042  ;;  %v3063_v41 = vpop.permute.xlu0 %3062  ;;  %v8519_v29 = vld [vmem:[#allocation118_spill] sm:$0xff]  ;;  %v1765_v23 = vmul.f32 %v6315_v39, %v8520_v26  ;;  %v1051_v27 = vmul.f32 %v6321_v37, %v8521_v16  ;;  %v1904_v25 = vadd.f32 %v1763_v32, %v1054_v43  ;;  %v1056_v38 = vmul.f32 %v6321_v37, %v8522_v17  ;;  %v8526_v26 = vld [vmem:[#allocation128_spill] sm:$0xff]  ;;  %v8527_v16 = vld [vmem:[#allocation135_spill] sm:$0xff] }
 0x458   : > { %3736 = vst [vmem:[%s6369_s30 + $0x188] sm:$0xff] %v3595_v51  ;;  %3741 = vst [vmem:[%s6369_s30 + $0x1b0] sm:$0xff] %v3600_v30  ;;  %v3456_v45 = vmul.f32 %v6336_v40, %v3043_v33  ;;  %v3461_v36 = vmul.f32 %v6336_v40, %v3063_v41  ;;  %3298 = vperm.xlu1 %3965, %v4136_v31   ;;  %3318 = vperm.xlu0 %3966, %v4137_v20   ;;  %v8523_v41 = vld [vmem:[#allocation379_spill] sm:$0xff]  ;;  %v8524_v28 = vld [vmem:[#allocation382_spill] sm:$0xff] }
 0x459   : > { %v1760_v14 = vmul.f32 %v6315_v39, %v8519_v29  ;;  %v2749_v33 = vadd.f32 %v2608_v19, %v1899_v22  ;;  %v2610_v18 = vmul.f32 %v6317_v34, %v8523_v41  ;;  %v2615_v12 = vmul.f32 %v6317_v34, %v8524_v28  ;;  %v8528_v17 = vld [vmem:[#allocation141_spill] sm:$0xff] }
 0x45a   : > { %v3597_v51 = vadd.f32 %v3456_v45, %v2747_v24  ;;  %v3602_v30 = vadd.f32 %v3461_v36, %v2752_v35  ;;  %v2754_v29 = vadd.f32 %v2613_v21, %v1904_v25  ;;  %v4138_v24 = vld [vmem:[%s4298_s25 + $0x3a8] sm:$0xff]  ;;  %v4139_v35 = vld [vmem:[%s4298_s25 + $0x3d0] sm:$0xff]  ;;  %v8525_v45 = vld [vmem:[#allocation122_spill] sm:$0xff]  ;;  %v1906_v22 = vadd.f32 %v1765_v23, %v1056_v38 }
 0x45b   : > { %v3051_v31 = vpop.permute.xlu1 %3050  ;;  %v3071_v20 = vpop.permute.xlu0 %3070  ;;  %v1901_v19 = vadd.f32 %v1760_v14, %v1051_v27  ;;  %v1762_v36 = vmul.f32 %v6315_v39, %v8525_v45  ;;  %v1053_v21 = vmul.f32 %v6321_v37, %v8526_v26  ;;  %v1767_v25 = vmul.f32 %v6315_v39, %v8527_v16  ;;  %v8530_v38 = vld [vmem:[#allocation384_spill] sm:$0xff] }
 0x45c   : > { %3738 = vst [vmem:[%s6369_s30 + $0x198] sm:$0xff] %v3597_v51  ;;  %3743 = vst [vmem:[%s6369_s30 + $0x1c0] sm:$0xff] %v3602_v30  ;;  %v3458_v32 = vmul.f32 %v6336_v40, %v3051_v31  ;;  %v3463_v43 = vmul.f32 %v6336_v40, %v3071_v20  ;;  %3306 = vperm.xlu1 %3965, %v4138_v24   ;;  %3326 = vperm.xlu0 %3966, %v4139_v35   ;;  %v8529_v31 = vld [vmem:[#allocation381_spill] sm:$0xff] }
 0x45d   : > { %v1058_v41 = vmul.f32 %v6321_v37, %v8528_v17  ;;  %v2751_v28 = vadd.f32 %v2610_v18, %v1901_v19  ;;  %v2612_v14 = vmul.f32 %v6317_v34, %v8529_v31  ;;  %v2756_v27 = vadd.f32 %v2615_v12, %v1906_v22  ;;  %v8532_v19 = vld [vmem:[#allocation139_spill] sm:$0xff]  ;;  %v8533_v22 = vld [vmem:[#allocation132_spill] sm:$0xff]  ;;  %v8534_v17 = vld [vmem:[#allocation145_spill] sm:$0xff] }
 0x45e   : > { %v3599_v51 = vadd.f32 %v3458_v32, %v2749_v33  ;;  %v3604_v30 = vadd.f32 %v3463_v43, %v2754_v29  ;;  %v2617_v24 = vmul.f32 %v6317_v34, %v8530_v38  ;;  %v4140_v29 = vld [vmem:[%s4298_s25 + $0x3b8] sm:$0xff]  ;;  %v4141_v32 = vld [vmem:[%s4298_s25 + $0x3e0] sm:$0xff]  ;;  %v1903_v18 = vadd.f32 %v1762_v36, %v1053_v21 }
 0x45f   : > { %v3059_v20 = vpop.permute.xlu1 %3058  ;;  %v3079_v23 = vpop.permute.xlu0 %3078  ;;  %v8531_v43 = vld [vmem:[#allocation126_spill] sm:$0xff]  ;;  %v1769_v45 = vmul.f32 %v6315_v39, %v8532_v19  ;;  %v1055_v26 = vmul.f32 %v6321_v37, %v8533_v22  ;;  %v1908_v16 = vadd.f32 %v1767_v25, %v1058_v41  ;;  %v1060_v31 = vmul.f32 %v6321_v37, %v8534_v17  ;;  %v8538_v19 = vld [vmem:[#allocation136_spill] sm:$0xff]  ;;  %v8539_v22 = vld [vmem:[#allocation143_spill] sm:$0xff] }
 0x460   : > { %3740 = vst [vmem:[%s6369_s30 + $0x1a8] sm:$0xff] %v3599_v51  ;;  %3745 = vst [vmem:[%s6369_s30 + $0x1d0] sm:$0xff] %v3604_v30  ;;  %v3460_v35 = vmul.f32 %v6336_v40, %v3059_v20  ;;  %v3465_v33 = vmul.f32 %v6336_v40, %v3079_v23  ;;  %3314 = vperm.xlu1 %3965, %v4140_v29   ;;  %3334 = vperm.xlu0 %3966, %v4141_v32   ;;  %v8535_v23 = vld [vmem:[#allocation383_spill] sm:$0xff]  ;;  %v8536_v21 = vld [vmem:[#allocation386_spill] sm:$0xff] }
 0x461   : > { %v1764_v12 = vmul.f32 %v6315_v39, %v8531_v43  ;;  %v2753_v20 = vadd.f32 %v2612_v14, %v1903_v18  ;;  %v2614_v36 = vmul.f32 %v6317_v34, %v8535_v23  ;;  %v2619_v38 = vmul.f32 %v6317_v34, %v8536_v21  ;;  %v8540_v17 = vld [vmem:[#allocation149_spill] sm:$0xff] }
 0x462   : > { %v3601_v51 = vadd.f32 %v3460_v35, %v2751_v28  ;;  %v3606_v30 = vadd.f32 %v3465_v33, %v2756_v27  ;;  %v2758_v43 = vadd.f32 %v2617_v24, %v1908_v16  ;;  %v4142_v28 = vld [vmem:[%s4298_s25 + $0x3c8] sm:$0xff]  ;;  %v4143_v27 = vld [vmem:[%s4298_s25 + $0x3f0] sm:$0xff]  ;;  %v8537_v35 = vld [vmem:[#allocation130_spill] sm:$0xff]  ;;  %v1910_v18 = vadd.f32 %v1769_v45, %v1060_v31 }
 0x463   : > { %v3067_v29 = vpop.permute.xlu1 %3066  ;;  %v3087_v32 = vpop.permute.xlu0 %3086  ;;  %v1905_v14 = vadd.f32 %v1764_v12, %v1055_v26  ;;  %v1766_v33 = vmul.f32 %v6315_v39, %v8537_v35  ;;  %v1057_v24 = vmul.f32 %v6321_v37, %v8538_v19  ;;  %v1771_v16 = vmul.f32 %v6315_v39, %v8539_v22  ;;  %v8542_v31 = vld [vmem:[#allocation388_spill] sm:$0xff] }
 0x464   : > { %3742 = vst [vmem:[%s6369_s30 + $0x1b8] sm:$0xff] %v3601_v51  ;;  %3747 = vst [vmem:[%s6369_s30 + $0x1e0] sm:$0xff] %v3606_v30  ;;  %v3462_v25 = vmul.f32 %v6336_v40, %v3067_v29  ;;  %v3467_v41 = vmul.f32 %v6336_v40, %v3087_v32  ;;  %3322 = vperm.xlu1 %3965, %v4142_v28   ;;  %3342 = vperm.xlu0 %3966, %v4143_v27   ;;  %v8541_v29 = vld [vmem:[#allocation385_spill] sm:$0xff] }
 0x465   : > { %v1062_v23 = vmul.f32 %v6321_v37, %v8540_v17  ;;  %v2755_v21 = vadd.f32 %v2614_v36, %v1905_v14  ;;  %v2616_v12 = vmul.f32 %v6317_v34, %v8541_v29  ;;  %v2760_v26 = vadd.f32 %v2619_v38, %v1910_v18  ;;  %v8544_v14 = vld [vmem:[#allocation147_spill] sm:$0xff]  ;;  %v8545_v18 = vld [vmem:[#allocation140_spill] sm:$0xff]  ;;  %v8546_v17 = vld [vmem:[#allocation153_spill] sm:$0xff] }
 0x466   : > { %v3603_v51 = vadd.f32 %v3462_v25, %v2753_v20  ;;  %v3608_v30 = vadd.f32 %v3467_v41, %v2758_v43  ;;  %v2621_v28 = vmul.f32 %v6317_v34, %v8542_v31  ;;  %v4144_v43 = vld [vmem:[%s4298_s25 + $0x3d8] sm:$0xff]  ;;  %v4145_v25 = vld [vmem:[%s4298_s25 + $0x400] sm:$0xff]  ;;  %v1907_v36 = vadd.f32 %v1766_v33, %v1057_v24 }
 0x467   : > { %v3075_v32 = vpop.permute.xlu1 %3074  ;;  %v3095_v45 = vpop.permute.xlu0 %3094  ;;  %v8543_v41 = vld [vmem:[#allocation134_spill] sm:$0xff]  ;;  %v1773_v35 = vmul.f32 %v6315_v39, %v8544_v14  ;;  %v1059_v19 = vmul.f32 %v6321_v37, %v8545_v18  ;;  %v1912_v22 = vadd.f32 %v1771_v16, %v1062_v23  ;;  %v1064_v29 = vmul.f32 %v6321_v37, %v8546_v17  ;;  %v8550_v14 = vld [vmem:[#allocation144_spill] sm:$0xff]  ;;  %v8551_v18 = vld [vmem:[#allocation151_spill] sm:$0xff] }
 0x468   : > { %3744 = vst [vmem:[%s6369_s30 + $0x1c8] sm:$0xff] %v3603_v51  ;;  %3749 = vst [vmem:[%s6369_s30 + $0x1f0] sm:$0xff] %v3608_v30  ;;  %v3464_v27 = vmul.f32 %v6336_v40, %v3075_v32  ;;  %v3469_v20 = vmul.f32 %v6336_v40, %v3095_v45  ;;  %3330 = vperm.xlu1 %3965, %v4144_v43   ;;  %3350 = vperm.xlu0 %3966, %v4145_v25   ;;  %v8547_v45 = vld [vmem:[#allocation387_spill] sm:$0xff]  ;;  %v8548_v24 = vld [vmem:[#allocation390_spill] sm:$0xff] }
 0x469   : > { %v1768_v38 = vmul.f32 %v6315_v39, %v8543_v41  ;;  %v2757_v32 = vadd.f32 %v2616_v12, %v1907_v36  ;;  %v2618_v33 = vmul.f32 %v6317_v34, %v8547_v45  ;;  %v2623_v31 = vmul.f32 %v6317_v34, %v8548_v24  ;;  %v8552_v17 = vld [vmem:[#allocation157_spill] sm:$0xff] }
 0x46a   : > { %v3605_v51 = vadd.f32 %v3464_v27, %v2755_v21  ;;  %v3610_v30 = vadd.f32 %v3469_v20, %v2760_v26  ;;  %v2762_v41 = vadd.f32 %v2621_v28, %v1912_v22  ;;  %v4146_v21 = vld [vmem:[%s4298_s25 + $0x3e8] sm:$0xff]  ;;  %v4147_v26 = vld [vmem:[%s4298_s25 + $0x410] sm:$0xff]  ;;  %v8549_v27 = vld [vmem:[#allocation138_spill] sm:$0xff]  ;;  %v1914_v36 = vadd.f32 %v1773_v35, %v1064_v29 }
 0x46b   : > { %v3083_v43 = vpop.permute.xlu1 %3082  ;;  %v3103_v25 = vpop.permute.xlu0 %3102  ;;  %v1909_v12 = vadd.f32 %v1768_v38, %v1059_v19  ;;  %v1770_v20 = vmul.f32 %v6315_v39, %v8549_v27  ;;  %v1061_v28 = vmul.f32 %v6321_v37, %v8550_v14  ;;  %v1775_v22 = vmul.f32 %v6315_v39, %v8551_v18  ;;  %v8554_v29 = vld [vmem:[#allocation392_spill] sm:$0xff] }
 0x46c   : > { %3746 = vst [vmem:[%s6369_s30 + $0x1d8] sm:$0xff] %v3605_v51  ;;  %3751 = vst [vmem:[%s6369_s30 + $0x200] sm:$0xff] %v3610_v30  ;;  %v3466_v16 = vmul.f32 %v6336_v40, %v3083_v43  ;;  %v3471_v23 = vmul.f32 %v6336_v40, %v3103_v25  ;;  %3338 = vperm.xlu1 %3965, %v4146_v21   ;;  %3358 = vperm.xlu0 %3966, %v4147_v26   ;;  %v8553_v43 = vld [vmem:[#allocation389_spill] sm:$0xff] }
 0x46d   : > { %v1066_v45 = vmul.f32 %v6321_v37, %v8552_v17  ;;  %v2759_v24 = vadd.f32 %v2618_v33, %v1909_v12  ;;  %v2620_v38 = vmul.f32 %v6317_v34, %v8553_v43  ;;  %v2764_v19 = vadd.f32 %v2623_v31, %v1914_v36  ;;  %v8556_v12 = vld [vmem:[#allocation155_spill] sm:$0xff]  ;;  %v8557_v36 = vld [vmem:[#allocation148_spill] sm:$0xff]  ;;  %v8558_v17 = vld [vmem:[#allocation161_spill] sm:$0xff] }
 0x46e   : > { %v3607_v51 = vadd.f32 %v3466_v16, %v2757_v32  ;;  %v3612_v30 = vadd.f32 %v3471_v23, %v2762_v41  ;;  %v2625_v21 = vmul.f32 %v6317_v34, %v8554_v29  ;;  %v4148_v41 = vld [vmem:[%s4298_s25 + $0x3f8] sm:$0xff]  ;;  %v4149_v16 = vld [vmem:[%s4298_s25 + $0x420] sm:$0xff]  ;;  %v1911_v33 = vadd.f32 %v1770_v20, %v1061_v28 }
 0x46f   : > { %v3091_v25 = vpop.permute.xlu1 %3090  ;;  %v3111_v35 = vpop.permute.xlu0 %3110  ;;  %v8555_v23 = vld [vmem:[#allocation142_spill] sm:$0xff]  ;;  %v1777_v27 = vmul.f32 %v6315_v39, %v8556_v12  ;;  %v1063_v14 = vmul.f32 %v6321_v37, %v8557_v36  ;;  %v1916_v18 = vadd.f32 %v1775_v22, %v1066_v45  ;;  %v1068_v43 = vmul.f32 %v6321_v37, %v8558_v17  ;;  %v8562_v12 = vld [vmem:[#allocation152_spill] sm:$0xff]  ;;  %v8563_v36 = vld [vmem:[#allocation159_spill] sm:$0xff] }
 0x470   : > { %3748 = vst [vmem:[%s6369_s30 + $0x1e8] sm:$0xff] %v3607_v51  ;;  %3753 = vst [vmem:[%s6369_s30 + $0x210] sm:$0xff] %v3612_v30  ;;  %v3468_v26 = vmul.f32 %v6336_v40, %v3091_v25  ;;  %v3473_v32 = vmul.f32 %v6336_v40, %v3111_v35  ;;  %3346 = vperm.xlu1 %3965, %v4148_v41   ;;  %3366 = vperm.xlu0 %3966, %v4149_v16   ;;  %v8559_v35 = vld [vmem:[#allocation391_spill] sm:$0xff]  ;;  %v8560_v28 = vld [vmem:[#allocation394_spill] sm:$0xff] }
 0x471   : > { %v1772_v31 = vmul.f32 %v6315_v39, %v8555_v23  ;;  %v2761_v25 = vadd.f32 %v2620_v38, %v1911_v33  ;;  %v2622_v20 = vmul.f32 %v6317_v34, %v8559_v35  ;;  %v2627_v29 = vmul.f32 %v6317_v34, %v8560_v28  ;;  %v8564_v17 = vld [vmem:[#allocation163_spill] sm:$0xff] }
 0x472   : > { %v3609_v51 = vadd.f32 %v3468_v26, %v2759_v24  ;;  %v3614_v30 = vadd.f32 %v3473_v32, %v2764_v19  ;;  %v2766_v23 = vadd.f32 %v2625_v21, %v1916_v18  ;;  %v4150_v24 = vld [vmem:[%s4298_s25 + $0x408] sm:$0xff]  ;;  %v4151_v19 = vld [vmem:[%s4298_s25 + $0x430] sm:$0xff]  ;;  %v8561_v26 = vld [vmem:[#allocation146_spill] sm:$0xff]  ;;  %v1918_v33 = vadd.f32 %v1777_v27, %v1068_v43 }
 0x473   : > { %v3099_v41 = vpop.permute.xlu1 %3098  ;;  %v3119_v16 = vpop.permute.xlu0 %3118  ;;  %v1913_v38 = vadd.f32 %v1772_v31, %v1063_v14  ;;  %v1774_v32 = vmul.f32 %v6315_v39, %v8561_v26  ;;  %v1065_v21 = vmul.f32 %v6321_v37, %v8562_v12  ;;  %v1779_v18 = vmul.f32 %v6315_v39, %v8563_v36 }
 0x474   : > { %3750 = vst [vmem:[%s6369_s30 + $0x1f8] sm:$0xff] %v3609_v51  ;;  %3755 = vst [vmem:[%s6369_s30 + $0x220] sm:$0xff] %v3614_v30  ;;  %v3470_v22 = vmul.f32 %v6336_v40, %v3099_v41  ;;  %v3475_v45 = vmul.f32 %v6336_v40, %v3119_v16  ;;  %3354 = vperm.xlu1 %3965, %v4150_v24   ;;  %3374 = vperm.xlu0 %3966, %v4151_v19   ;;  %v8565_v41 = vld [vmem:[#allocation393_spill] sm:$0xff]  ;;  %v8567_v19 = vld [vmem:[#allocation222_spill] sm:$0xff] }
 0x475   : > { %v1070_v35 = vmul.f32 %v6321_v37, %v8564_v17  ;;  %v2763_v28 = vadd.f32 %v2622_v20, %v1913_v38  ;;  %v2624_v31 = vmul.f32 %v6317_v34, %v8565_v41  ;;  %v2768_v14 = vadd.f32 %v2627_v29, %v1918_v33  ;;  %v8570_v41 = vld [vmem:[#allocation395_spill] sm:$0xff] }
 0x476   : > { %v3611_v51 = vadd.f32 %v3470_v22, %v2761_v25  ;;  %v3616_v30 = vadd.f32 %v3475_v45, %v2766_v23  ;;  %v2629_v43 = vmul.f32 %v6317_v34, %v6118_v56  ;;  %v4152_v23 = vld [vmem:[%s4298_s25 + $0x418] sm:$0xff]  ;;  %v4153_v22 = vld [vmem:[%s4298_s25 + $0x440] sm:$0xff]  ;;  %v1915_v20 = vadd.f32 %v1774_v32, %v1065_v21  ;;  %v8568_v56 = vld [vmem:[#allocation156_spill] sm:$0xff] }
 0x477   : > { %v3107_v16 = vpop.permute.xlu1 %3106  ;;  %v3127_v27 = vpop.permute.xlu0 %3126  ;;  %v8566_v45 = vld [vmem:[#allocation150_spill] sm:$0xff]  ;;  %v1781_v38 = vmul.f32 %v6315_v39, %v8567_v19  ;;  %v1067_v26 = vmul.f32 %v6321_v37, %v8568_v56  ;;  %v1920_v33 = vadd.f32 %v1779_v18, %v1070_v35  ;;  %v2626_v32 = vmul.f32 %v6317_v34, %v8570_v41 }
 0x478   : > { %3752 = vst [vmem:[%s6369_s30 + $0x208] sm:$0xff] %v3611_v51  ;;  %3757 = vst [vmem:[%s6369_s30 + $0x230] sm:$0xff] %v3616_v30  ;;  %v3472_v24 = vmul.f32 %v6336_v40, %v3107_v16  ;;  %v3477_v25 = vmul.f32 %v6336_v40, %v3127_v27  ;;  %3362 = vperm.xlu1 %3965, %v4152_v23   ;;  %3382 = vperm.xlu0 %3966, %v4153_v22   ;;  %v8569_v51 = vld [vmem:[#allocation165_spill] sm:$0xff]  ;;  %v8572_v22 = vld [vmem:[#allocation160_spill] sm:$0xff] }
 0x479   : > { %v1776_v29 = vmul.f32 %v6315_v39, %v8566_v45  ;;  %v1072_v30 = vmul.f32 %v6321_v37, %v8569_v51  ;;  %v2765_v17 = vadd.f32 %v2624_v31, %v1915_v20  ;;  %v2631_v21 = vmul.f32 %v6317_v34, %v6124_v46  ;;  %v8573_v20 = vld [vmem:[#allocation224_spill] sm:$0xff] }
 0x47a   : > { %v3613_v12 = vadd.f32 %v3472_v24, %v2763_v28  ;;  %v3618_v36 = vadd.f32 %v3477_v25, %v2768_v14  ;;  %v2770_v23 = vadd.f32 %v2629_v43, %v1920_v33  ;;  %v4154_v28 = vld [vmem:[%s4298_s25 + $0x428] sm:$0xff]  ;;  %v4155_v14 = vld [vmem:[%s4298_s25 + $0x450] sm:$0xff]  ;;  %v8571_v24 = vld [vmem:[#allocation154_spill] sm:$0xff]  ;;  %v1069_v43 = vmul.f32 %v6321_v37, %v8572_v22 }
 0x47b   : > { %v3115_v16 = vpop.permute.xlu1 %3114  ;;  %v3135_v27 = vpop.permute.xlu0 %3134  ;;  %v1917_v31 = vadd.f32 %v1776_v29, %v1067_v26  ;;  %v1778_v25 = vmul.f32 %v6315_v39, %v8571_v24  ;;  %v1922_v46 = vadd.f32 %v1781_v38, %v1072_v30  ;;  %v1783_v45 = vmul.f32 %v6315_v39, %v8573_v20  ;;  %v8574_v33 = vld [vmem:[#allocation167_spill] sm:$0xff]  ;;  %v8578_v24 = vld [vmem:[#allocation169_spill] sm:$0xff] }
 0x47c   : > { %3754 = vst [vmem:[%s6369_s30 + $0x218] sm:$0xff] %v3613_v12  ;;  %3759 = vst [vmem:[%s6369_s30 + $0x240] sm:$0xff] %v3618_v36  ;;  %v3474_v18 = vmul.f32 %v6336_v40, %v3115_v16  ;;  %v3479_v35 = vmul.f32 %v6336_v40, %v3135_v27  ;;  %3370 = vperm.xlu1 %3965, %v4154_v28   ;;  %3390 = vperm.xlu0 %3966, %v4155_v14   ;;  %v4156_v16 = vld [vmem:[%s4298_s25 + $0x438] sm:$0xff]  ;;  %v4157_v27 = vld [vmem:[%s4298_s25 + $0x460] sm:$0xff] }
 0x47d   : > { %v1074_v12 = vmul.f32 %v6321_v37, %v8574_v33  ;;  %v2767_v36 = vadd.f32 %v2626_v32, %v1917_v31  ;;  %v2628_v29 = vmul.f32 %v6317_v34, %v6122_v49  ;;  %v2772_v26 = vadd.f32 %v2631_v21, %v1922_v46  ;;  %v8575_v49 = vld [vmem:[#allocation158_spill] sm:$0xff] }
 0x47e   : > { %v3615_v19 = vadd.f32 %v3474_v18, %v2765_v17  ;;  %v3620_v56 = vadd.f32 %v3479_v35, %v2770_v23  ;;  %v2633_v30 = vmul.f32 %v6317_v34, %v6130_v42  ;;  %v1919_v32 = vadd.f32 %v1778_v25, %v1069_v43  ;;  %v8576_v18 = vld [vmem:[#allocation226_spill] sm:$0xff] }
 0x47f   : > { %v3123_v51 = vpop.permute.xlu1 %3122  ;;  %v3143_v38 = vpop.permute.xlu0 %3142  ;;  %v1780_v21 = vmul.f32 %v6315_v39, %v8575_v49  ;;  %v1924_v23 = vadd.f32 %v1783_v45, %v1074_v12  ;;  %v1785_v42 = vmul.f32 %v6315_v39, %v8576_v18  ;;  %v8577_v14 = vld [vmem:[#allocation162_spill] sm:$0xff]  ;;  %v1076_v46 = vmul.f32 %v6321_v37, %v8578_v24  ;;  %v4158_v12 = vld [vmem:[%s4298_s25 + $0x448] sm:$0xff]  ;;  %v8583_v24 = vld [vmem:[#allocation225_spill] sm:$0xff] }
 0x480   : > { %3756 = vst [vmem:[%s6369_s30 + $0x228] sm:$0xff] %v3615_v19  ;;  %3761 = vst [vmem:[%s6369_s30 + $0x250] sm:$0xff] %v3620_v56  ;;  %v3476_v41 = vmul.f32 %v6336_v40, %v3123_v51  ;;  %v3481_v17 = vmul.f32 %v6336_v40, %v3143_v38  ;;  %3378 = vperm.xlu1 %3965, %v4156_v16   ;;  %3398 = vperm.xlu0 %3966, %v4157_v27   ;;  %v8580_v51 = vld [vmem:[#allocation228_spill] sm:$0xff]  ;;  %v8582_v16 = vld [vmem:[#allocation171_spill] sm:$0xff] }
 0x481   : > { %v1071_v31 = vmul.f32 %v6321_v37, %v8577_v14  ;;  %v2769_v22 = vadd.f32 %v2628_v29, %v1919_v32  ;;  %v2630_v25 = vmul.f32 %v6317_v34, %v6128_v44  ;;  %v2774_v19 = vadd.f32 %v2633_v30, %v1924_v23  ;;  %v8579_v29 = vld [vmem:[#allocation223_spill] sm:$0xff]  ;;  %v4159_v14 = vld [vmem:[%s4298_s25 + $0x458] sm:$0xff] }
 0x482   : > { %v3617_v35 = vadd.f32 %v3476_v41, %v2767_v36  ;;  %v3622_v28 = vadd.f32 %v3481_v17, %v2772_v26  ;;  %v2635_v45 = vmul.f32 %v6317_v34, %v6136_v53  ;;  %v1782_v44 = vmul.f32 %v6315_v39, %v8579_v29  ;;  %v8581_v41 = vld [vmem:[#allocation164_spill] sm:$0xff] }
 0x483   : > { %v3131_v43 = vpop.permute.xlu1 %3130  ;;  %v3151_v20 = vpop.permute.xlu0 %3150  ;;  %v1921_v36 = vadd.f32 %v1780_v21, %v1071_v31  ;;  %v1926_v26 = vadd.f32 %v1785_v42, %v1076_v46  ;;  %v1787_v38 = vmul.f32 %v6315_v39, %v8580_v51  ;;  %v1073_v17 = vmul.f32 %v6321_v37, %v8581_v41 }
 0x484   : > { %3758 = vst [vmem:[%s6369_s30 + $0x238] sm:$0xff] %v3617_v35  ;;  %3763 = vst [vmem:[%s6369_s30 + $0x260] sm:$0xff] %v3622_v28  ;;  %v3478_v56 = vmul.f32 %v6336_v40, %v3131_v43  ;;  %v3483_v33 = vmul.f32 %v6336_v40, %v3151_v20  ;;  %3386 = vperm.xlu1 %3965, %v4158_v12   ;;  %v1078_v27 = vmul.f32 %v6321_v37, %v8582_v16  ;;  %v8585_v20 = vld [vmem:[#allocation166_spill] sm:$0xff] }
 0x485   : > { %v2771_v32 = vadd.f32 %v2630_v25, %v1921_v36  ;;  %v2632_v49 = vmul.f32 %v6317_v34, %v6134_v50  ;;  %v2776_v18 = vadd.f32 %v2635_v45, %v1926_v26  ;;  %v2637_v42 = vmul.f32 %v6317_v34, %v6142_v52  ;;  %v8586_v45 = vld [vmem:[#allocation173_spill] sm:$0xff] }
 0x486   : > { %v3619_v53 = vadd.f32 %v3478_v56, %v2769_v22  ;;  %v3624_v30 = vadd.f32 %v3483_v33, %v2774_v19  ;;  %v1923_v31 = vadd.f32 %v1782_v44, %v1073_v17  ;;  %v1784_v50 = vmul.f32 %v6315_v39, %v8583_v24  ;;  %v8584_v22 = vld [vmem:[#allocation230_spill] sm:$0xff] }
 0x487   : > { %v3139_v21 = vpop.permute.xlu1 %3138  ;;  %v3159_v23 = vpop.permute.xlu0 %3158  ;;  %v1928_v46 = vadd.f32 %v1787_v38, %v1078_v27  ;;  %v1789_v25 = vmul.f32 %v6315_v39, %v8584_v22  ;;  %v1075_v19 = vmul.f32 %v6321_v37, %v8585_v20  ;;  %v1080_v56 = vmul.f32 %v6321_v37, %v8586_v45  ;;  %v8591_v22 = vld [vmem:[#allocation229_spill] sm:$0xff]  ;;  %v8593_v45 = vld [vmem:[#allocation170_spill] sm:$0xff] }
 0x488   : > { %3760 = vst [vmem:[%s6369_s30 + $0x248] sm:$0xff] %v3619_v53  ;;  %3765 = vst [vmem:[%s6369_s30 + $0x270] sm:$0xff] %v3624_v30  ;;  %v3480_v35 = vmul.f32 %v6336_v40, %v3139_v21  ;;  %v3485_v28 = vmul.f32 %v6336_v40, %v3159_v23  ;;  %3394 = vperm.xlu1 %3965, %v4159_v14   ;;  %v2773_v33 = vadd.f32 %v2632_v49, %v1923_v31  ;;  %v8587_v30 = vld [vmem:[#allocation227_spill] sm:$0xff]  ;;  %v8589_v49 = vld [vmem:[#allocation168_spill] sm:$0xff] }
 0x489   : > { %v2634_v12 = vmul.f32 %v6317_v34, %v6140_v54  ;;  %v2778_v44 = vadd.f32 %v2637_v42, %v1928_v46  ;;  %v2639_v26 = vmul.f32 %v6317_v34, %v6148_v2  ;;  %v1925_v53 = vadd.f32 %v1784_v50, %v1075_v19  ;;  %v8588_v54 = vld [vmem:[#allocation232_spill] sm:$0xff]  ;;  %v8590_v21 = vld [vmem:[#allocation175_spill] sm:$0xff] }
 0x48a   : > { %v3621_v43 = vadd.f32 %v3480_v35, %v2771_v32  ;;  %v3626_v52 = vadd.f32 %v3485_v28, %v2776_v18  ;;  %v1786_v41 = vmul.f32 %v6315_v39, %v8587_v30  ;;  %v1930_v17 = vadd.f32 %v1789_v25, %v1080_v56  ;;  %v8594_v56 = vld [vmem:[#allocation177_spill] sm:$0xff] }
 0x48b   : > { %v3147_v36 = vpop.permute.xlu1 %3146  ;;  %v3167_v29 = vpop.permute.xlu0 %3166  ;;  %v1791_v16 = vmul.f32 %v6315_v39, %v8588_v54  ;;  %v1077_v2 = vmul.f32 %v6321_v37, %v8589_v49  ;;  %v1082_v23 = vmul.f32 %v6321_v37, %v8590_v21  ;;  %v2775_v18 = vadd.f32 %v2634_v12, %v1925_v53  ;;  %v8597_v49 = vld [vmem:[#allocation172_spill] sm:$0xff] }
 0x48c   : > { %3762 = vst [vmem:[%s6369_s30 + $0x258] sm:$0xff] %v3621_v43  ;;  %3767 = vst [vmem:[%s6369_s30 + $0x280] sm:$0xff] %v3626_v52  ;;  %v3482_v51 = vmul.f32 %v6336_v40, %v3147_v36  ;;  %v3487_v38 = vmul.f32 %v6336_v40, %v3167_v29  ;;  %v2636_v42 = vmul.f32 %v6317_v34, %v6146_v48  ;;  %v8592_v48 = vld [vmem:[#allocation234_spill] sm:$0xff] }
 0x48d   : > { %v2780_v14 = vadd.f32 %v2639_v26, %v1930_v17  ;;  %v2641_v31 = vmul.f32 %v6317_v34, %v6154_v55  ;;  %v1927_v46 = vadd.f32 %v1786_v41, %v1077_v2  ;;  %v1788_v25 = vmul.f32 %v6315_v39, %v8591_v22  ;;  %v8595_v41 = vld [vmem:[#allocation231_spill] sm:$0xff] }
 0x48e   : > { %v3623_v27 = vadd.f32 %v3482_v51, %v2773_v33  ;;  %v3628_v32 = vadd.f32 %v3487_v38, %v2778_v44  ;;  %v1932_v43 = vadd.f32 %v1791_v16, %v1082_v23  ;;  %v1793_v52 = vmul.f32 %v6315_v39, %v8592_v48  ;;  %v8598_v2 = vld [vmem:[#allocation179_spill] sm:$0xff] }
 0x48f   : > { %v3155_v35 = vpop.permute.xlu1 %3154  ;;  %v3175_v28 = vpop.permute.xlu0 %3174  ;;  %v1079_v55 = vmul.f32 %v6321_v37, %v8593_v45  ;;  %v1084_v33 = vmul.f32 %v6321_v37, %v8594_v56  ;;  %v2777_v12 = vadd.f32 %v2636_v42, %v1927_v46  ;;  %v2638_v36 = vmul.f32 %v6317_v34, %v6152_v47  ;;  %v8596_v47 = vld [vmem:[#allocation236_spill] sm:$0xff]  ;;  %v8599_v46 = vld [vmem:[#allocation233_spill] sm:$0xff] }
 0x490   : > { %3764 = vst [vmem:[%s6369_s30 + $0x268] sm:$0xff] %v3623_v27  ;;  %3769 = vst [vmem:[%s6369_s30 + $0x290] sm:$0xff] %v3628_v32  ;;  %v3484_v24 = vmul.f32 %v6336_v40, %v3155_v35  ;;  %v3489_v50 = vmul.f32 %v6336_v40, %v3175_v28  ;;  %v2782_v26 = vadd.f32 %v2641_v31, %v1932_v43 }
 0x491   : > { %v2643_v51 = vmul.f32 %v6317_v34, %v6160_v1  ;;  %v1929_v30 = vadd.f32 %v1788_v25, %v1079_v55  ;;  %v1790_v17 = vmul.f32 %v6315_v39, %v8595_v41  ;;  %v1934_v54 = vadd.f32 %v1793_v52, %v1084_v33 }
 0x492   : > { %v3625_v20 = vadd.f32 %v3484_v24, %v2775_v18  ;;  %v3630_v19 = vadd.f32 %v3489_v50, %v2780_v14  ;;  %v1795_v16 = vmul.f32 %v6315_v39, %v8596_v47  ;;  %v1081_v1 = vmul.f32 %v6321_v37, %v8597_v49  ;;  %v8605_v47 = vld [vmem:[#allocation176_spill] sm:$0xff] }
 0x493   : > { %v3163_v29 = vpop.permute.xlu1 %3162  ;;  %v3183_v44 = vpop.permute.xlu0 %3182  ;;  %v1086_v21 = vmul.f32 %v6321_v37, %v8598_v2  ;;  %v2779_v23 = vadd.f32 %v2638_v36, %v1929_v30  ;;  %v2640_v18 = vmul.f32 %v6317_v34, %v6158_v3  ;;  %v2784_v28 = vadd.f32 %v2643_v51, %v1934_v54  ;;  %v8600_v3 = vld [vmem:[#allocation238_spill] sm:$0xff] }
 0x494   : > { %3766 = vst [vmem:[%s6369_s30 + $0x278] sm:$0xff] %v3625_v20  ;;  %3771 = vst [vmem:[%s6369_s30 + $0x2a0] sm:$0xff] %v3630_v19  ;;  %v3486_v38 = vmul.f32 %v6336_v40, %v3163_v29  ;;  %v3491_v53 = vmul.f32 %v6336_v40, %v3183_v44  ;;  %v2645_v14 = vmul.f32 %v6317_v34, %v6166_v9  ;;  %v8601_v20 = vld [vmem:[#allocation174_spill] sm:$0xff]  ;;  %v8602_v19 = vld [vmem:[#allocation181_spill] sm:$0xff] }
 0x495   : > { %v1931_v50 = vadd.f32 %v1790_v17, %v1081_v1  ;;  %v1792_v22 = vmul.f32 %v6315_v39, %v8599_v46  ;;  %v1936_v25 = vadd.f32 %v1795_v16, %v1086_v21  ;;  %v1797_v43 = vmul.f32 %v6315_v39, %v8600_v3  ;;  %v8606_v16 = vld [vmem:[#allocation183_spill] sm:$0xff] }
 0x496   : > { %v3627_v27 = vadd.f32 %v3486_v38, %v2777_v12  ;;  %v3632_v32 = vadd.f32 %v3491_v53, %v2782_v26  ;;  %v1083_v9 = vmul.f32 %v6321_v37, %v8601_v20  ;;  %v1088_v45 = vmul.f32 %v6321_v37, %v8602_v19  ;;  %v8603_v38 = vld [vmem:[#allocation235_spill] sm:$0xff] }
 0x497   : > { %v3171_v42 = vpop.permute.xlu1 %3170  ;;  %v3191_v35 = vpop.permute.xlu0 %3190  ;;  %v2781_v55 = vadd.f32 %v2640_v18, %v1931_v50  ;;  %v2642_v56 = vmul.f32 %v6317_v34, %v6164_v62  ;;  %v2786_v36 = vadd.f32 %v2645_v14, %v1936_v25  ;;  %v2647_v29 = vmul.f32 %v6317_v34, %v6172_v5  ;;  %v8604_v62 = vld [vmem:[#allocation240_spill] sm:$0xff]  ;;  %v8610_v25 = vld [vmem:[#allocation185_spill] sm:$0xff] }
 0x498   : > { %3768 = vst [vmem:[%s6369_s30 + $0x288] sm:$0xff] %v3627_v27  ;;  %3773 = vst [vmem:[%s6369_s30 + $0x2b0] sm:$0xff] %v3632_v32  ;;  %v3488_v31 = vmul.f32 %v6336_v40, %v3171_v42  ;;  %v3493_v24 = vmul.f32 %v6336_v40, %v3191_v35  ;;  %v1933_v51 = vadd.f32 %v1792_v22, %v1083_v9  ;;  %v8609_v22 = vld [vmem:[#allocation178_spill] sm:$0xff] }
 0x499   : > { %v1794_v53 = vmul.f32 %v6315_v39, %v8603_v38  ;;  %v1938_v30 = vadd.f32 %v1797_v43, %v1088_v45  ;;  %v1799_v41 = vmul.f32 %v6315_v39, %v8604_v62  ;;  %v1085_v5 = vmul.f32 %v6321_v37, %v8605_v47  ;;  %v8614_v38 = vld [vmem:[#allocation187_spill] sm:$0xff] }
 0x49a   : > { %v3629_v48 = vadd.f32 %v3488_v31, %v2779_v23  ;;  %v3634_v52 = vadd.f32 %v3493_v24, %v2784_v28  ;;  %v1090_v27 = vmul.f32 %v6321_v37, %v8606_v16  ;;  %v2783_v32 = vadd.f32 %v2642_v56, %v1933_v51  ;;  %v8607_v28 = vld [vmem:[#allocation237_spill] sm:$0xff]  ;;  %v8613_v51 = vld [vmem:[#allocation180_spill] sm:$0xff] }
 0x49b   : > { %v3179_v33 = vpop.permute.xlu1 %3178  ;;  %v3199_v12 = vpop.permute.xlu0 %3198  ;;  %v2644_v49 = vmul.f32 %v6317_v34, %v6170_v11  ;;  %v2788_v21 = vadd.f32 %v2647_v29, %v1938_v30  ;;  %v2649_v23 = vmul.f32 %v6317_v34, %v6178_v57  ;;  %v1935_v35 = vadd.f32 %v1794_v53, %v1085_v5  ;;  %v8608_v11 = vld [vmem:[#allocation242_spill] sm:$0xff] }
 0x49c   : > { %3770 = vst [vmem:[%s6369_s30 + $0x298] sm:$0xff] %v3629_v48  ;;  %3775 = vst [vmem:[%s6369_s30 + $0x2c0] sm:$0xff] %v3634_v52  ;;  %v3490_v44 = vmul.f32 %v6336_v40, %v3179_v33  ;;  %v3495_v26 = vmul.f32 %v6336_v40, %v3199_v12  ;;  %v1796_v14 = vmul.f32 %v6315_v39, %v8607_v28  ;;  %v8611_v33 = vld [vmem:[#allocation239_spill] sm:$0xff] }
 0x49d   : > { %v1940_v31 = vadd.f32 %v1799_v41, %v1090_v27  ;;  %v1801_v24 = vmul.f32 %v6315_v39, %v8608_v11  ;;  %v1087_v57 = vmul.f32 %v6321_v37, %v8609_v22  ;;  %v1092_v3 = vmul.f32 %v6321_v37, %v8610_v25  ;;  %v8619_v25 = vld [vmem:[#allocation243_spill] sm:$0xff] }
 0x49e   : > { %v3631_v17 = vadd.f32 %v3490_v44, %v2781_v55  ;;  %v3636_v54 = vadd.f32 %v3495_v26, %v2786_v36  ;;  %v2785_v43 = vadd.f32 %v2644_v49, %v1935_v35  ;;  %v2646_v48 = vmul.f32 %v6317_v34, %v6176_v0  ;;  %v8612_v0 = vld [vmem:[#allocation244_spill] sm:$0xff] }
 0x49f   : > { %v3187_v1 = vpop.permute.xlu1 %3186  ;;  %v3207_v2 = vpop.permute.xlu0 %3206  ;;  %v2790_v9 = vadd.f32 %v2649_v23, %v1940_v31  ;;  %v2651_v19 = vmul.f32 %v6317_v34, %v6184_v61  ;;  %v1937_v56 = vadd.f32 %v1796_v14, %v1087_v57  ;;  %v1798_v12 = vmul.f32 %v6315_v39, %v8611_v33 }
 0x4a0   : > { %3772 = vst [vmem:[%s6369_s30 + $0x2a8] sm:$0xff] %v3631_v17  ;;  %3777 = vst [vmem:[%s6369_s30 + $0x2d0] sm:$0xff] %v3636_v54  ;;  %v3492_v18 = vmul.f32 %v6336_v40, %v3187_v1  ;;  %v3497_v42 = vmul.f32 %v6336_v40, %v3207_v2  ;;  %v1942_v36 = vadd.f32 %v1801_v24, %v1092_v3 }
 0x4a1   : > { %v1803_v29 = vmul.f32 %v6315_v39, %v8612_v0  ;;  %v1089_v61 = vmul.f32 %v6321_v37, %v8613_v51  ;;  %v1094_v53 = vmul.f32 %v6321_v37, %v8614_v38  ;;  %v2787_v30 = vadd.f32 %v2646_v48, %v1937_v56  ;;  %v8623_v51 = vld [vmem:[#allocation245_spill] sm:$0xff] }
 0x4a2   : > { %v3633_v50 = vadd.f32 %v3492_v18, %v2783_v32  ;;  %v3638_v46 = vadd.f32 %v3497_v42, %v2788_v21  ;;  %v2648_v62 = vmul.f32 %v6317_v34, %v6182_v7  ;;  %v2792_v54 = vadd.f32 %v2651_v19, %v1942_v36  ;;  %v8615_v32 = vld [vmem:[#allocation241_spill] sm:$0xff]  ;;  %v8616_v7 = vld [vmem:[#allocation246_spill] sm:$0xff]  ;;  %v8622_v19 = vld [vmem:[#allocation191_spill] sm:$0xff] }
 0x4a3   : > { %v3195_v52 = vpop.permute.xlu1 %3194  ;;  %v3215_v20 = vpop.permute.xlu0 %3214  ;;  %v2653_v47 = vmul.f32 %v6317_v34, %v6190_v59  ;;  %v1939_v27 = vadd.f32 %v1798_v12, %v1089_v61  ;;  %v1800_v49 = vmul.f32 %v6315_v39, %v8615_v32  ;;  %v1944_v1 = vadd.f32 %v1803_v29, %v1094_v53  ;;  %v8617_v18 = vld [vmem:[#allocation182_spill] sm:$0xff]  ;;  %v8618_v42 = vld [vmem:[#allocation189_spill] sm:$0xff] }
 0x4a4   : > { %3774 = vst [vmem:[%s6369_s30 + $0x2b8] sm:$0xff] %v3633_v50  ;;  %3779 = vst [vmem:[%s6369_s30 + $0x2e0] sm:$0xff] %v3638_v46  ;;  %v3494_v45 = vmul.f32 %v6336_v40, %v3195_v52  ;;  %v3499_v55 = vmul.f32 %v6336_v40, %v3215_v20  ;;  %v1805_v2 = vmul.f32 %v6315_v39, %v8616_v7 }
 0x4a5   : > { %v1091_v59 = vmul.f32 %v6321_v37, %v8617_v18  ;;  %v1096_v35 = vmul.f32 %v6321_v37, %v8618_v42  ;;  %v2789_v28 = vadd.f32 %v2648_v62, %v1939_v27  ;;  %v2650_v14 = vmul.f32 %v6317_v34, %v6188_v58  ;;  %v8620_v58 = vld [vmem:[#allocation248_spill] sm:$0xff] }
 0x4a6   : > { %v3635_v44 = vadd.f32 %v3494_v45, %v2785_v43  ;;  %v3640_v26 = vadd.f32 %v3499_v55, %v2790_v9  ;;  %v2794_v24 = vadd.f32 %v2653_v47, %v1944_v1  ;;  %v2655_v50 = vmul.f32 %v6317_v34, %v6196_v4  ;;  %v8621_v9 = vld [vmem:[#allocation184_spill] sm:$0xff] }
 0x4a7   : > { %v3203_v41 = vpop.permute.xlu1 %3202  ;;  %v3223_v17 = vpop.permute.xlu0 %3222  ;;  %v1941_v57 = vadd.f32 %v1800_v49, %v1091_v59  ;;  %v1802_v3 = vmul.f32 %v6315_v39, %v8619_v25  ;;  %v1946_v43 = vadd.f32 %v1805_v2, %v1096_v35  ;;  %v1807_v48 = vmul.f32 %v6315_v39, %v8620_v58  ;;  %v8631_v58 = vld [vmem:[#allocation249_spill] sm:$0xff] }
 0x4a8   : > { %3776 = vst [vmem:[%s6369_s30 + $0x2c8] sm:$0xff] %v3635_v44  ;;  %3781 = vst [vmem:[%s6369_s30 + $0x2f0] sm:$0xff] %v3640_v26  ;;  %v3496_v5 = vmul.f32 %v6336_v40, %v3203_v41  ;;  %v3501_v16 = vmul.f32 %v6336_v40, %v3223_v17  ;;  %v1093_v4 = vmul.f32 %v6321_v37, %v8621_v9  ;;  %v8625_v41 = vld [vmem:[#allocation186_spill] sm:$0xff]  ;;  %v8626_v17 = vld [vmem:[#allocation193_spill] sm:$0xff] }
 0x4a9   : > { %v1098_v45 = vmul.f32 %v6321_v37, %v8622_v19  ;;  %v2791_v55 = vadd.f32 %v2650_v14, %v1941_v57  ;;  %v2652_v56 = vmul.f32 %v6317_v34, %v6194_v63  ;;  %v2796_v36 = vadd.f32 %v2655_v50, %v1946_v43  ;;  %v8624_v63 = vld [vmem:[#allocation250_spill] sm:$0xff]  ;;  %v8630_v14 = vld [vmem:[#allocation195_spill] sm:$0xff] }
 0x4aa   : > { %v3637_v21 = vadd.f32 %v3496_v5, %v2787_v30  ;;  %v3642_v23 = vadd.f32 %v3501_v16, %v2792_v54  ;;  %v2657_v0 = vmul.f32 %v6317_v34, %v6202_v6  ;;  %v1943_v26 = vadd.f32 %v1802_v3, %v1093_v4  ;;  %v8633_v19 = vld [vmem:[#allocation190_spill] sm:$0xff] }
 0x4ab   : > { %v3211_v31 = vpop.permute.xlu1 %3210  ;;  %v3231_v11 = vpop.permute.xlu0 %3230  ;;  %v1804_v61 = vmul.f32 %v6315_v39, %v8623_v51  ;;  %v1948_v38 = vadd.f32 %v1807_v48, %v1098_v45  ;;  %v1809_v53 = vmul.f32 %v6315_v39, %v8624_v63  ;;  %v1095_v6 = vmul.f32 %v6321_v37, %v8625_v41  ;;  %v8634_v45 = vld [vmem:[#allocation197_spill] sm:$0xff] }
 0x4ac   : > { %3778 = vst [vmem:[%s6369_s30 + $0x2d8] sm:$0xff] %v3637_v21  ;;  %3783 = vst [vmem:[%s6369_s30 + $0x300] sm:$0xff] %v3642_v23  ;;  %v3498_v46 = vmul.f32 %v6336_v40, %v3211_v31  ;;  %v3503_v22 = vmul.f32 %v6336_v40, %v3231_v11  ;;  %v1100_v54 = vmul.f32 %v6321_v37, %v8626_v17  ;;  %v8627_v21 = vld [vmem:[#allocation247_spill] sm:$0xff] }
 0x4ad   : > { %v2793_v47 = vadd.f32 %v2652_v56, %v1943_v26  ;;  %v2654_v5 = vmul.f32 %v6317_v34, %v6200_v60  ;;  %v2798_v32 = vadd.f32 %v2657_v0, %v1948_v38  ;;  %v2659_v49 = vmul.f32 %v6317_v34, %v6208_v8  ;;  %v8628_v60 = vld [vmem:[#allocation252_spill] sm:$0xff]  ;;  %v8636_v38 = vld [vmem:[#allocation251_spill] sm:$0xff] }
 0x4ae   : > { %v3639_v52 = vadd.f32 %v3498_v46, %v2789_v28  ;;  %v3644_v20 = vadd.f32 %v3503_v22, %v2794_v24  ;;  %v1945_v2 = vadd.f32 %v1804_v61, %v1095_v6  ;;  %v1806_v23 = vmul.f32 %v6315_v39, %v8627_v21  ;;  %v8629_v28 = vld [vmem:[#allocation188_spill] sm:$0xff] }
 0x4af   : > { %v3219_v33 = vpop.permute.xlu1 %3218  ;;  %v3239_v12 = vpop.permute.xlu0 %3238  ;;  %v1950_v18 = vadd.f32 %v1809_v53, %v1100_v54  ;;  %v1811_v59 = vmul.f32 %v6315_v39, %v8628_v60  ;;  %v1097_v8 = vmul.f32 %v6321_v37, %v8629_v28  ;;  %v1102_v31 = vmul.f32 %v6321_v37, %v8630_v14  ;;  %v8638_v6 = vld [vmem:[#allocation192_spill] sm:$0xff]  ;;  %v8639_v54 = vld [vmem:[#allocation199_spill] sm:$0xff]  ;;  %v8642_v60 = vld [vmem:[#allocation253_spill] sm:$0xff] }
 0x4b0   : > { %3780 = vst [vmem:[%s6369_s30 + $0x2e8] sm:$0xff] %v3639_v52  ;;  %3785 = vst [vmem:[%s6369_s30 + $0x310] sm:$0xff] %v3644_v20  ;;  %v3500_v29 = vmul.f32 %v6336_v40, %v3219_v33  ;;  %v3505_v44 = vmul.f32 %v6336_v40, %v3239_v12  ;;  %v2795_v11 = vadd.f32 %v2654_v5, %v1945_v2 }
 0x4b1   : > { %v2656_v24 = vmul.f32 %v6317_v34, %v6206_v13  ;;  %v2800_v22 = vadd.f32 %v2659_v49, %v1950_v18  ;;  %v2661_v57 = vmul.f32 %v6317_v34, %v6214_v10  ;;  %v1947_v43 = vadd.f32 %v1806_v23, %v1097_v8  ;;  %v8632_v13 = vld [vmem:[#allocation254_spill] sm:$0xff] }
 0x4b2   : > { %v3641_v30 = vadd.f32 %v3500_v29, %v2791_v55  ;;  %v3646_v62 = vadd.f32 %v3505_v44, %v2796_v36  ;;  %v1808_v48 = vmul.f32 %v6315_v39, %v8631_v58  ;;  %v1952_v52 = vadd.f32 %v1811_v59, %v1102_v31  ;;  %v8635_v29 = vld [vmem:[#allocation397_spill] sm:$0xff]  ;;  %v8644_v31 = vld [vmem:[#allocation194_spill] sm:$0xff] }
 0x4b3   : > { %v3227_v16 = vpop.permute.xlu1 %3226  ;;  %v3247_v27 = vpop.permute.xlu0 %3246  ;;  %v1813_v20 = vmul.f32 %v6315_v39, %v8632_v13  ;;  %v1099_v10 = vmul.f32 %v6321_v37, %v8633_v19  ;;  %v1104_v55 = vmul.f32 %v6321_v37, %v8634_v45  ;;  %v2797_v56 = vadd.f32 %v2656_v24, %v1947_v43  ;;  %v8645_v24 = vld [vmem:[#allocation201_spill] sm:$0xff] }
 0x4b4   : > { %3782 = vst [vmem:[%s6369_s30 + $0x2f8] sm:$0xff] %v3641_v30  ;;  %3787 = vst [vmem:[%s6369_s30 + $0x320] sm:$0xff] %v3646_v62  ;;  %v3502_v1 = vmul.f32 %v6336_v40, %v3227_v16  ;;  %v3507_v7 = vmul.f32 %v6336_v40, %v3247_v27  ;;  %v2658_v33 = vmul.f32 %v6317_v34, %v6212_v15  ;;  %v8637_v15 = vld [vmem:[#allocation256_spill] sm:$0xff]  ;;  %v8647_v58 = vld [vmem:[#allocation401_spill] sm:$0xff] }
 0x4b5   : > { %v2802_v0 = vadd.f32 %v2661_v57, %v1952_v52  ;;  %v2663_v44 = vmul.f32 %v6317_v34, %v8635_v29  ;;  %v1949_v61 = vadd.f32 %v1808_v48, %v1099_v10  ;;  %v1810_v63 = vmul.f32 %v6315_v39, %v8636_v38  ;;  %v8640_v16 = vld [vmem:[#allocation396_spill] sm:$0xff] }
 0x4b6   : > { %v3643_v42 = vadd.f32 %v3502_v1, %v2793_v47  ;;  %v3648_v35 = vadd.f32 %v3507_v7, %v2798_v32  ;;  %v1954_v53 = vadd.f32 %v1813_v20, %v1104_v55  ;;  %v1815_v30 = vmul.f32 %v6315_v39, %v8637_v15  ;;  %v8641_v7 = vld [vmem:[#allocation399_spill] sm:$0xff]  ;;  %v8649_v10 = vld [vmem:[#allocation260_spill] sm:$0xff] }
 0x4b7   : > { %v3235_v50 = vpop.permute.xlu1 %3234  ;;  %v3255_v46 = vpop.permute.xlu0 %3254  ;;  %v1101_v17 = vmul.f32 %v6321_v37, %v8638_v6  ;;  %v1106_v47 = vmul.f32 %v6321_v37, %v8639_v54  ;;  %v2799_v5 = vadd.f32 %v2658_v33, %v1949_v61  ;;  %v2660_v27 = vmul.f32 %v6317_v34, %v8640_v16  ;;  %v8650_v33 = vld [vmem:[#allocation196_spill] sm:$0xff]  ;;  %v8655_v54 = vld [vmem:[#allocation262_spill] sm:$0xff] }
 0x4b8   : > { %3784 = vst [vmem:[%s6369_s30 + $0x308] sm:$0xff] %v3643_v42  ;;  %3789 = vst [vmem:[%s6369_s30 + $0x330] sm:$0xff] %v3648_v35  ;;  %v3504_v25 = vmul.f32 %v6336_v40, %v3235_v50  ;;  %v3509_v3 = vmul.f32 %v6336_v40, %v3255_v46  ;;  %v2804_v1 = vadd.f32 %v2663_v44, %v1954_v53  ;;  %v8643_v35 = vld [vmem:[#allocation258_spill] sm:$0xff]  ;;  %v8652_v44 = vld [vmem:[#allocation400_spill] sm:$0xff] }
 0x4b9   : > { %v2665_v2 = vmul.f32 %v6317_v34, %v8641_v7  ;;  %v1951_v18 = vadd.f32 %v1810_v63, %v1101_v17  ;;  %v1812_v59 = vmul.f32 %v6315_v39, %v8642_v60  ;;  %v1956_v42 = vadd.f32 %v1815_v30, %v1106_v47  ;;  %v8653_v63 = vld [vmem:[#allocation403_spill] sm:$0xff] }
 0x4ba   : > { %v3645_v9 = vadd.f32 %v3504_v25, %v2795_v11  ;;  %v3650_v4 = vadd.f32 %v3509_v3, %v2800_v22  ;;  %v1817_v28 = vmul.f32 %v6315_v39, %v8643_v35  ;;  %v1103_v11 = vmul.f32 %v6321_v37, %v8644_v31  ;;  %v8646_v22 = vld [vmem:[#allocation398_spill] sm:$0xff] }
 0x4bb   : > { %v3243_v12 = vpop.permute.xlu1 %3242  ;;  %v3263_v36 = vpop.permute.xlu0 %3262  ;;  %v1108_v50 = vmul.f32 %v6321_v37, %v8645_v24  ;;  %v2801_v46 = vadd.f32 %v2660_v27, %v1951_v18  ;;  %v2662_v57 = vmul.f32 %v6317_v34, %v8646_v22  ;;  %v2806_v43 = vadd.f32 %v2665_v2, %v1956_v42  ;;  %v8656_v27 = vld [vmem:[#allocation198_spill] sm:$0xff]  ;;  %v8661_v24 = vld [vmem:[#allocation264_spill] sm:$0xff] }
 0x4bc   : > { %3786 = vst [vmem:[%s6369_s30 + $0x318] sm:$0xff] %v3645_v9  ;;  %3791 = vst [vmem:[%s6369_s30 + $0x340] sm:$0xff] %v3650_v4  ;;  %v3506_v26 = vmul.f32 %v6336_v40, %v3243_v12  ;;  %v3511_v51 = vmul.f32 %v6336_v40, %v3263_v36  ;;  %v2667_v48 = vmul.f32 %v6317_v34, %v8647_v58  ;;  %v8648_v9 = vld [vmem:[#allocation255_spill] sm:$0xff]  ;;  %v8658_v2 = vld [vmem:[#allocation402_spill] sm:$0xff] }
 0x4bd   : > { %v1953_v20 = vadd.f32 %v1812_v59, %v1103_v11  ;;  %v1814_v4 = vmul.f32 %v6315_v39, %v8648_v9  ;;  %v1958_v19 = vadd.f32 %v1817_v28, %v1108_v50  ;;  %v1819_v45 = vmul.f32 %v6315_v39, %v8649_v10  ;;  %v8651_v36 = vld [vmem:[#allocation203_spill] sm:$0xff]  ;;  %v8659_v59 = vld [vmem:[#allocation405_spill] sm:$0xff] }
 0x4be   : > { %v3647_v62 = vadd.f32 %v3506_v26, %v2797_v56  ;;  %v3652_v41 = vadd.f32 %v3511_v51, %v2802_v0  ;;  %v1105_v12 = vmul.f32 %v6321_v37, %v8650_v33  ;;  %v1110_v0 = vmul.f32 %v6321_v37, %v8651_v36  ;;  %v8667_v36 = vld [vmem:[#allocation266_spill] sm:$0xff] }
 0x4bf   : > { %v3251_v32 = vpop.permute.xlu1 %3250  ;;  %v3271_v49 = vpop.permute.xlu0 %3270  ;;  %v2803_v29 = vadd.f32 %v2662_v57, %v1953_v20  ;;  %v2664_v26 = vmul.f32 %v6317_v34, %v8652_v44  ;;  %v2808_v38 = vadd.f32 %v2667_v48, %v1958_v19  ;;  %v2669_v53 = vmul.f32 %v6317_v34, %v8653_v63  ;;  %v8662_v57 = vld [vmem:[#allocation200_spill] sm:$0xff] }
 0x4c0   : > { %3788 = vst [vmem:[%s6369_s30 + $0x328] sm:$0xff] %v3647_v62  ;;  %3793 = vst [vmem:[%s6369_s30 + $0x350] sm:$0xff] %v3652_v41  ;;  %v3508_v21 = vmul.f32 %v6336_v40, %v3251_v32  ;;  %v3513_v23 = vmul.f32 %v6336_v40, %v3271_v49  ;;  %v1955_v62 = vadd.f32 %v1814_v4, %v1105_v12  ;;  %v8654_v41 = vld [vmem:[#allocation257_spill] sm:$0xff]  ;;  %v8664_v48 = vld [vmem:[#allocation404_spill] sm:$0xff] }
 0x4c1   : > { %v1816_v6 = vmul.f32 %v6315_v39, %v8654_v41  ;;  %v1960_v17 = vadd.f32 %v1819_v45, %v1110_v0  ;;  %v1821_v47 = vmul.f32 %v6315_v39, %v8655_v54  ;;  %v1107_v32 = vmul.f32 %v6321_v37, %v8656_v27  ;;  %v8657_v49 = vld [vmem:[#allocation205_spill] sm:$0xff]  ;;  %v8665_v4 = vld [vmem:[#allocation407_spill] sm:$0xff] }
 0x4c2   : > { %v3649_v8 = vadd.f32 %v3508_v21, %v2799_v5  ;;  %v3654_v14 = vadd.f32 %v3513_v23, %v2804_v1  ;;  %v1112_v1 = vmul.f32 %v6321_v37, %v8657_v49  ;;  %v2805_v7 = vadd.f32 %v2664_v26, %v1955_v62  ;;  %v8668_v26 = vld [vmem:[#allocation202_spill] sm:$0xff]  ;;  %v8673_v49 = vld [vmem:[#allocation268_spill] sm:$0xff] }
 0x4c3   : > { %v3259_v25 = vpop.permute.xlu1 %3258  ;;  %v3279_v3 = vpop.permute.xlu0 %3278  ;;  %v2666_v21 = vmul.f32 %v6317_v34, %v8658_v2  ;;  %v2810_v60 = vadd.f32 %v2669_v53, %v1960_v17  ;;  %v2671_v42 = vmul.f32 %v6317_v34, %v8659_v59  ;;  %v1823_v50 = vmul.f32 %v6315_v39, %v8661_v24  ;;  %v8670_v53 = vld [vmem:[#allocation406_spill] sm:$0xff] }
 0x4c4   : > { %3790 = vst [vmem:[%s6369_s30 + $0x338] sm:$0xff] %v3649_v8  ;;  %3795 = vst [vmem:[%s6369_s30 + $0x360] sm:$0xff] %v3654_v14  ;;  %v3510_v52 = vmul.f32 %v6336_v40, %v3259_v25  ;;  %v3515_v13 = vmul.f32 %v6336_v40, %v3279_v3  ;;  %v1957_v8 = vadd.f32 %v1816_v6, %v1107_v32  ;;  %v8660_v14 = vld [vmem:[#allocation259_spill] sm:$0xff]  ;;  %v8671_v6 = vld [vmem:[#allocation409_spill] sm:$0xff] }
 0x4c5   : > { %v1818_v31 = vmul.f32 %v6315_v39, %v8660_v14  ;;  %v1962_v11 = vadd.f32 %v1821_v47, %v1112_v1  ;;  %v1109_v25 = vmul.f32 %v6321_v37, %v8662_v57  ;;  %v8663_v3 = vld [vmem:[#allocation207_spill] sm:$0xff]  ;;  %v2673_v19 = vmul.f32 %v6317_v34, %v8665_v4 }
 0x4c6   : > { %v3651_v55 = vadd.f32 %v3510_v52, %v2801_v46  ;;  %v3656_v56 = vadd.f32 %v3515_v13, %v2806_v43  ;;  %v1114_v43 = vmul.f32 %v6321_v37, %v8663_v3  ;;  %v2807_v58 = vadd.f32 %v2666_v21, %v1957_v8  ;;  %v8674_v21 = vld [vmem:[#allocation204_spill] sm:$0xff]  ;;  %v8679_v3 = vld [vmem:[#allocation270_spill] sm:$0xff] }
 0x4c7   : > { %v3267_v51 = vpop.permute.xlu1 %3266  ;;  %v3287_v61 = vpop.permute.xlu0 %3286  ;;  %v2668_v52 = vmul.f32 %v6317_v34, %v8664_v48  ;;  %v2812_v9 = vadd.f32 %v2671_v42, %v1962_v11  ;;  %v1825_v0 = vmul.f32 %v6315_v39, %v8667_v36  ;;  %v2675_v17 = vmul.f32 %v6317_v34, %v8671_v6  ;;  %v8676_v42 = vld [vmem:[#allocation408_spill] sm:$0xff] }
 0x4c8   : > { %3792 = vst [vmem:[%s6369_s30 + $0x348] sm:$0xff] %v3651_v55  ;;  %3797 = vst [vmem:[%s6369_s30 + $0x370] sm:$0xff] %v3656_v56  ;;  %v3512_v15 = vmul.f32 %v6336_v40, %v3267_v51  ;;  %v3517_v30 = vmul.f32 %v6336_v40, %v3287_v61  ;;  %v1959_v55 = vadd.f32 %v1818_v31, %v1109_v25  ;;  %v8666_v56 = vld [vmem:[#allocation261_spill] sm:$0xff]  ;;  %v8677_v31 = vld [vmem:[#allocation411_spill] sm:$0xff] }
 0x4c9   : > { %v1820_v33 = vmul.f32 %v6315_v39, %v8666_v56  ;;  %v1964_v12 = vadd.f32 %v1823_v50, %v1114_v43  ;;  %v1111_v51 = vmul.f32 %v6321_v37, %v8668_v26  ;;  %v8669_v61 = vld [vmem:[#allocation209_spill] sm:$0xff]  ;;  %v1827_v1 = vmul.f32 %v6315_v39, %v8673_v49 }
 0x4ca   : > { %v3653_v5 = vadd.f32 %v3512_v15, %v2803_v29  ;;  %v3658_v16 = vadd.f32 %v3517_v30, %v2808_v38  ;;  %v1116_v38 = vmul.f32 %v6321_v37, %v8669_v61  ;;  %v2809_v63 = vadd.f32 %v2668_v52, %v1959_v55  ;;  %v8680_v52 = vld [vmem:[#allocation206_spill] sm:$0xff]  ;;  %v8685_v61 = vld [vmem:[#allocation272_spill] sm:$0xff] }
 0x4cb   : > { %v3275_v23 = vpop.permute.xlu1 %3274  ;;  %v3295_v18 = vpop.permute.xlu0 %3294  ;;  %v2670_v15 = vmul.f32 %v6317_v34, %v8670_v53  ;;  %v2814_v41 = vadd.f32 %v2673_v19, %v1964_v12  ;;  %v2677_v11 = vmul.f32 %v6317_v34, %v8677_v31  ;;  %v1829_v43 = vmul.f32 %v6315_v39, %v8679_v3  ;;  %v8682_v19 = vld [vmem:[#allocation410_spill] sm:$0xff] }
 0x4cc   : > { %3794 = vst [vmem:[%s6369_s30 + $0x358] sm:$0xff] %v3653_v5  ;;  %3799 = vst [vmem:[%s6369_s30 + $0x380] sm:$0xff] %v3658_v16  ;;  %v3514_v35 = vmul.f32 %v6336_v40, %v3275_v23  ;;  %v3519_v28 = vmul.f32 %v6336_v40, %v3295_v18  ;;  %v1961_v5 = vadd.f32 %v1820_v33, %v1111_v51  ;;  %v8672_v16 = vld [vmem:[#allocation263_spill] sm:$0xff]  ;;  %v8683_v33 = vld [vmem:[#allocation413_spill] sm:$0xff] }
 0x4cd   : > { %v1822_v27 = vmul.f32 %v6315_v39, %v8672_v16  ;;  %v1966_v32 = vadd.f32 %v1825_v0, %v1116_v38  ;;  %v1113_v23 = vmul.f32 %v6321_v37, %v8674_v21  ;;  %v8675_v18 = vld [vmem:[#allocation211_spill] sm:$0xff]  ;;  %v2679_v12 = vmul.f32 %v6317_v34, %v8683_v33 }
 0x4ce   : > { %v3655_v46 = vadd.f32 %v3514_v35, %v2805_v7  ;;  %v3660_v22 = vadd.f32 %v3519_v28, %v2810_v60  ;;  %v1118_v60 = vmul.f32 %v6321_v37, %v8675_v18  ;;  %v2811_v59 = vadd.f32 %v2670_v15, %v1961_v5  ;;  %v8686_v15 = vld [vmem:[#allocation208_spill] sm:$0xff]  ;;  %v8691_v18 = vld [vmem:[#allocation274_spill] sm:$0xff] }
 0x4cf   : > { %v3283_v13 = vpop.permute.xlu1 %3282  ;;  %v3303_v20 = vpop.permute.xlu0 %3302  ;;  %v2672_v35 = vmul.f32 %v6317_v34, %v8676_v42  ;;  %v2816_v14 = vadd.f32 %v2675_v17, %v1966_v32  ;;  %v1831_v38 = vmul.f32 %v6315_v39, %v8685_v61  ;;  %v8688_v17 = vld [vmem:[#allocation412_spill] sm:$0xff] }
 0x4d0   : > { %3796 = vst [vmem:[%s6369_s30 + $0x368] sm:$0xff] %v3655_v46  ;;  %3801 = vst [vmem:[%s6369_s30 + $0x390] sm:$0xff] %v3660_v22  ;;  %v3516_v10 = vmul.f32 %v6336_v40, %v3283_v13  ;;  %v3521_v45 = vmul.f32 %v6336_v40, %v3303_v20  ;;  %v1963_v46 = vadd.f32 %v1822_v27, %v1113_v23  ;;  %v8678_v22 = vld [vmem:[#allocation265_spill] sm:$0xff]  ;;  %v8689_v27 = vld [vmem:[#allocation415_spill] sm:$0xff] }
 0x4d1   : > { %v1824_v57 = vmul.f32 %v6315_v39, %v8678_v22  ;;  %v1968_v25 = vadd.f32 %v1827_v1, %v1118_v60  ;;  %v1115_v13 = vmul.f32 %v6321_v37, %v8680_v52  ;;  %v8681_v20 = vld [vmem:[#allocation213_spill] sm:$0xff]  ;;  %v2681_v32 = vmul.f32 %v6317_v34, %v8689_v27 }
 0x4d2   : > { %v3657_v29 = vadd.f32 %v3516_v10, %v2807_v58  ;;  %v3662_v44 = vadd.f32 %v3521_v45, %v2812_v9  ;;  %v1120_v9 = vmul.f32 %v6321_v37, %v8681_v20  ;;  %v2813_v4 = vadd.f32 %v2672_v35, %v1963_v46  ;;  %v8692_v35 = vld [vmem:[#allocation210_spill] sm:$0xff]  ;;  %v8697_v20 = vld [vmem:[#allocation276_spill] sm:$0xff] }
 0x4d3   : > { %v3291_v30 = vpop.permute.xlu1 %3290  ;;  %v3311_v62 = vpop.permute.xlu0 %3310  ;;  %v2674_v10 = vmul.f32 %v6317_v34, %v8682_v19  ;;  %v2818_v56 = vadd.f32 %v2677_v11, %v1968_v25  ;;  %v1833_v60 = vmul.f32 %v6315_v39, %v8691_v18  ;;  %v8694_v11 = vld [vmem:[#allocation414_spill] sm:$0xff] }
 0x4d4   : > { %3798 = vst [vmem:[%s6369_s30 + $0x378] sm:$0xff] %v3657_v29  ;;  %3803 = vst [vmem:[%s6369_s30 + $0x3a0] sm:$0xff] %v3662_v44  ;;  %v3518_v54 = vmul.f32 %v6336_v40, %v3291_v30  ;;  %v3523_v47 = vmul.f32 %v6336_v40, %v3311_v62  ;;  %v1965_v29 = vadd.f32 %v1824_v57, %v1115_v13  ;;  %v8684_v44 = vld [vmem:[#allocation267_spill] sm:$0xff]  ;;  %v8695_v57 = vld [vmem:[#allocation417_spill] sm:$0xff] }
 0x4d5   : > { %v1826_v26 = vmul.f32 %v6315_v39, %v8684_v44  ;;  %v1970_v51 = vadd.f32 %v1829_v43, %v1120_v9  ;;  %v1117_v30 = vmul.f32 %v6321_v37, %v8686_v15  ;;  %v8687_v62 = vld [vmem:[#allocation215_spill] sm:$0xff]  ;;  %v2683_v25 = vmul.f32 %v6317_v34, %v8695_v57 }
 0x4d6   : > { %v3659_v7 = vadd.f32 %v3518_v54, %v2809_v63  ;;  %v3664_v2 = vadd.f32 %v3523_v47, %v2814_v41  ;;  %v1122_v41 = vmul.f32 %v6321_v37, %v8687_v62  ;;  %v2815_v6 = vadd.f32 %v2674_v10, %v1965_v29  ;;  %v8698_v10 = vld [vmem:[#allocation212_spill] sm:$0xff]  ;;  %v8703_v62 = vld [vmem:[#allocation279_spill] sm:$0xff] }
 0x4d7   : > { %v3299_v28 = vpop.permute.xlu1 %3298  ;;  %v3319_v8 = vpop.permute.xlu0 %3318  ;;  %v2676_v54 = vmul.f32 %v6317_v34, %v8688_v17  ;;  %v2820_v16 = vadd.f32 %v2679_v12, %v1970_v51  ;;  %v1835_v9 = vmul.f32 %v6315_v39, %v8697_v20  ;;  %v8700_v12 = vld [vmem:[#allocation416_spill] sm:$0xff] }
 0x4d8   : > { %3800 = vst [vmem:[%s6369_s30 + $0x388] sm:$0xff] %v3659_v7  ;;  %3805 = vst [vmem:[%s6369_s30 + $0x3b0] sm:$0xff] %v3664_v2  ;;  %v3520_v24 = vmul.f32 %v6336_v40, %v3299_v28  ;;  %v3525_v50 = vmul.f32 %v6336_v40, %v3319_v8  ;;  %v1967_v7 = vadd.f32 %v1826_v26, %v1117_v30  ;;  %v8690_v2 = vld [vmem:[#allocation269_spill] sm:$0xff]  ;;  %v8701_v26 = vld [vmem:[#allocation419_spill] sm:$0xff] }
 0x4d9   : > { %v1828_v21 = vmul.f32 %v6315_v39, %v8690_v2  ;;  %v1972_v23 = vadd.f32 %v1831_v38, %v1122_v41  ;;  %v1119_v28 = vmul.f32 %v6321_v37, %v8692_v35  ;;  %v8693_v8 = vld [vmem:[#allocation217_spill] sm:$0xff]  ;;  %v2685_v51 = vmul.f32 %v6317_v34, %v8701_v26 }
 0x4da   : > { %v3661_v58 = vadd.f32 %v3520_v24, %v2811_v59  ;;  %v3666_v48 = vadd.f32 %v3525_v50, %v2816_v14  ;;  %v1124_v14 = vmul.f32 %v6321_v37, %v8693_v8  ;;  %v2817_v31 = vadd.f32 %v2676_v54, %v1967_v7  ;;  %v8704_v54 = vld [vmem:[#allocation214_spill] sm:$0xff]  ;;  %v8709_v8 = vld [vmem:[#allocation283_spill] sm:$0xff] }
 0x4db   : > { %v3307_v45 = vpop.permute.xlu1 %3306  ;;  %v3327_v55 = vpop.permute.xlu0 %3326  ;;  %v2678_v24 = vmul.f32 %v6317_v34, %v8694_v11  ;;  %v2822_v22 = vadd.f32 %v2681_v32, %v1972_v23  ;;  %v1837_v41 = vmul.f32 %v6315_v39, %v8703_v62  ;;  %v8706_v32 = vld [vmem:[#allocation418_spill] sm:$0xff] }
 0x4dc   : > { %3802 = vst [vmem:[%s6369_s30 + $0x398] sm:$0xff] %v3661_v58  ;;  %3807 = vst [vmem:[%s6369_s30 + $0x3c0] sm:$0xff] %v3666_v48  ;;  %v3522_v36 = vmul.f32 %v6336_v40, %v3307_v45  ;;  %v3527_v0 = vmul.f32 %v6336_v40, %v3327_v55  ;;  %v1969_v58 = vadd.f32 %v1828_v21, %v1119_v28  ;;  %v8696_v48 = vld [vmem:[#allocation271_spill] sm:$0xff]  ;;  %v8707_v21 = vld [vmem:[#allocation421_spill] sm:$0xff] }
 0x4dd   : > { %v1830_v52 = vmul.f32 %v6315_v39, %v8696_v48  ;;  %v1974_v13 = vadd.f32 %v1833_v60, %v1124_v14  ;;  %v1121_v45 = vmul.f32 %v6321_v37, %v8698_v10  ;;  %v8699_v55 = vld [vmem:[#allocation219_spill] sm:$0xff]  ;;  %v2687_v23 = vmul.f32 %v6317_v34, %v8707_v21 }
 0x4de   : > { %v3663_v63 = vadd.f32 %v3522_v36, %v2813_v4  ;;  %v3668_v53 = vadd.f32 %v3527_v0, %v2818_v56  ;;  %v1126_v56 = vmul.f32 %v6321_v37, %v8699_v55  ;;  %v2819_v33 = vadd.f32 %v2678_v24, %v1969_v58  ;;  %v8710_v24 = vld [vmem:[#allocation216_spill] sm:$0xff]  ;;  %v8715_v55 = vld [vmem:[#allocation287_spill] sm:$0xff] }
 0x4df   : > { %v3315_v47 = vpop.permute.xlu1 %3314  ;;  %v3335_v5 = vpop.permute.xlu0 %3334  ;;  %v2680_v36 = vmul.f32 %v6317_v34, %v8700_v12  ;;  %v2824_v44 = vadd.f32 %v2683_v25, %v1974_v13  ;;  %v1839_v14 = vmul.f32 %v6315_v39, %v8709_v8  ;;  %v8712_v25 = vld [vmem:[#allocation420_spill] sm:$0xff] }
 0x4e0   : > { %3804 = vst [vmem:[%s6369_s30 + $0x3a8] sm:$0xff] %v3663_v63  ;;  %3809 = vst [vmem:[%s6369_s30 + $0x3d0] sm:$0xff] %v3668_v53  ;;  %v3524_v49 = vmul.f32 %v6336_v40, %v3315_v47  ;;  %v3529_v1 = vmul.f32 %v6336_v40, %v3335_v5  ;;  %v1971_v63 = vadd.f32 %v1830_v52, %v1121_v45  ;;  %v8702_v53 = vld [vmem:[#allocation273_spill] sm:$0xff] }
 0x4e1   : > { %v1832_v15 = vmul.f32 %v6315_v39, %v8702_v53  ;;  %v1976_v30 = vadd.f32 %v1835_v9, %v1126_v56  ;;  %v1123_v47 = vmul.f32 %v6321_v37, %v8704_v54  ;;  %v8705_v5 = vld [vmem:[#allocation221_spill] sm:$0xff]  ;;  %v1841_v56 = vmul.f32 %v6315_v39, %v8715_v55 }
 0x4e2   : > { %v3665_v59 = vadd.f32 %v3524_v49, %v2815_v6  ;;  %v3670_v42 = vadd.f32 %v3529_v1, %v2820_v16  ;;  %v1128_v16 = vmul.f32 %v6321_v37, %v8705_v5  ;;  %v2821_v27 = vadd.f32 %v2680_v36, %v1971_v63  ;;  %v8713_v52 = vld [vmem:[#allocation281_spill] sm:$0xff]  ;;  %v8716_v36 = vld [vmem:[#allocation218_spill] sm:$0xff]  ;;  %v8721_v5 = vld [vmem:[#allocation291_spill] sm:$0xff] }
 0x4e3   : > { %v3323_v50 = vpop.permute.xlu1 %3322  ;;  %v3343_v46 = vpop.permute.xlu0 %3342  ;;  %v2682_v49 = vmul.f32 %v6317_v34, %v8706_v32  ;;  %v2826_v2 = vadd.f32 %v2685_v51, %v1976_v30  ;;  %v2689_v13 = vmul.f32 %v6317_v34, %v8713_v52  ;;  %v8718_v51 = vld [vmem:[#allocation277_spill] sm:$0xff] }
 0x4e4   : > { %3806 = vst [vmem:[%s6369_s30 + $0x3b8] sm:$0xff] %v3665_v59  ;;  %3811 = vst [vmem:[%s6369_s30 + $0x3e0] sm:$0xff] %v3670_v42  ;;  %v3526_v3 = vmul.f32 %v6336_v40, %v3323_v50  ;;  %v3531_v43 = vmul.f32 %v6336_v40, %v3343_v46  ;;  %v1973_v59 = vadd.f32 %v1832_v15, %v1123_v47  ;;  %v8708_v42 = vld [vmem:[#allocation275_spill] sm:$0xff]  ;;  %v8719_v15 = vld [vmem:[#allocation285_spill] sm:$0xff] }
 0x4e5   : > { %v1834_v35 = vmul.f32 %v6315_v39, %v8708_v42  ;;  %v1978_v28 = vadd.f32 %v1837_v41, %v1128_v16  ;;  %v1125_v50 = vmul.f32 %v6321_v37, %v8710_v24  ;;  %v8711_v46 = vld [vmem:[#allocation7_spill] sm:$0xff]  ;;  %v2691_v30 = vmul.f32 %v6317_v34, %v8719_v15 }
 0x4e6   : > { %v3667_v4 = vadd.f32 %v3526_v3, %v2817_v31  ;;  %v3672_v19 = vadd.f32 %v3531_v43, %v2822_v22  ;;  %v1130_v22 = vmul.f32 %v6321_v37, %v8711_v46  ;;  %v2823_v57 = vadd.f32 %v2682_v49, %v1973_v59  ;;  %v8722_v49 = vld [vmem:[#allocation220_spill] sm:$0xff]  ;;  %v8727_v46 = vld [vmem:[#allocation295_spill] sm:$0xff] }
 0x4e7   : > { %v3331_v0 = vpop.permute.xlu1 %3330  ;;  %v3351_v29 = vpop.permute.xlu0 %3350  ;;  %v2684_v3 = vmul.f32 %v6317_v34, %v8712_v25  ;;  %v2828_v48 = vadd.f32 %v2687_v23, %v1978_v28  ;;  %v1843_v16 = vmul.f32 %v6315_v39, %v8721_v5  ;;  %v8724_v23 = vld [vmem:[#allocation280_spill] sm:$0xff] }
 0x4e8   : > { %3808 = vst [vmem:[%s6369_s30 + $0x3c8] sm:$0xff] %v3667_v4  ;;  %3813 = vst [vmem:[%s6369_s30 + $0x3f0] sm:$0xff] %v3672_v19  ;;  %v3528_v61 = vmul.f32 %v6336_v40, %v3331_v0  ;;  %v3533_v38 = vmul.f32 %v6336_v40, %v3351_v29  ;;  %v1975_v4 = vadd.f32 %v1834_v35, %v1125_v50  ;;  %v8714_v19 = vld [vmem:[#allocation278_spill] sm:$0xff]  ;;  %v8717_v29 = vld [vmem:[#allocation9_spill] sm:$0xff] }
 0x4e9   : > { %v1836_v10 = vmul.f32 %v6315_v39, %v8714_v19  ;;  %v1980_v45 = vadd.f32 %v1839_v14, %v1130_v22  ;;  %v1127_v0 = vmul.f32 %v6321_v37, %v8716_v36  ;;  %v8725_v35 = vld [vmem:[#allocation289_spill] sm:$0xff]  ;;  %v1845_v22 = vmul.f32 %v6315_v39, %v8727_v46 }
 0x4ea   : > { %v3669_v6 = vadd.f32 %v3528_v61, %v2819_v33  ;;  %v3674_v17 = vadd.f32 %v3533_v38, %v2824_v44  ;;  %v1132_v44 = vmul.f32 %v6321_v37, %v8717_v29  ;;  %v2825_v26 = vadd.f32 %v2684_v3, %v1975_v4  ;;  %v8728_v3 = vld [vmem:[#allocation5_spill] sm:$0xff] }
 0x4eb   : > { %v3339_v1 = vpop.permute.xlu1 %3338  ;;  %v3359_v7 = vpop.permute.xlu0 %3358  ;;  %v2686_v61 = vmul.f32 %v6317_v34, %v8718_v51  ;;  %v2830_v53 = vadd.f32 %v2689_v13, %v1980_v45  ;;  %v2693_v28 = vmul.f32 %v6317_v34, %v8725_v35  ;;  %v8730_v13 = vld [vmem:[#allocation284_spill] sm:$0xff] }
 0x4ec   : > { %3810 = vst [vmem:[%s6369_s30 + $0x3d8] sm:$0xff] %v3669_v6  ;;  %3815 = vst [vmem:[%s6369_s30 + $0x400] sm:$0xff] %v3674_v17  ;;  %v3530_v18 = vmul.f32 %v6336_v40, %v3339_v1  ;;  %v3535_v60 = vmul.f32 %v6336_v40, %v3359_v7  ;;  %v1977_v6 = vadd.f32 %v1836_v10, %v1127_v0  ;;  %v8720_v17 = vld [vmem:[#allocation282_spill] sm:$0xff]  ;;  %v8723_v7 = vld [vmem:[#allocation11_spill] sm:$0xff] }
 0x4ed   : > { %v1838_v54 = vmul.f32 %v6315_v39, %v8720_v17  ;;  %v1982_v47 = vadd.f32 %v1841_v56, %v1132_v44  ;;  %v1129_v1 = vmul.f32 %v6321_v37, %v8722_v49  ;;  %v8731_v10 = vld [vmem:[#allocation293_spill] sm:$0xff]  ;;  %v8735_v17 = vld [vmem:[#allocation294_spill] sm:$0xff] }
 0x4ee   : > { %v3671_v31 = vadd.f32 %v3530_v18, %v2821_v27  ;;  %v3676_v11 = vadd.f32 %v3535_v60, %v2826_v2  ;;  %v1134_v2 = vmul.f32 %v6321_v37, %v8723_v7  ;;  %v2827_v21 = vadd.f32 %v2686_v61, %v1977_v6 }
 0x4ef   : > { %v3347_v43 = vpop.permute.xlu1 %3346  ;;  %v3367_v58 = vpop.permute.xlu0 %3366  ;;  %v2688_v18 = vmul.f32 %v6317_v34, %v8724_v23  ;;  %v2832_v42 = vadd.f32 %v2691_v30, %v1982_v47  ;;  %v2695_v45 = vmul.f32 %v6317_v34, %v8731_v10 }
 0x4f0   : > { %3812 = vst [vmem:[%s6369_s30 + $0x3e8] sm:$0xff] %v3671_v31  ;;  %3817 = vst [vmem:[%s6369_s30 + $0x410] sm:$0xff] %v3676_v11  ;;  %v3532_v20 = vmul.f32 %v6336_v40, %v3347_v43  ;;  %v3537_v9 = vmul.f32 %v6336_v40, %v3367_v58  ;;  %v1979_v31 = vadd.f32 %v1838_v54, %v1129_v1  ;;  %v8726_v11 = vld [vmem:[#allocation286_spill] sm:$0xff]  ;;  %v8737_v1 = vld [vmem:[#allocation15_spill] sm:$0xff] }
 0x4f1   : > { %v1840_v24 = vmul.f32 %v6315_v39, %v8726_v11  ;;  %v1984_v50 = vadd.f32 %v1843_v16, %v1134_v2  ;;  %v1131_v43 = vmul.f32 %v6321_v37, %v8728_v3  ;;  %v8729_v58 = vld [vmem:[#allocation10_spill] sm:$0xff]  ;;  %v1844_v54 = vmul.f32 %v6315_v39, %v8735_v17 }
 0x4f2   : > { %v3673_v33 = vadd.f32 %v3532_v20, %v2823_v57  ;;  %v3678_v12 = vadd.f32 %v3537_v9, %v2828_v48  ;;  %v1136_v48 = vmul.f32 %v6321_v37, %v8729_v58  ;;  %v2829_v52 = vadd.f32 %v2688_v18, %v1979_v31 }
 0x4f3   : > { %v3355_v38 = vpop.permute.xlu1 %3354  ;;  %v3375_v63 = vpop.permute.xlu0 %3374  ;;  %v2690_v20 = vmul.f32 %v6317_v34, %v8730_v13  ;;  %v2834_v19 = vadd.f32 %v2693_v28, %v1984_v50  ;;  %v2694_v7 = vmul.f32 %v6317_v34, %v8737_v1 }
 0x4f4   : > { %3814 = vst [vmem:[%s6369_s30 + $0x3f8] sm:$0xff] %v3673_v33  ;;  %3819 = vst [vmem:[%s6369_s30 + $0x420] sm:$0xff] %v3678_v12  ;;  %v3534_v62 = vmul.f32 %v6336_v40, %v3355_v38  ;;  %v3539_v41 = vmul.f32 %v6336_v40, %v3375_v63  ;;  %v1981_v33 = vadd.f32 %v1840_v24, %v1131_v43  ;;  %v8732_v12 = vld [vmem:[#allocation290_spill] sm:$0xff] }
 0x4f5   : > { %v1842_v36 = vmul.f32 %v6315_v39, %v8732_v12  ;;  %v1986_v0 = vadd.f32 %v1845_v22, %v1136_v48 }
 0x4f6   : > { %v3675_v27 = vadd.f32 %v3534_v62, %v2825_v26  ;;  %v3680_v32 = vadd.f32 %v3539_v41, %v2830_v53  ;;  %v8733_v26 = vld [vmem:[#allocation6_spill] sm:$0xff]  ;;  %v2831_v61 = vadd.f32 %v2690_v20, %v1981_v33  ;;  %v8734_v53 = vld [vmem:[#allocation288_spill] sm:$0xff] }
 0x4f7   : > { %v3363_v60 = vpop.permute.xlu1 %3362  ;;  %v3383_v59 = vpop.permute.xlu0 %3382  ;;  %v1133_v51 = vmul.f32 %v6321_v37, %v8733_v26  ;;  %v2692_v15 = vmul.f32 %v6317_v34, %v8734_v53  ;;  %v2836_v30 = vadd.f32 %v2695_v45, %v1986_v0 }
 0x4f8   : > { %3816 = vst [vmem:[%s6369_s30 + $0x408] sm:$0xff] %v3675_v27  ;;  %3821 = vst [vmem:[%s6369_s30 + $0x430] sm:$0xff] %v3680_v32  ;;  %v3536_v8 = vmul.f32 %v6336_v40, %v3363_v60  ;;  %v3541_v14 = vmul.f32 %v6336_v40, %v3383_v59  ;;  %v8736_v27 = vld [vmem:[#allocation8_spill] sm:$0xff] }
 0x4f9   : > { %v1983_v6 = vadd.f32 %v1842_v36, %v1133_v51  ;;  %v1135_v32 = vmul.f32 %v6321_v37, %v8736_v27 }
 0x4fa   : > { %v3677_v57 = vadd.f32 %v3536_v8, %v2827_v21  ;;  %v3682_v25 = vadd.f32 %v3541_v14, %v2832_v42 }
 0x4fb   : > { %v3371_v9 = vpop.permute.xlu1 %3370  ;;  %v3391_v4 = vpop.permute.xlu0 %3390  ;;  %v2833_v49 = vadd.f32 %v2692_v15, %v1983_v6  ;;  %v1985_v39 = vadd.f32 %v1844_v54, %v1135_v32 }
 0x4fc   : > { %3818 = vst [vmem:[%s6369_s30 + $0x418] sm:$0xff] %v3677_v57  ;;  %3823 = vst [vmem:[%s6369_s30 + $0x440] sm:$0xff] %v3682_v25  ;;  %v3538_v55 = vmul.f32 %v6336_v40, %v3371_v9  ;;  %v3543_v56 = vmul.f32 %v6336_v40, %v3391_v4 }
 0x4fd   : > { %v2835_v18 = vadd.f32 %v2694_v7, %v1985_v39 }
 0x4fe   : > { %v3679_v29 = vadd.f32 %v3538_v55, %v2829_v52  ;;  %v3684_v44 = vadd.f32 %v3543_v56, %v2834_v19 }
 0x4ff   : > { %v3379_v38 = vpop.permute.xlu1 %3378  ;;  %v3399_v63 = vpop.permute.xlu0 %3398 }
 0x500   : > { %3820 = vst [vmem:[%s6369_s30 + $0x428] sm:$0xff] %v3679_v29  ;;  %3825 = vst [vmem:[%s6369_s30 + $0x450] sm:$0xff] %v3684_v44  ;;  %v3540_v62 = vmul.f32 %v6336_v40, %v3379_v38  ;;  %v3545_v41 = vmul.f32 %v6336_v40, %v3399_v63 }
 0x502   : > { %v3681_v47 = vadd.f32 %v3540_v62, %v2831_v61  ;;  %v3686_v5 = vadd.f32 %v3545_v41, %v2836_v30 }
 0x503   : > { %v3387_v16 = vpop.permute.xlu1 %3386 }
 0x504   : > { %3822 = vst [vmem:[%s6369_s30 + $0x438] sm:$0xff] %v3681_v47  ;;  %3827 = vst [vmem:[%s6369_s30 + $0x460] sm:$0xff] %v3686_v5  ;;  %v3542_v2 = vmul.f32 %v6336_v40, %v3387_v16 }
 0x506   : > { %v3683_v21 = vadd.f32 %v3542_v2, %v2833_v49 }
 0x507   : > { %v3395_v23 = vpop.permute.xlu1 %3394 }
 0x508   : > { %3824 = vst [vmem:[%s6369_s30 + $0x448] sm:$0xff] %v3683_v21  ;;  %v3544_v37 = vmul.f32 %v6336_v40, %v3395_v23 }
 0x50a   : > { %v3685_v34 = vadd.f32 %v3544_v37, %v2835_v18 }
 0x50c   : > { %3826 = vst [vmem:[%s6369_s30 + $0x458] sm:$0xff] %v3685_v34 }
 0x50d   : > { %4173 = shalt.err (!%p4170_p3)
}
 0x50e   : > { %s4174_s21 = scalar_lea.hbm %s7548_s7, 18048  ;;  %s4178_s24 = scalar_lea.hbm %s7598_s2, 36096 }
 0x50f   : > { %p4175_p4 = scmp.ne.s32.totalorder %s7548_s7, %s4174_s21  ;;  %p4179_p9 = scmp.lt.u32.totalorder %s7548_s7, %s7598_s2 }
 0x510   : > { %p4180_p10 = scmp.lt.u32.totalorder %s4178_s24, %s4174_s21  ;;  %p4182_p12 = scmp.lt.u32.totalorder %s4174_s21, %s7548_s7 }
 0x511   : > { %p4176_p7 = pnand %p4175_p4, %p4284_p5 }
 0x512   : > { %p4181_p11 = por %p4180_p10, %p4179_p9 }
 0x513   : > { %p4177_p8 = pneg %p4176_p7 }
 0x514   : > { %p4183_p13 = por %p4182_p12, %p4181_p11 }
 0x516   : > { %p4184_p0 = pnand %p4183_p13, %p4177_p8 }
 0x518   : > { %4187 = shalt.err (!%p4184_p0)
}
 0x519   : > { %s4229_s27 = smov 128   ;;  %s4230_s28 = smov 8  }
 0x51a   : > { %3914 = dma.vmem_to_hbm [thread:$0]  (%p4284_p5), %s7550_s4, 18048, %s7548_s7, %s7555_s8, %s4229_s27, %s4229_s27, %s4230_s28  }
 0x51b PF: > { %p3920_p1 = scmp.ge.s32.totalorder %s4222_s12, 2  ;;  %s3857_s29 = sand.u32 1, %s4210_s9  }
 0x51c   : > { %s3858_s30 = scalar_lea.sflag [#allocation3], %s3857_s29 }
 0x51d   : > { %p3917_p2 = pnand %p3920_p1, %p4288_p6 }
 0x51f   : > { %4205 = dma.done.wait (!%p3917_p2), %s3858_s30, 18048  }
 0x520   : > { %4207 = vsyncadd (!%p3917_p2), %s3858_s30, 4294949248  ;;  %p12_p3 = scmp.ge.s32.totalorder %s4271_s15, 4   ;;  %s8738_s9 = smov %s4214_s10 }
 0x521   : > { %s8739_s10 = smov %s4218_s11  ;;  %s8740_s11 = smov %s4282_s18 }
 0x522   : > { %s8741_s12 = smov %s4271_s15  ;;  %14 = sbr.rel (!%p12_p3) target bundleno = 3 (0x3), region = 63 }
 0x529   :  { %3863 = vsyncpa [#allocation3], 1 }
 0x52a   :  { %3865 = vsyncpa [#allocation3 + $0x1], 1 }

</bundles_post_ra>
